<compile_context>
chip_gen: v6e
topology: v6e:2x2x1
jax: 0.10.0
libtpu: 0.0.40
codegen_flags: <defaults>
</compile_context>

<pallas_src>
import functools

import jax
import jax.numpy as jnp
from jax.experimental import pallas as pl
from jax.experimental.pallas import tpu as pltpu


def _round_up(x, m):
    return ((x + m - 1) // m) * m


def _pick_row_tile(H, W, cmid_p, cout_p, budget_bytes=8 << 20):
    """Largest divisor of H whose per-tile f32 working set fits the budget.

    Keeps (TH * W) a multiple of 8 so the output block obeys the (8, 128)
    tiling rule (TH == H is always legal: the block then spans the full H*W
    dim).  The budget is conservative enough for v7x's 64 MiB VMEM.
    """
    divisors = [d for d in range(1, H + 1) if H % d == 0]
    cands = [d for d in divisors if (d * W) % 8 == 0] or [H]
    best = min(cands)
    for d in cands:
        ws = d * W * (2 * cmid_p + 3 * cout_p) * 4
        if ws <= budget_bytes:
            best = max(best, d)
    return best


def _yolo_head_kernel(x_ref, w1_ref, b1_ref, w2_ref, b2_ref, sig_ref, o_ref, *,
                      TH, W, Cin, neg_slope):
    """One (batch, row-tile) grid step of the fused YOLOv3 head.

    x_ref  : (1, H+2, W+2, Cin) bf16   zero-padded NHWC slab (whole batch elem)
    w1_ref : (9, Cin, Cmid_p)   bf16   3x3 conv taps (BN folded), lane-padded
    b1_ref : (1, Cmid_p)        f32    folded BN bias
    w2_ref : (Cmid_p, Cout_p)   bf16   1x1 head conv weight
    b2_ref : (1, Cout_p)        f32    head bias
    sig_ref: (1, Cout_p)        f32    1.0 where sigmoid applies, 0.0 for w/h
    o_ref  : (1, TH*W, Cout_p)  f32
    """
    # Row-tile start in the padded slab (hint: always a multiple of TH).
    row0 = pl.multiple_of(pl.program_id(1) * TH, TH)
    cmid_p = w1_ref.shape[-1]

    # 3x3 conv as 9 accumulated MXU dots (bf16 inputs, f32 accumulation).
    # kw offsets are static; only the row start is dynamic.
    acc = jnp.zeros((TH * W, cmid_p), jnp.float32)
    for kh in range(3):
        for kw in range(3):
            x_tap = x_ref[0, pl.ds(row0 + kh, TH), pl.ds(kw, W), :]  # (TH,W,Cin)
            x2d = x_tap.reshape(TH * W, Cin)
            acc = acc + jnp.dot(x2d, w1_ref[kh * 3 + kw],
                                preferred_element_type=jnp.float32)

    # Folded-BN bias + LeakyReLU (VPU; broadcast of b1 is a 1-row tile).
    y = acc + b1_ref[...]
    y = jnp.maximum(y, neg_slope * y)

    # 1x1 head conv + bias (z kept in f32 for the selective sigmoid).
    z = jnp.dot(y.astype(jnp.bfloat16), w2_ref[...],
                preferred_element_type=jnp.float32) + b2_ref[...]

    # Selective sigmoid: xy / obj / cls sigmoided, wh kept raw.  sigmoid goes
    # to the EUP slot, the select to the VPU; both are off the MXU path.
    o_ref[0] = jnp.where(sig_ref[...] > 0.5, jax.nn.sigmoid(z), z)


def yolov3_head_forward(x_nchw, params, num_cla, neg_slope=0.01):
    """params = dict with conv_w (Cmid,Cin,3,3), bn_gamma/beta/mean/var (Cmid,),
    head_w (Cout,Cmid,1,1), head_b (Cout,)."""
    B, Cin, H, W = x_nchw.shape
    Cmid = 2 * Cin
    ch = 5 + num_cla
    Cout = 3 * ch
    Cmid_p = _round_up(Cmid, 128)
    Cout_p = _round_up(Cout, 128)
    Hp, Wp = H + 2, W + 2

    # ---- fold BatchNorm (eval) into the conv weight / bias (glue) ----
    eps = 1e-5
    scale = params["bn_gamma"] / jnp.sqrt(params["bn_var"] + eps)      # (Cmid,)
    w_eff = params["conv_w"] * scale[:, None, None, None]              # (Cmid,Cin,3,3)
    b_eff = params["bn_beta"] - params["bn_mean"] * scale              # (Cmid,)

    # Tap-major GEMM weights, zero-padded on the lane dims, bf16 for the MXU.
    w1 = jnp.transpose(w_eff, (2, 3, 1, 0))                            # (3,3,Cin,Cmid)
    w1 = jnp.pad(w1, ((0, 0), (0, 0), (0, 0), (0, Cmid_p - Cmid)))
    w1 = w1.reshape(9, Cin, Cmid_p).astype(jnp.bfloat16)
    b1 = jnp.pad(b_eff, (0, Cmid_p - Cmid)).reshape(1, Cmid_p).astype(jnp.float32)

    w2 = jnp.transpose(params["head_w"][:, :, 0, 0], (1, 0))           # (Cmid,Cout)
    w2 = jnp.pad(w2, ((0, Cmid_p - Cmid), (0, Cout_p - Cout))).astype(jnp.bfloat16)
    b2 = jnp.pad(params["head_b"], (0, Cout_p - Cout)).reshape(1, Cout_p)
    b2 = b2.astype(jnp.float32)

    # Hoisted selective-sigmoid mask: within each anchor's (5+num_cla) slot,
    # indices 2,3 (w,h) stay raw; everything else is sigmoided.
    k = jnp.arange(Cout_p, dtype=jnp.int32) % ch
    sig_mask = jnp.where((k == 2) | (k == 3), 0.0, 1.0)
    sig_mask = sig_mask.reshape(1, Cout_p).astype(jnp.float32)

    # Zero-padded NHWC slab (no im2col: the kernel does the 3x3 taps itself).
    x = jnp.transpose(x_nchw, (0, 2, 3, 1))                            # NHWC
    xp = jnp.pad(x, ((0, 0), (1, 1), (1, 1), (0, 0))).astype(jnp.bfloat16)

    TH = _pick_row_tile(H, W, Cmid_p, Cout_p)
    n_h = H // TH

    # VMEM budget: double-buffered slab + output tile + resident weights + temps.
    ws = (2 * Hp * Wp * Cin * 2
          + 2 * TH * W * Cout_p * 4
          + 2 * (9 * Cin * Cmid_p + Cmid_p * Cout_p) * 2
          + 2 * (Cmid_p + 2 * Cout_p) * 4
          + TH * W * (2 * Cmid_p + 2 * Cout_p) * 4)
    vmem_limit = int(min(max(2 * ws, 8 << 20), 48 << 20))

    kernel = functools.partial(_yolo_head_kernel, TH=TH, W=W, Cin=Cin,
                               neg_slope=neg_slope)
    out_flat = pl.pallas_call(
        kernel,
        out_shape=jax.ShapeDtypeStruct((B, H * W, Cout_p), jnp.float32),
        grid_spec=pltpu.PrefetchScalarGridSpec(
            num_scalar_prefetch=0,
            grid=(B, n_h),
            in_specs=[
                # Padded slab: block index depends only on b, so it is DMA'd
                # once per batch element and reused across the row tiles.
                pl.BlockSpec((1, Hp, Wp, Cin), lambda b, i: (b, 0, 0, 0)),
                pl.BlockSpec((9, Cin, Cmid_p), lambda b, i: (0, 0, 0)),
                pl.BlockSpec((1, Cmid_p), lambda b, i: (0, 0)),
                pl.BlockSpec((Cmid_p, Cout_p), lambda b, i: (0, 0)),
                pl.BlockSpec((1, Cout_p), lambda b, i: (0, 0)),
                pl.BlockSpec((1, Cout_p), lambda b, i: (0, 0)),
            ],
            out_specs=pl.BlockSpec((1, TH * W, Cout_p), lambda b, i: (b, i, 0)),
        ),
        compiler_params=pltpu.CompilerParams(
            dimension_semantics=("parallel", "parallel"),
            vmem_limit_bytes=vmem_limit),
    )(xp, w1, b1, w2, b2, sig_mask)

    # ---- back to the PyTorch output layout (glue) ----
    out = out_flat[:, :, :Cout].reshape(B, H, W, 3, ch)
    return jnp.transpose(out, (0, 3, 1, 2, 4))                         # (B,3,H,W,ch)


def _reference_forward(x_nchw, params, num_cla, neg_slope=0.01):
    """Pure-JAX f32 reference mirroring the PyTorch module (NCHW)."""
    eps = 1e-5
    scale = params["bn_gamma"] / jnp.sqrt(params["bn_var"] + eps)
    w_eff = params["conv_w"] * scale[:, None, None, None]
    b_eff = params["bn_beta"] - params["bn_mean"] * scale

    y = jax.lax.conv_general_dilated(
        x_nchw, w_eff, (1, 1), ((1, 1), (1, 1)),
        dimension_numbers=("NCHW", "OIHW", "NCHW"))
    y = y + b_eff[None, :, None, None]
    y = jnp.where(y > 0, y, neg_slope * y)

    z = jax.lax.conv_general_dilated(
        y, params["head_w"], (1, 1), ((0, 0), (0, 0)),
        dimension_numbers=("NCHW", "OIHW", "NCHW"))
    z = z + params["head_b"][None, :, None, None]

    B, C, H, W = z.shape
    ch = C // 3
    z = jnp.transpose(z.reshape(B, 3, ch, H, W), (0, 1, 3, 4, 2))
    xy = jax.nn.sigmoid(z[..., :2])
    wh = z[..., 2:4]
    obj = jax.nn.sigmoid(z[..., 4:5])
    cla = jax.nn.sigmoid(z[..., 5:])
    return jnp.concatenate([xy, wh, obj, cla], axis=-1)


if __name__ == "__main__":
    B, in_channels, H, W = 2, 4, 16, 16
    num_cla = 3
    Cmid = 2 * in_channels
    Cout = 3 * (5 + num_cla)

    key = jax.random.PRNGKey(0)
    k = jax.random.split(key, 8)
    params = {
        "conv_w": 0.1 * jax.random.normal(k[0], (Cmid, in_channels, 3, 3), jnp.float32),
        "bn_gamma": 1.0 + 0.1 * jax.random.normal(k[1], (Cmid,), jnp.float32),
        "bn_beta": 0.1 * jax.random.normal(k[2], (Cmid,), jnp.float32),
        "bn_mean": 0.1 * jax.random.normal(k[3], (Cmid,), jnp.float32),
        "bn_var": jnp.abs(1.0 + 0.1 * jax.random.normal(k[4], (Cmid,), jnp.float32)),
        "head_w": 0.1 * jax.random.normal(k[5], (Cout, Cmid, 1, 1), jnp.float32),
        "head_b": 0.1 * jax.random.normal(k[6], (Cout,), jnp.float32),
    }
    x = jax.random.normal(k[7], (B, in_channels, H, W), jnp.float32)

    out = yolov3_head_forward(x, params, num_cla)
    out = jax.block_until_ready(out)

    ref = jax.block_until_ready(_reference_forward(x, params, num_cla))
    assert out.shape == (B, 3, H, W, 5 + num_cla), out.shape
    assert jnp.allclose(out, ref, atol=2e-2, rtol=2e-2), (
        float(jnp.max(jnp.abs(out - ref))))

    print("KERNEL_OK")
</pallas_src>

<mosaic_0001>
module attributes {stable_mosaic.version = 11 : i64} {
  func.func @_yolo_head_kernel(%arg0: i32, %arg1: i32, %arg2: memref<1x18x18x4xbf16, #tpu.memory_space<vmem>>, %arg3: memref<9x4x128xbf16, #tpu.memory_space<vmem>>, %arg4: memref<1x128xf32, #tpu.memory_space<vmem>>, %arg5: memref<128x128xbf16, #tpu.memory_space<vmem>>, %arg6: memref<1x128xf32, #tpu.memory_space<vmem>>, %arg7: memref<1x128xf32, #tpu.memory_space<vmem>>, %arg8: memref<1x256x128xf32, #tpu.memory_space<vmem>>) attributes {dimension_semantics = [#tpu.dimension_semantics<parallel>, #tpu.dimension_semantics<parallel>], iteration_bounds = array<i64: 2, 1>, scalar_prefetch = 0 : i64, scratch_operands = 0 : i64, tpu.core_type = #tpu.core_type<tc>, window_params = [{transform_indices = @transform_0, window_bounds = array<i64: 1, 18, 18, 4>}, {pipeline_mode = #tpu.pipeline_mode<synchronous>, transform_indices = @transform_1, window_bounds = array<i64: 9, 4, 128>}, {pipeline_mode = #tpu.pipeline_mode<synchronous>, transform_indices = @transform_2, window_bounds = array<i64: 1, 128>}, {pipeline_mode = #tpu.pipeline_mode<synchronous>, transform_indices = @transform_3, window_bounds = array<i64: 128, 128>}, {pipeline_mode = #tpu.pipeline_mode<synchronous>, transform_indices = @transform_4, window_bounds = array<i64: 1, 128>}, {pipeline_mode = #tpu.pipeline_mode<synchronous>, transform_indices = @transform_5, window_bounds = array<i64: 1, 128>}, {transform_indices = @transform_6, window_bounds = array<i64: 1, 256, 128>}]} {
    %c16_i32 = arith.constant 16 : i32
    %0 = arith.muli %arg1, %c16_i32 : i32
    %1 = tpu.assume_multiple %0, 16 : i32
    %cst = arith.constant 0.000000e+00 : f32
    %2 = vector.broadcast %cst : f32 to vector<256x128xf32>
    %c0_i32 = arith.constant 0 : i32
    %3 = arith.addi %1, %c0_i32 : i32
    %c0 = arith.constant 0 : index
    %4 = arith.index_cast %3 : i32 to index
    %c0_0 = arith.constant 0 : index
    %c0_1 = arith.constant 0 : index
    %5 = vector.load %arg2[%c0, %4, %c0_0, %c0_1] : memref<1x18x18x4xbf16, #tpu.memory_space<vmem>>, vector<1x16x16x4xbf16>
    %6 = vector.shape_cast %5 : vector<1x16x16x4xbf16> to vector<16x16x4xbf16>
    %7 = vector.shape_cast %6 : vector<16x16x4xbf16> to vector<256x4xbf16>
    %c0_2 = arith.constant 0 : index
    %c0_3 = arith.constant 0 : index
    %c0_4 = arith.constant 0 : index
    %8 = vector.load %arg3[%c0_2, %c0_3, %c0_4] : memref<9x4x128xbf16, #tpu.memory_space<vmem>>, vector<1x4x128xbf16>
    %9 = vector.shape_cast %8 : vector<1x4x128xbf16> to vector<4x128xbf16>
    %cst_5 = arith.constant dense<0.000000e+00> : vector<256x128xf32>
    %10 = tpu.matmul %7, %9, %cst_5 {dimension_numbers = #tpu.dot_dimension_numbers<[1], [0], [0], [1], [0, 0, 1, 1], [], []>} : vector<256x4xbf16>, vector<4x128xbf16>, vector<256x128xf32> -> vector<256x128xf32>
    %11 = arith.addf %2, %10 : vector<256x128xf32>
    %c0_i32_6 = arith.constant 0 : i32
    %12 = arith.addi %1, %c0_i32_6 : i32
    %c0_7 = arith.constant 0 : index
    %13 = arith.index_cast %12 : i32 to index
    %c1 = arith.constant 1 : index
    %c0_8 = arith.constant 0 : index
    %14 = vector.load %arg2[%c0_7, %13, %c1, %c0_8] : memref<1x18x18x4xbf16, #tpu.memory_space<vmem>>, vector<1x16x16x4xbf16>
    %15 = vector.shape_cast %14 : vector<1x16x16x4xbf16> to vector<16x16x4xbf16>
    %16 = vector.shape_cast %15 : vector<16x16x4xbf16> to vector<256x4xbf16>
    %c1_9 = arith.constant 1 : index
    %c0_10 = arith.constant 0 : index
    %c0_11 = arith.constant 0 : index
    %17 = vector.load %arg3[%c1_9, %c0_10, %c0_11] : memref<9x4x128xbf16, #tpu.memory_space<vmem>>, vector<1x4x128xbf16>
    %18 = vector.shape_cast %17 : vector<1x4x128xbf16> to vector<4x128xbf16>
    %cst_12 = arith.constant dense<0.000000e+00> : vector<256x128xf32>
    %19 = tpu.matmul %16, %18, %cst_12 {dimension_numbers = #tpu.dot_dimension_numbers<[1], [0], [0], [1], [0, 0, 1, 1], [], []>} : vector<256x4xbf16>, vector<4x128xbf16>, vector<256x128xf32> -> vector<256x128xf32>
    %20 = arith.addf %11, %19 : vector<256x128xf32>
    %c0_i32_13 = arith.constant 0 : i32
    %21 = arith.addi %1, %c0_i32_13 : i32
    %c0_14 = arith.constant 0 : index
    %22 = arith.index_cast %21 : i32 to index
    %c2 = arith.constant 2 : index
    %c0_15 = arith.constant 0 : index
    %23 = vector.load %arg2[%c0_14, %22, %c2, %c0_15] : memref<1x18x18x4xbf16, #tpu.memory_space<vmem>>, vector<1x16x16x4xbf16>
    %24 = vector.shape_cast %23 : vector<1x16x16x4xbf16> to vector<16x16x4xbf16>
    %25 = vector.shape_cast %24 : vector<16x16x4xbf16> to vector<256x4xbf16>
    %c2_16 = arith.constant 2 : index
    %c0_17 = arith.constant 0 : index
    %c0_18 = arith.constant 0 : index
    %26 = vector.load %arg3[%c2_16, %c0_17, %c0_18] : memref<9x4x128xbf16, #tpu.memory_space<vmem>>, vector<1x4x128xbf16>
    %27 = vector.shape_cast %26 : vector<1x4x128xbf16> to vector<4x128xbf16>
    %cst_19 = arith.constant dense<0.000000e+00> : vector<256x128xf32>
    %28 = tpu.matmul %25, %27, %cst_19 {dimension_numbers = #tpu.dot_dimension_numbers<[1], [0], [0], [1], [0, 0, 1, 1], [], []>} : vector<256x4xbf16>, vector<4x128xbf16>, vector<256x128xf32> -> vector<256x128xf32>
    %29 = arith.addf %20, %28 : vector<256x128xf32>
    %c1_i32 = arith.constant 1 : i32
    %30 = arith.addi %1, %c1_i32 : i32
    %c0_20 = arith.constant 0 : index
    %31 = arith.index_cast %30 : i32 to index
    %c0_21 = arith.constant 0 : index
    %c0_22 = arith.constant 0 : index
    %32 = vector.load %arg2[%c0_20, %31, %c0_21, %c0_22] : memref<1x18x18x4xbf16, #tpu.memory_space<vmem>>, vector<1x16x16x4xbf16>
    %33 = vector.shape_cast %32 : vector<1x16x16x4xbf16> to vector<16x16x4xbf16>
    %34 = vector.shape_cast %33 : vector<16x16x4xbf16> to vector<256x4xbf16>
    %c3 = arith.constant 3 : index
    %c0_23 = arith.constant 0 : index
    %c0_24 = arith.constant 0 : index
    %35 = vector.load %arg3[%c3, %c0_23, %c0_24] : memref<9x4x128xbf16, #tpu.memory_space<vmem>>, vector<1x4x128xbf16>
    %36 = vector.shape_cast %35 : vector<1x4x128xbf16> to vector<4x128xbf16>
    %cst_25 = arith.constant dense<0.000000e+00> : vector<256x128xf32>
    %37 = tpu.matmul %34, %36, %cst_25 {dimension_numbers = #tpu.dot_dimension_numbers<[1], [0], [0], [1], [0, 0, 1, 1], [], []>} : vector<256x4xbf16>, vector<4x128xbf16>, vector<256x128xf32> -> vector<256x128xf32>
    %38 = arith.addf %29, %37 : vector<256x128xf32>
    %c1_i32_26 = arith.constant 1 : i32
    %39 = arith.addi %1, %c1_i32_26 : i32
    %c0_27 = arith.constant 0 : index
    %40 = arith.index_cast %39 : i32 to index
    %c1_28 = arith.constant 1 : index
    %c0_29 = arith.constant 0 : index
    %41 = vector.load %arg2[%c0_27, %40, %c1_28, %c0_29] : memref<1x18x18x4xbf16, #tpu.memory_space<vmem>>, vector<1x16x16x4xbf16>
    %42 = vector.shape_cast %41 : vector<1x16x16x4xbf16> to vector<16x16x4xbf16>
    %43 = vector.shape_cast %42 : vector<16x16x4xbf16> to vector<256x4xbf16>
    %c4 = arith.constant 4 : index
    %c0_30 = arith.constant 0 : index
    %c0_31 = arith.constant 0 : index
    %44 = vector.load %arg3[%c4, %c0_30, %c0_31] : memref<9x4x128xbf16, #tpu.memory_space<vmem>>, vector<1x4x128xbf16>
    %45 = vector.shape_cast %44 : vector<1x4x128xbf16> to vector<4x128xbf16>
    %cst_32 = arith.constant dense<0.000000e+00> : vector<256x128xf32>
    %46 = tpu.matmul %43, %45, %cst_32 {dimension_numbers = #tpu.dot_dimension_numbers<[1], [0], [0], [1], [0, 0, 1, 1], [], []>} : vector<256x4xbf16>, vector<4x128xbf16>, vector<256x128xf32> -> vector<256x128xf32>
    %47 = arith.addf %38, %46 : vector<256x128xf32>
    %c1_i32_33 = arith.constant 1 : i32
    %48 = arith.addi %1, %c1_i32_33 : i32
    %c0_34 = arith.constant 0 : index
    %49 = arith.index_cast %48 : i32 to index
    %c2_35 = arith.constant 2 : index
    %c0_36 = arith.constant 0 : index
    %50 = vector.load %arg2[%c0_34, %49, %c2_35, %c0_36] : memref<1x18x18x4xbf16, #tpu.memory_space<vmem>>, vector<1x16x16x4xbf16>
    %51 = vector.shape_cast %50 : vector<1x16x16x4xbf16> to vector<16x16x4xbf16>
    %52 = vector.shape_cast %51 : vector<16x16x4xbf16> to vector<256x4xbf16>
    %c5 = arith.constant 5 : index
    %c0_37 = arith.constant 0 : index
    %c0_38 = arith.constant 0 : index
    %53 = vector.load %arg3[%c5, %c0_37, %c0_38] : memref<9x4x128xbf16, #tpu.memory_space<vmem>>, vector<1x4x128xbf16>
    %54 = vector.shape_cast %53 : vector<1x4x128xbf16> to vector<4x128xbf16>
    %cst_39 = arith.constant dense<0.000000e+00> : vector<256x128xf32>
    %55 = tpu.matmul %52, %54, %cst_39 {dimension_numbers = #tpu.dot_dimension_numbers<[1], [0], [0], [1], [0, 0, 1, 1], [], []>} : vector<256x4xbf16>, vector<4x128xbf16>, vector<256x128xf32> -> vector<256x128xf32>
    %56 = arith.addf %47, %55 : vector<256x128xf32>
    %c2_i32 = arith.constant 2 : i32
    %57 = arith.addi %1, %c2_i32 : i32
    %c0_40 = arith.constant 0 : index
    %58 = arith.index_cast %57 : i32 to index
    %c0_41 = arith.constant 0 : index
    %c0_42 = arith.constant 0 : index
    %59 = vector.load %arg2[%c0_40, %58, %c0_41, %c0_42] : memref<1x18x18x4xbf16, #tpu.memory_space<vmem>>, vector<1x16x16x4xbf16>
    %60 = vector.shape_cast %59 : vector<1x16x16x4xbf16> to vector<16x16x4xbf16>
    %61 = vector.shape_cast %60 : vector<16x16x4xbf16> to vector<256x4xbf16>
    %c6 = arith.constant 6 : index
    %c0_43 = arith.constant 0 : index
    %c0_44 = arith.constant 0 : index
    %62 = vector.load %arg3[%c6, %c0_43, %c0_44] : memref<9x4x128xbf16, #tpu.memory_space<vmem>>, vector<1x4x128xbf16>
    %63 = vector.shape_cast %62 : vector<1x4x128xbf16> to vector<4x128xbf16>
    %cst_45 = arith.constant dense<0.000000e+00> : vector<256x128xf32>
    %64 = tpu.matmul %61, %63, %cst_45 {dimension_numbers = #tpu.dot_dimension_numbers<[1], [0], [0], [1], [0, 0, 1, 1], [], []>} : vector<256x4xbf16>, vector<4x128xbf16>, vector<256x128xf32> -> vector<256x128xf32>
    %65 = arith.addf %56, %64 : vector<256x128xf32>
    %c2_i32_46 = arith.constant 2 : i32
    %66 = arith.addi %1, %c2_i32_46 : i32
    %c0_47 = arith.constant 0 : index
    %67 = arith.index_cast %66 : i32 to index
    %c1_48 = arith.constant 1 : index
    %c0_49 = arith.constant 0 : index
    %68 = vector.load %arg2[%c0_47, %67, %c1_48, %c0_49] : memref<1x18x18x4xbf16, #tpu.memory_space<vmem>>, vector<1x16x16x4xbf16>
    %69 = vector.shape_cast %68 : vector<1x16x16x4xbf16> to vector<16x16x4xbf16>
    %70 = vector.shape_cast %69 : vector<16x16x4xbf16> to vector<256x4xbf16>
    %c7 = arith.constant 7 : index
    %c0_50 = arith.constant 0 : index
    %c0_51 = arith.constant 0 : index
    %71 = vector.load %arg3[%c7, %c0_50, %c0_51] : memref<9x4x128xbf16, #tpu.memory_space<vmem>>, vector<1x4x128xbf16>
    %72 = vector.shape_cast %71 : vector<1x4x128xbf16> to vector<4x128xbf16>
    %cst_52 = arith.constant dense<0.000000e+00> : vector<256x128xf32>
    %73 = tpu.matmul %70, %72, %cst_52 {dimension_numbers = #tpu.dot_dimension_numbers<[1], [0], [0], [1], [0, 0, 1, 1], [], []>} : vector<256x4xbf16>, vector<4x128xbf16>, vector<256x128xf32> -> vector<256x128xf32>
    %74 = arith.addf %65, %73 : vector<256x128xf32>
    %c2_i32_53 = arith.constant 2 : i32
    %75 = arith.addi %1, %c2_i32_53 : i32
    %c0_54 = arith.constant 0 : index
    %76 = arith.index_cast %75 : i32 to index
    %c2_55 = arith.constant 2 : index
    %c0_56 = arith.constant 0 : index
    %77 = vector.load %arg2[%c0_54, %76, %c2_55, %c0_56] : memref<1x18x18x4xbf16, #tpu.memory_space<vmem>>, vector<1x16x16x4xbf16>
    %78 = vector.shape_cast %77 : vector<1x16x16x4xbf16> to vector<16x16x4xbf16>
    %79 = vector.shape_cast %78 : vector<16x16x4xbf16> to vector<256x4xbf16>
    %c8 = arith.constant 8 : index
    %c0_57 = arith.constant 0 : index
    %c0_58 = arith.constant 0 : index
    %80 = vector.load %arg3[%c8, %c0_57, %c0_58] : memref<9x4x128xbf16, #tpu.memory_space<vmem>>, vector<1x4x128xbf16>
    %81 = vector.shape_cast %80 : vector<1x4x128xbf16> to vector<4x128xbf16>
    %cst_59 = arith.constant dense<0.000000e+00> : vector<256x128xf32>
    %82 = tpu.matmul %79, %81, %cst_59 {dimension_numbers = #tpu.dot_dimension_numbers<[1], [0], [0], [1], [0, 0, 1, 1], [], []>} : vector<256x4xbf16>, vector<4x128xbf16>, vector<256x128xf32> -> vector<256x128xf32>
    %83 = arith.addf %74, %82 : vector<256x128xf32>
    %c0_60 = arith.constant 0 : index
    %c0_61 = arith.constant 0 : index
    %84 = vector.load %arg4[%c0_60, %c0_61] : memref<1x128xf32, #tpu.memory_space<vmem>>, vector<1x128xf32>
    %85 = vector.broadcast %84 : vector<1x128xf32> to vector<256x128xf32>
    %86 = arith.addf %83, %85 : vector<256x128xf32>
    %cst_62 = arith.constant 0.00999999977 : f32
    %87 = vector.broadcast %cst_62 : f32 to vector<256x128xf32>
    %88 = arith.mulf %87, %86 : vector<256x128xf32>
    %89 = arith.maximumf %86, %88 : vector<256x128xf32>
    %90 = arith.truncf %89 : vector<256x128xf32> to vector<256x128xbf16>
    %c0_63 = arith.constant 0 : index
    %c0_64 = arith.constant 0 : index
    %91 = vector.load %arg5[%c0_63, %c0_64] : memref<128x128xbf16, #tpu.memory_space<vmem>>, vector<128x128xbf16>
    %cst_65 = arith.constant dense<0.000000e+00> : vector<256x128xf32>
    %92 = tpu.matmul %90, %91, %cst_65 {dimension_numbers = #tpu.dot_dimension_numbers<[1], [0], [0], [1], [0, 0, 1, 1], [], []>} : vector<256x128xbf16>, vector<128x128xbf16>, vector<256x128xf32> -> vector<256x128xf32>
    %c0_66 = arith.constant 0 : index
    %c0_67 = arith.constant 0 : index
    %93 = vector.load %arg6[%c0_66, %c0_67] : memref<1x128xf32, #tpu.memory_space<vmem>>, vector<1x128xf32>
    %94 = vector.broadcast %93 : vector<1x128xf32> to vector<256x128xf32>
    %95 = arith.addf %92, %94 : vector<256x128xf32>
    %c0_68 = arith.constant 0 : index
    %c0_69 = arith.constant 0 : index
    %96 = vector.load %arg7[%c0_68, %c0_69] : memref<1x128xf32, #tpu.memory_space<vmem>>, vector<1x128xf32>
    %cst_70 = arith.constant 5.000000e-01 : f32
    %97 = vector.broadcast %cst_70 : f32 to vector<1x128xf32>
    %98 = arith.cmpf ogt, %96, %97 : vector<1x128xf32>
    %99 = arith.negf %95 : vector<256x128xf32>
    %100 = math.exp %99 : vector<256x128xf32>
    %cst_71 = arith.constant 1.000000e+00 : f32
    %101 = vector.broadcast %cst_71 : f32 to vector<256x128xf32>
    %102 = arith.addf %101, %100 : vector<256x128xf32>
    %103 = arith.divf %101, %102 : vector<256x128xf32>
    %104 = vector.shape_cast %98 : vector<1x128xi1> to vector<1x128xi1>
    %105 = vector.broadcast %104 : vector<1x128xi1> to vector<256x128xi1>
    %106 = arith.select %105, %103, %95 : vector<256x128xi1>, vector<256x128xf32>
    %c0_72 = arith.constant 0 : index
    %c0_73 = arith.constant 0 : index
    %c0_74 = arith.constant 0 : index
    %107 = vector.load %arg8[%c0_72, %c0_73, %c0_74] : memref<1x256x128xf32, #tpu.memory_space<vmem>>, vector<1x256x128xf32>
    %108 = vector.shape_cast %107 : vector<1x256x128xf32> to vector<256x128xf32>
    %109 = vector.shape_cast %106 : vector<256x128xf32> to vector<1x256x128xf32>
    tpu.vector_store %arg8[%c0_72, %c0_73, %c0_74], %109 {strides = array<i32>} : memref<1x256x128xf32, #tpu.memory_space<vmem>>, vector<1x256x128xf32>,
    return
  }
  func.func @transform_0(%arg0: i32, %arg1: i32) -> (i32, i32, i32, i32) {
    %c0_i32 = arith.constant 0 : i32
    %c0_i32_0 = arith.constant 0 : i32
    %c0_i32_1 = arith.constant 0 : i32
    %c0_i32_2 = arith.constant 0 : i32
    return %arg0, %c0_i32, %c0_i32_0, %c0_i32_1 : i32, i32, i32, i32
  }
  func.func @transform_1(%arg0: i32, %arg1: i32) -> (i32, i32, i32) {
    %c0_i32 = arith.constant 0 : i32
    %c0_i32_0 = arith.constant 0 : i32
    %c0_i32_1 = arith.constant 0 : i32
    %c0_i32_2 = arith.constant 0 : i32
    return %c0_i32, %c0_i32_0, %c0_i32_1 : i32, i32, i32
  }
  func.func @transform_2(%arg0: i32, %arg1: i32) -> (i32, i32) {
    %c0_i32 = arith.constant 0 : i32
    %c0_i32_0 = arith.constant 0 : i32
    %c0_i32_1 = arith.constant 0 : i32
    return %c0_i32, %c0_i32_0 : i32, i32
  }
  func.func @transform_3(%arg0: i32, %arg1: i32) -> (i32, i32) {
    %c0_i32 = arith.constant 0 : i32
    %c0_i32_0 = arith.constant 0 : i32
    %c0_i32_1 = arith.constant 0 : i32
    return %c0_i32, %c0_i32_0 : i32, i32
  }
  func.func @transform_4(%arg0: i32, %arg1: i32) -> (i32, i32) {
    %c0_i32 = arith.constant 0 : i32
    %c0_i32_0 = arith.constant 0 : i32
    %c0_i32_1 = arith.constant 0 : i32
    return %c0_i32, %c0_i32_0 : i32, i32
  }
  func.func @transform_5(%arg0: i32, %arg1: i32) -> (i32, i32) {
    %c0_i32 = arith.constant 0 : i32
    %c0_i32_0 = arith.constant 0 : i32
    %c0_i32_1 = arith.constant 0 : i32
    return %c0_i32, %c0_i32_0 : i32, i32
  }
  func.func @transform_6(%arg0: i32, %arg1: i32) -> (i32, i32, i32) {
    %c0_i32 = arith.constant 0 : i32
    %c0_i32_0 = arith.constant 0 : i32
    return %arg0, %arg1, %c0_i32 : i32, i32, i32
  }
}

</mosaic_0001>

<bundles_post_ra>
// kernel: tpu_custom_call.1
= control target key start
LH: loop header
LB: loop body
LE: loop exit
PB: predicated region body
PF: predicated region fallthrough
CT: control target
= control target key end

     0   :  { %11 = vsyncpa [#allocation3], 0  ;;  %s9532_s0 = inlined_call_operand.vmem [shape: bf16[2,18,18,4], index: 0, kind: input, shape index: {}]   ;;  %s9533_s1 = inlined_call_operand.vmem [shape: bf16[9,4,128], index: 1, kind: input, shape index: {}]   ;;  %s9534_s2 = inlined_call_operand.vmem [shape: f32[1,128], index: 2, kind: input, shape index: {}]   ;;  %s9535_s3 = inlined_call_operand.vmem [shape: bf16[128,128], index: 3, kind: input, shape index: {}]   ;;  %s9536_s4 = inlined_call_operand.vmem [shape: f32[1,128], index: 4, kind: input, shape index: {}]   ;;  %s9537_s5 = inlined_call_operand.vmem [shape: f32[1,128], index: 5, kind: input, shape index: {}]   ;;  %s9538_s6 = inlined_call_operand.hbm [shape: f32[2,256,128], index: 6, kind: output, shape index: {}]  }
   0x1   :  { %13 = vsyncpa [#allocation3 + $0x1], 0  ;;  %s7040_s21 = smov 0   ;;  %s7042_s22 = smov 0  }
   0x2   :  { %s7044_s23 = smov 0   ;;  %s7046_s24 = smov 0  }
   0x3   :  { %s7048_s25 = smov 0   ;;  %s7050_s26 = smov 0  }
   0x4 LB: > { %s5549_s27 = sadd.s32 4294967295, %s6999_s26   ;;  %s5550_s28 = sadd.s32 4294967294, %s6999_s26   ;;  %s6999_s26 = sphi %s7050_s26, %s19_s26   ;;  %s6995_s25 = sphi %s7048_s25, %s9649_s25   ;;  %s6991_s24 = sphi %s7046_s24, %s9648_s24   ;;  %s6987_s23 = sphi %s7044_s23, %s9647_s23   ;;  %s6983_s22 = sphi %s7042_s22, %s9646_s22   ;;  %s6979_s21 = sphi %s7040_s21, %s9645_s21  }
   0x5   : > { %s31_s29 = sadd.s32 1, %s6995_s25  ;;  %s171_s30 = sadd.s32 1, %s6987_s23 }
   0x6   : > { %p33_p0 = scmp.ge.s32.totalorder %s31_s29, 2  ;;  %p181_p1 = scmp.ne.s32.totalorder %s6987_s23, %s6983_s22 }
   0x7   : > { %p182_p2 = scmp.eq.s32.totalorder %s5549_s27, 1  ;;  %p187_p3 = scmp.ne.s32.totalorder %s6983_s22, %s6979_s21 }
   0x8   : > { %s9651_s29 = smov (%p33_p0, %s31_s29), 0  ;;  %p188_p5 = scmp.eq.s32.totalorder %s5550_s28, 1 }
   0x9   : > { %p7080_p4 = por %p182_p2, %p181_p1  ;;  %s166_s8 = ssub.s32 %s6995_s25, %s9651_s29 }
   0xa   : > { %p5553_p6 = scmp.ge.s32.totalorder %s6999_s26, 1  ;;  %p169_p7 = scmp.eq.s32.totalorder %s166_s8, 0 }
   0xb   : > { %p7087_p8 = por %p188_p5, %p187_p3  ;;  %p229_p9 = scmp.lt.s32.totalorder %s6999_s26, 3 }
   0xc   : > { %s7093_s10 = scalar_select %p169_p7, %s6987_s23, %s171_s30  }
   0xd   : > { %p230_p10 = pnand %p5553_p6, %p229_p9 }
   0xf   : > { %233 = sbr.rel (%p230_p10) target bundleno = 823 (0x337), region = 44 }
  0x14   : > { %v5556_v0 = vld [vmem:[%s9533_s1 + $0x2] sm:$0x3]  ;;  %vm805_vm0 = vcmask 1041408   ;;  %v302_v1 = vld [vmem:[%s9533_s1] sm:$0x3]  ;;  %p259_p11 = scmp.lt.s32.totalorder %s6991_s24, 1 }
  0x15   : > { %6671 = vmatprep.subr.msk.bf16.mxu0 %vm805_vm0, %v5556_v0  ;;  %v807_v2 = vsel %vm805_vm0, %v5556_v0, 0  ;;  %6672 = vmatprep.subr.msk.bf16.mxu1 %vm805_vm0, %v302_v1  ;;  %v1099_v3 = vsel %vm805_vm0, %v302_v1, 0  ;;  %vm319_vm1 = vsmask.f32 3328  ;;  %vm320_vm2 = vsmask.f32 7440 }
  0x16   : > { %6318 = vmatpush3.bf16.msra.mxu0 %v807_v2  ;;  %6352 = vmatpush3.bf16.msra.mxu1 %v1099_v3  ;;  %s260_s15 = scalar_select %p259_p11, %s6991_s24, 1  ;;  %v5637_v4 = vld [vmem:[%s9533_s1 + $0x4] sm:$0x3]  ;;  %v5702_v5 = vld [vmem:[%s9533_s1 + $0x6] sm:$0x3]  ;;  %vm756_vm3 = vcmask 31744   ;;  %vm7159_vm4 = vmor %vm319_vm1, %vm320_vm2 }
  0x17   : > { %6673 = vmatprep.subr.msk.bf16.mxu0 %vm805_vm0, %v5637_v4  ;;  %v7115_v6 = vsel %vm805_vm0, %v5637_v4, 0  ;;  %6674 = vmatprep.subr.msk.bf16.mxu1 %vm805_vm0, %v5702_v5  ;;  %v1886_v7 = vsel %vm805_vm0, %v5702_v5, 0  ;;  %v7122_v8 = vld [vmem:[%s9533_s1 + $0x8] sm:$0x3]  ;;  %vm1310_vm5 = vcmask 1042432   ;;  %vm1311_vm6 = vcmask 1046532  }
  0x18   : > { %s6680_s28 = smul.u32 216, %s260_s15  ;;  %v7126_v9 = vsel %vm805_vm0, %v7122_v8, 0  ;;  %vm7421_vm7 = vmor %vm1310_vm5, %vm1311_vm6  ;;  %s6139_s17 = sshll.u32 %s6991_s24, 12 }
  0x19   : > { %s9476_s27 = scalar_lea.hbm %s9538_s6, %s6139_s17  ;;  %s7002_s30 = smov [#allocation2]  }
  0x1a   : > { %s7131_s11 = scalar_lea.vmem %s9532_s0, %s6680_s28  ;;  %s6927_s8 = sshll.u32 %s7002_s30, 4  ;;  %s6928_s8 = int_to_ptr.vmem [resolvable:$false] %s6927_s8 }
  0x1b   : > { %v270_v10 = vld [vmem:[%s7131_s11] sm:$0xf]  ;;  %v7135_v11 = vld [vmem:[%s7131_s11 + $0x4] sm:$0xf]  ;;  %v7138_v12 = vld [vmem:[%s7131_s11 + $0x8] sm:$0x1] }
  0x1c   : > { %v323_v13 = vshrl.u32 %v270_v10, 16  ;;  %v326_v14 = vshll.u32 %v270_v10, 16  ;;  %v332_v15 = vshll.u32 %v7135_v11, 16  ;;  %v336_v16 = vshrl.u32 %v7135_v11, 16  ;;  %v272_v17 = vld [vmem:[%s7131_s11 + $0xc] sm:$0xf] }
  0x1d   : > { %v342_v18 = vshll.u32 %v7138_v12, 16  ;;  %v1318_v19 = vrot.slane %v7138_v12, 5  ;;  %v5589_v20 = vcombine.low %v270_v10, %v7135_v11  ;;  %v7147_v21 = vld [vmem:[%s7131_s11 + $0x10] sm:$0xf]  ;;  %v7150_v22 = vld [vmem:[%s7131_s11 + $0x14] sm:$0x1] }
  0x1e   : > { %v325_v23 = vrot.slane %v323_v13, 4  ;;  %v328_v24 = vrot.slane %v326_v14, 5  ;;  %v334_v25 = vrot.slane %v332_v15, 5  ;;  %v338_v26 = vrot.slane %v336_v16, 4  ;;  %v274_v35 = vld [vmem:[%s7131_s11 + $0x18] sm:$0xf] }
  0x1f   : > { %v344_v27 = vrot.slane %v342_v18, 5  ;;  %6353 = vmatprep.mubr.msk.bf16.mxu1 %vm756_vm3, %v5589_v20  ;;  %v347_v28 = vshrl.u32 %v272_v17, 16  ;;  %v350_v29 = vshll.u32 %v272_v17, 16  ;;  %v356_v30 = vshll.u32 %v7147_v21, 16  ;;  %v7165_v45 = vld [vmem:[%s7131_s11 + $0x1c] sm:$0xf] }
  0x20   : > { %v329_v31 = vor.u32 %v328_v24, %v325_v23  ;;  %v339_v32 = vor.u32 %v338_v26, %v334_v25  ;;  %v360_v33 = vshrl.u32 %v7147_v21, 16  ;;  %v366_v34 = vshll.u32 %v7150_v22, 16  ;;  %v7170_v49 = vld [vmem:[%s7131_s11 + $0x20] sm:$0x1]  ;;  %v276_v55 = vld [vmem:[%s7131_s11 + $0x24] sm:$0xf] }
  0x21   : > { %v349_v37 = vrot.slane %v347_v28, 4  ;;  %v352_v38 = vrot.slane %v350_v29, 5  ;;  %v358_v39 = vrot.slane %v356_v30, 5  ;;  %v1322_v40 = vrot.slane %v7147_v21, 5  ;;  %v7182_v0 = vld [vmem:[%s7131_s11 + $0x28] sm:$0xf] }
  0x22   : > { %v330_v41 = vrot.slane %v329_v31, 4  ;;  %v340_v42 = vrot.slane %v339_v32, 4  ;;  %v362_v43 = vrot.slane %v360_v33, 4  ;;  %v368_v44 = vrot.slane %v366_v34, 5  ;;  %v7189_v4 = vld [vmem:[%s7131_s11 + $0x2c] sm:$0x1] }
  0x23   : > { %v353_v46 = vor.u32 %v352_v38, %v349_v37  ;;  %v1325_v47 = vrot.slane %v7150_v22, 5  ;;  %v5590_v48 = vcombine.low %v272_v17, %v7147_v21  ;;  %v371_v50 = vshrl.u32 %v274_v35, 16  ;;  %v7204_v31 = vld [vmem:[%s7131_s11 + $0x38] sm:$0x1]  ;;  %s6929_s12 = scalar_lea.vmem %s6928_s8, 8192 }
  0x24   : > { %v335_v51 = vsel %vm7159_vm4, %v330_v41, %v334_v25  ;;  %v345_v52 = vsel %vm7159_vm4, %v340_v42, %v344_v27  ;;  %v363_v53 = vor.u32 %v362_v43, %v358_v39  ;;  %v374_v54 = vshll.u32 %v274_v35, 16  ;;  %v7199_v27 = vld [vmem:[%s7131_s11 + $0x34] sm:$0xf] }
  0x25   : > { %v5557_v56 = vcombine.low %v335_v51, %v345_v52  ;;  %v354_v57 = vrot.slane %v353_v46, 4  ;;  %6354 = vmatmul.mubr.msk.bf16.vlgmr.msra.gmra.mxu1 %vm756_vm3, %v5590_v48  ;;  %v373_v58 = vrot.slane %v371_v50, 4  ;;  %v380_v59 = vshll.u32 %v7165_v45, 16  ;;  %v280_v48 = vld [vmem:[%s7131_s11 + $0x3c] sm:$0xf] }
  0x26   : > { %v364_v60 = vrot.slane %v363_v53, 4  ;;  %v376_v61 = vrot.slane %v374_v54, 5  ;;  %v384_v62 = vshrl.u32 %v7165_v45, 16  ;;  %v390_v63 = vshll.u32 %v7170_v49, 16  ;;  %6420 = vmatpush3.bf16.msra.mxu1 %v1886_v7  ;;  %v278_v7 = vld [vmem:[%s7131_s11 + $0x30] sm:$0xf] }
  0x27   : > { %6319 = vmatprep.mubr.msk.bf16.mxu0 %vm756_vm3, %v5557_v56  ;;  %v359_v1 = vsel %vm7159_vm4, %v354_v57, %v358_v39  ;;  %v382_v2 = vrot.slane %v380_v59, 5  ;;  %v5591_v3 = vcombine.low %v274_v35, %v7165_v45  ;;  %v395_v5 = vshrl.u32 %v276_v55, 16  ;;  %v7219_v54 = vld [vmem:[%s7131_s11 + $0x40] sm:$0xf] }
  0x28   : > { %v369_v10 = vsel %vm7159_vm4, %v364_v60, %v368_v44  ;;  %v377_v13 = vor.u32 %v376_v61, %v373_v58  ;;  %v386_v14 = vrot.slane %v384_v62, 4  ;;  %v392_v15 = vrot.slane %v390_v63, 5  ;;  %v7226_v60 = vld [vmem:[%s7131_s11 + $0x44] sm:$0x1] }
  0x29   : > { %v5558_v16 = vcombine.low %v359_v1, %v369_v10  ;;  %6357 = vmatprep.mubr.msk.bf16.mxu1 %vm756_vm3, %v5591_v3  ;;  %v397_v17 = vrot.slane %v395_v5, 4  ;;  %v398_v18 = vshll.u32 %v276_v55, 16  ;;  %v404_v20 = vshll.u32 %v7182_v0, 16  ;;  %v282_v5 = vld [vmem:[%s7131_s11 + $0x48] sm:$0xf] }
  0x2a   : > { %v378_v23 = vrot.slane %v377_v13, 4  ;;  %v387_v24 = vor.u32 %v386_v14, %v382_v2  ;;  %v408_v25 = vshrl.u32 %v7182_v0, 16  ;;  %v414_v26 = vshll.u32 %v7189_v4, 16 }
  0x2b   : > { %6320 = vmatmul.mubr.msk.bf16.vlgmr.msra.gmra.mxu0 %vm756_vm3, %v5558_v16  ;;  %v400_v28 = vrot.slane %v398_v18, 5  ;;  %v406_v29 = vrot.slane %v404_v20, 5  ;;  %v5592_v30 = vcombine.low %v276_v55, %v7182_v0  ;;  %v419_v32 = vshrl.u32 %v278_v7, 16  ;;  %v7236_v20 = vld [vmem:[%s7131_s11 + $0x4c] sm:$0xf] }
  0x2c   : > { %6386 = vmatpush3.bf16.msra.mxu0 %v7115_v6  ;;  %v383_v33 = vsel %vm7159_vm4, %v378_v23, %v382_v2  ;;  %v388_v34 = vrot.slane %v387_v24, 4  ;;  %v410_v35 = vrot.slane %v408_v25, 4  ;;  %v416_v37 = vrot.slane %v414_v26, 5  ;;  %v7243_v26 = vld [vmem:[%s7131_s11 + $0x50] sm:$0x1] }
  0x2d   : > { %v401_v38 = vor.u32 %v400_v28, %v397_v17  ;;  %6358 = vmatmul.mubr.msk.bf16.gmra.mxu1 %vm756_vm3, %v5592_v30  ;;  %v421_v39 = vrot.slane %v419_v32, 4  ;;  %v422_v41 = vshll.u32 %v278_v7, 16  ;;  %v428_v42 = vshll.u32 %v7199_v27, 16  ;;  %6675 = vmatprep.subr.msk.bf16.mxu0 %vm805_vm0, %v7122_v8 }
  0x2e   : > { %v393_v6 = vsel %vm7159_vm4, %v388_v34, %v392_v15  ;;  %v411_v43 = vor.u32 %v410_v35, %v406_v29  ;;  %v432_v44 = vshrl.u32 %v7199_v27, 16  ;;  %v438_v46 = vshll.u32 %v7204_v31, 16  ;;  %v284_v34 = vld [vmem:[%s7131_s11 + $0x54] sm:$0xf] }
  0x2f   : > { %v5559_v50 = vcombine.low %v383_v33, %v393_v6  ;;  %v402_v51 = vrot.slane %v401_v38, 4  ;;  %v424_v52 = vrot.slane %v422_v41, 5  ;;  %v430_v53 = vrot.slane %v428_v42, 5 }
  0x30   : > { %v412_v55 = vrot.slane %v411_v43, 4  ;;  %v434_v56 = vrot.slane %v432_v44, 4  ;;  %v440_v8 = vrot.slane %v438_v46, 5  ;;  %v5593_v57 = vcombine.low %v278_v7, %v7199_v27  ;;  %v7253_v44 = vld [vmem:[%s7131_s11 + $0x58] sm:$0xf] }
  0x31   : > { %6323 = vmatprep.mubr.msk.bf16.mxu0 %vm756_vm3, %v5559_v50  ;;  %v407_v58 = vsel %vm7159_vm4, %v402_v51, %v406_v29  ;;  %v425_v59 = vor.u32 %v424_v52, %v421_v39  ;;  %v443_v61 = vshrl.u32 %v280_v48, 16  ;;  %v446_v62 = vshll.u32 %v280_v48, 16  ;;  %v7260_v51 = vld [vmem:[%s7131_s11 + $0x5c] sm:$0x1] }
  0x32   : > { %v417_v63 = vsel %vm7159_vm4, %v412_v55, %v416_v37  ;;  %v435_v1 = vor.u32 %v434_v56, %v430_v53  ;;  %6361 = vmatprep.mubr.msk.bf16.mxu1 %vm756_vm3, %v5593_v57  ;;  %v452_v2 = vshll.u32 %v7219_v54, 16  ;;  %v456_v3 = vshrl.u32 %v7219_v54, 16  ;;  %v286_v57 = vld [vmem:[%s7131_s11 + $0x60] sm:$0xf] }
  0x33   : > { %v5560_v10 = vcombine.low %v407_v58, %v417_v63  ;;  %v426_v13 = vrot.slane %v425_v59, 4  ;;  %v445_v14 = vrot.slane %v443_v61, 4  ;;  %v448_v15 = vrot.slane %v446_v62, 5 }
  0x34   : > { %v436_v7 = vrot.slane %v435_v1, 4  ;;  %v454_v16 = vrot.slane %v452_v2, 5  ;;  %v458_v17 = vrot.slane %v456_v3, 4  ;;  %v462_v18 = vshll.u32 %v7226_v60, 16 }
  0x35   : > { %6324 = vmatmul.mubr.msk.bf16.gmra.mxu0 %vm756_vm3, %v5560_v10  ;;  %v431_v23 = vsel %vm7159_vm4, %v426_v13, %v430_v53  ;;  %v449_v24 = vor.u32 %v448_v15, %v445_v14  ;;  %v5594_v25 = vcombine.low %v280_v48, %v7219_v54  ;;  %v467_v28 = vshrl.u32 %v282_v5, 16  ;;  %v7275_v15 = vld [vmem:[%s7131_s11 + $0x68] sm:$0x1] }
  0x36   : > { %v441_v29 = vsel %vm7159_vm4, %v436_v7, %v440_v8  ;;  %v459_v30 = vor.u32 %v458_v17, %v454_v16  ;;  %v464_v32 = vrot.slane %v462_v18, 5  ;;  %v470_v33 = vshll.u32 %v282_v5, 16 }
  0x37   : > { %v5561_v35 = vcombine.low %v431_v23, %v441_v29  ;;  %v450_v37 = vrot.slane %v449_v24, 4  ;;  %6362 = vmatmul.mubr.msk.bf16.gmra.mxu1 %vm756_vm3, %v5594_v25  ;;  %v469_v38 = vrot.slane %v467_v28, 4  ;;  %v476_v39 = vshll.u32 %v7236_v20, 16  ;;  %v288_v24 = vld [vmem:[%s7131_s11 + $0x6c] sm:$0xf] }
  0x38   : > { %v460_v41 = vrot.slane %v459_v30, 4  ;;  %v472_v42 = vrot.slane %v470_v33, 5  ;;  %v480_v6 = vshrl.u32 %v7236_v20, 16  ;;  %v486_v43 = vshll.u32 %v7243_v26, 16 }
  0x39   : > { %6327 = vmatprep.mubr.msk.bf16.mxu0 %vm756_vm3, %v5561_v35  ;;  %v455_v46 = vsel %vm7159_vm4, %v450_v37, %v454_v16  ;;  %v478_v48 = vrot.slane %v476_v39, 5  ;;  %v5595_v50 = vcombine.low %v282_v5, %v7236_v20  ;;  %v491_v52 = vshrl.u32 %v284_v34, 16  ;;  %v7270_v5 = vld [vmem:[%s7131_s11 + $0x64] sm:$0xf] }
  0x3a   : > { %v465_v53 = vsel %vm7159_vm4, %v460_v41, %v464_v32  ;;  %v473_v55 = vor.u32 %v472_v42, %v469_v38  ;;  %v482_v56 = vrot.slane %v480_v6, 4  ;;  %v488_v8 = vrot.slane %v486_v43, 5  ;;  %v7283_v32 = vld [vmem:[%s7131_s11 + $0x70] sm:$0xf]  ;;  %v7290_v6 = vld [vmem:[%s7131_s11 + $0x74] sm:$0x1] }
  0x3b   : > { %v5562_v58 = vcombine.low %v455_v46, %v465_v53  ;;  %6365 = vmatprep.mubr.msk.bf16.mxu1 %vm756_vm3, %v5595_v50  ;;  %v493_v59 = vrot.slane %v491_v52, 4  ;;  %v494_v61 = vshll.u32 %v284_v34, 16  ;;  %v500_v62 = vshll.u32 %v7253_v44, 16  ;;  %v290_v52 = vld [vmem:[%s7131_s11 + $0x78] sm:$0xf] }
  0x3c   : > { %v474_v63 = vrot.slane %v473_v55, 4  ;;  %v483_v1 = vor.u32 %v482_v56, %v478_v48  ;;  %v504_v2 = vshrl.u32 %v7253_v44, 16  ;;  %v510_v3 = vshll.u32 %v7260_v51, 16 }
  0x3d   : > { %6328 = vmatmul.mubr.msk.bf16.gmra.mxu0 %vm756_vm3, %v5562_v58  ;;  %v496_v10 = vrot.slane %v494_v61, 5  ;;  %v502_v13 = vrot.slane %v500_v62, 5  ;;  %v5596_v14 = vcombine.low %v284_v34, %v7253_v44  ;;  %v515_v7 = vshrl.u32 %v286_v57, 16  ;;  %v7303_v62 = vld [vmem:[%s7131_s11 + $0x7c] sm:$0xf] }
  0x3e   : > { %v479_v16 = vsel %vm7159_vm4, %v474_v63, %v478_v48  ;;  %v484_v17 = vrot.slane %v483_v1, 4  ;;  %v506_v18 = vrot.slane %v504_v2, 4  ;;  %v512_v23 = vrot.slane %v510_v3, 5 }
  0x3f   : > { %v497_v25 = vor.u32 %v496_v10, %v493_v59  ;;  %6366 = vmatmul.mubr.msk.bf16.gmra.mxu1 %vm756_vm3, %v5596_v14  ;;  %v517_v28 = vrot.slane %v515_v7, 4  ;;  %v518_v29 = vshll.u32 %v286_v57, 16  ;;  %v524_v30 = vshll.u32 %v7270_v5, 16  ;;  %v7306_v10 = vld [vmem:[%s7131_s11 + $0x80] sm:$0x1] }
  0x40   : > { %v489_v33 = vsel %vm7159_vm4, %v484_v17, %v488_v8  ;;  %v507_v34 = vor.u32 %v506_v18, %v502_v13  ;;  %v528_v35 = vshrl.u32 %v7270_v5, 16  ;;  %v534_v37 = vshll.u32 %v7275_v15, 16  ;;  %v292_v17 = vld [vmem:[%s7131_s11 + $0x84] sm:$0xf] }
  0x41   : > { %v5563_v38 = vcombine.low %v479_v16, %v489_v33  ;;  %v498_v39 = vrot.slane %v497_v25, 4  ;;  %v520_v41 = vrot.slane %v518_v29, 5  ;;  %v526_v42 = vrot.slane %v524_v30, 5 }
  0x42   : > { %v508_v43 = vrot.slane %v507_v34, 4  ;;  %v530_v46 = vrot.slane %v528_v35, 4  ;;  %v536_v48 = vrot.slane %v534_v37, 5  ;;  %v5597_v50 = vcombine.low %v286_v57, %v7270_v5  ;;  %v7317_v35 = vld [vmem:[%s7131_s11 + $0x88] sm:$0xf] }
  0x43   : > { %6331 = vmatprep.mubr.msk.bf16.mxu0 %vm756_vm3, %v5563_v38  ;;  %v503_v53 = vsel %vm7159_vm4, %v498_v39, %v502_v13  ;;  %v521_v55 = vor.u32 %v520_v41, %v517_v28  ;;  %v539_v56 = vshrl.u32 %v288_v24, 16  ;;  %v542_v8 = vshll.u32 %v288_v24, 16 }
  0x44   : > { %v513_v58 = vsel %vm7159_vm4, %v508_v43, %v512_v23  ;;  %v531_v59 = vor.u32 %v530_v46, %v526_v42  ;;  %6369 = vmatprep.mubr.msk.bf16.mxu1 %vm756_vm3, %v5597_v50  ;;  %v548_v61 = vshll.u32 %v7283_v32, 16  ;;  %v552_v57 = vshrl.u32 %v7283_v32, 16  ;;  %v294_v50 = vld [vmem:[%s7131_s11 + $0x90] sm:$0xf] }
  0x45   : > { %v5564_v63 = vcombine.low %v503_v53, %v513_v58  ;;  %v522_v1 = vrot.slane %v521_v55, 4  ;;  %v541_v2 = vrot.slane %v539_v56, 4  ;;  %v544_v3 = vrot.slane %v542_v8, 5 }
  0x46   : > { %v532_v13 = vrot.slane %v531_v59, 4  ;;  %v550_v14 = vrot.slane %v548_v61, 5  ;;  %v554_v7 = vrot.slane %v552_v57, 4  ;;  %v558_v16 = vshll.u32 %v7290_v6, 16 }
  0x47   : > { %6332 = vmatmul.mubr.msk.bf16.gmra.mxu0 %vm756_vm3, %v5564_v63  ;;  %v527_v18 = vsel %vm7159_vm4, %v522_v1, %v526_v42  ;;  %v545_v23 = vor.u32 %v544_v3, %v541_v2  ;;  %v5598_v25 = vcombine.low %v288_v24, %v7283_v32  ;;  %v563_v28 = vshrl.u32 %v290_v52, 16  ;;  %v7322_v42 = vld [vmem:[%s7131_s11 + $0x8c] sm:$0x1] }
  0x48   : > { %v537_v29 = vsel %vm7159_vm4, %v532_v13, %v536_v48  ;;  %v555_v30 = vor.u32 %v554_v7, %v550_v14  ;;  %v560_v33 = vrot.slane %v558_v16, 5  ;;  %v566_v34 = vshll.u32 %v290_v52, 16  ;;  %v7336_v13 = vld [vmem:[%s7131_s11 + $0x94] sm:$0xf] }
  0x49   : > { %v5565_v37 = vcombine.low %v527_v18, %v537_v29  ;;  %v546_v38 = vrot.slane %v545_v23, 4  ;;  %6370 = vmatmul.mubr.msk.bf16.gmra.mxu1 %vm756_vm3, %v5598_v25  ;;  %v565_v39 = vrot.slane %v563_v28, 4  ;;  %v572_v41 = vshll.u32 %v7303_v62, 16  ;;  %v7341_v18 = vld [vmem:[%s7131_s11 + $0x98] sm:$0x1] }
  0x4a   : > { %v556_v24 = vrot.slane %v555_v30, 4  ;;  %v568_v43 = vrot.slane %v566_v34, 5  ;;  %v576_v46 = vshrl.u32 %v7303_v62, 16  ;;  %v582_v48 = vshll.u32 %v7306_v10, 16 }
  0x4b   : > { %6335 = vmatprep.mubr.msk.bf16.mxu0 %vm756_vm3, %v5565_v37  ;;  %v551_v53 = vsel %vm7159_vm4, %v546_v38, %v550_v14  ;;  %v574_v55 = vrot.slane %v572_v41, 5  ;;  %v5599_v56 = vcombine.low %v290_v52, %v7303_v62  ;;  %v587_v8 = vshrl.u32 %v292_v17, 16  ;;  %v296_v38 = vld [vmem:[%s7131_s11 + $0x9c] sm:$0xf] }
  0x4c   : > { %v561_v58 = vsel %vm7159_vm4, %v556_v24, %v560_v33  ;;  %v569_v59 = vor.u32 %v568_v43, %v565_v39  ;;  %v578_v61 = vrot.slane %v576_v46, 4  ;;  %v584_v57 = vrot.slane %v582_v48, 5 }
  0x4d   : > { %v5566_v63 = vcombine.low %v551_v53, %v561_v58  ;;  %6373 = vmatprep.mubr.msk.bf16.mxu1 %vm756_vm3, %v5599_v56  ;;  %v589_v1 = vrot.slane %v587_v8, 4  ;;  %v590_v2 = vshll.u32 %v292_v17, 16  ;;  %v596_v3 = vshll.u32 %v7317_v35, 16 }
  0x4e   : > { %v570_v14 = vrot.slane %v569_v59, 4  ;;  %v579_v52 = vor.u32 %v578_v61, %v574_v55  ;;  %v600_v7 = vshrl.u32 %v7317_v35, 16  ;;  %v606_v16 = vshll.u32 %v7322_v42, 16  ;;  %v7358_v61 = vld [vmem:[%s7131_s11 + $0xa4] sm:$0x1] }
  0x4f   : > { %6336 = vmatmul.mubr.msk.bf16.gmra.mxu0 %vm756_vm3, %v5566_v63  ;;  %v592_v23 = vrot.slane %v590_v2, 5  ;;  %v598_v25 = vrot.slane %v596_v3, 5  ;;  %v5600_v28 = vcombine.low %v292_v17, %v7317_v35  ;;  %v611_v29 = vshrl.u32 %v294_v50, 16 }
  0x50   : > { %v575_v30 = vsel %vm7159_vm4, %v570_v14, %v574_v55  ;;  %v580_v33 = vrot.slane %v579_v52, 4  ;;  %v602_v34 = vrot.slane %v600_v7, 4  ;;  %v608_v37 = vrot.slane %v606_v16, 5  ;;  %v7355_v55 = vld [vmem:[%s7131_s11 + $0xa0] sm:$0xf] }
  0x51   : > { %v593_v39 = vor.u32 %v592_v23, %v589_v1  ;;  %6374 = vmatmul.mubr.msk.bf16.gmra.mxu1 %vm756_vm3, %v5600_v28  ;;  %v613_v41 = vrot.slane %v611_v29, 4  ;;  %v614_v24 = vshll.u32 %v294_v50, 16  ;;  %v620_v43 = vshll.u32 %v7336_v13, 16 }
  0x52   : > { %v585_v17 = vsel %vm7159_vm4, %v580_v33, %v584_v57  ;;  %v603_v46 = vor.u32 %v602_v34, %v598_v25  ;;  %v624_v48 = vshrl.u32 %v7336_v13, 16  ;;  %v630_v53 = vshll.u32 %v7341_v18, 16  ;;  %v298_v57 = vld [vmem:[%s7131_s11 + $0xa8] sm:$0xf] }
  0x53   : > { %v5567_v56 = vcombine.low %v575_v30, %v585_v17  ;;  %v594_v8 = vrot.slane %v593_v39, 4  ;;  %v616_v58 = vrot.slane %v614_v24, 5  ;;  %v622_v59 = vrot.slane %v620_v43, 5  ;;  %v7371_v30 = vld [vmem:[%s7131_s11 + $0xac] sm:$0xf] }
  0x54   : > { %v604_v63 = vrot.slane %v603_v46, 4  ;;  %v626_v1 = vrot.slane %v624_v48, 4  ;;  %v632_v2 = vrot.slane %v630_v53, 5  ;;  %v5601_v3 = vcombine.low %v294_v50, %v7336_v13  ;;  %v300_v46 = vld [vmem:[%s7131_s11 + $0xb4] sm:$0xf] }
  0x55   : > { %6339 = vmatprep.mubr.msk.bf16.mxu0 %vm756_vm3, %v5567_v56  ;;  %v599_v14 = vsel %vm7159_vm4, %v594_v8, %v598_v25  ;;  %v617_v52 = vor.u32 %v616_v58, %v613_v41  ;;  %v635_v7 = vshrl.u32 %v296_v38, 16  ;;  %v638_v16 = vshll.u32 %v296_v38, 16  ;;  %v7374_v41 = vld [vmem:[%s7131_s11 + $0xb0] sm:$0x1] }
  0x56   : > { %v609_v23 = vsel %vm7159_vm4, %v604_v63, %v608_v37  ;;  %v627_v28 = vor.u32 %v626_v1, %v622_v59  ;;  %6377 = vmatprep.mubr.msk.bf16.mxu1 %vm756_vm3, %v5601_v3  ;;  %v644_v29 = vshll.u32 %v7355_v55, 16  ;;  %v648_v50 = vshrl.u32 %v7355_v55, 16 }
  0x57   : > { %v5568_v33 = vcombine.low %v599_v14, %v609_v23  ;;  %v618_v34 = vrot.slane %v617_v52, 4  ;;  %v637_v39 = vrot.slane %v635_v7, 4  ;;  %v640_v25 = vrot.slane %v638_v16, 5  ;;  %v7385_v14 = vld [vmem:[%s7131_s11 + $0xb8] sm:$0xf] }
  0x58   : > { %v628_v37 = vrot.slane %v627_v28, 4  ;;  %v646_v24 = vrot.slane %v644_v29, 5  ;;  %v650_v43 = vrot.slane %v648_v50, 4  ;;  %v654_v17 = vshll.u32 %v7358_v61, 16  ;;  %v7390_v23 = vld [vmem:[%s7131_s11 + $0xbc] sm:$0x1] }
  0x59   : > { %6340 = vmatmul.mubr.msk.bf16.gmra.mxu0 %vm756_vm3, %v5568_v33  ;;  %v623_v48 = vsel %vm7159_vm4, %v618_v34, %v622_v59  ;;  %v641_v53 = vor.u32 %v640_v25, %v637_v39  ;;  %v5602_v56 = vcombine.low %v296_v38, %v7355_v55  ;;  %v659_v8 = vshrl.u32 %v298_v57, 16  ;;  %v1262_v50 = vld [vmem:[%s7131_s11] sm:$0xe] }
  0x5a   : > { %v633_v58 = vsel %vm7159_vm4, %v628_v37, %v632_v2  ;;  %v651_v63 = vor.u32 %v650_v43, %v646_v24  ;;  %v656_v1 = vrot.slane %v654_v17, 5  ;;  %v662_v3 = vshll.u32 %v298_v57, 16 }
  0x5b   : > { %v5569_v52 = vcombine.low %v623_v48, %v633_v58  ;;  %v642_v7 = vrot.slane %v641_v53, 4  ;;  %6378 = vmatmul.mubr.msk.bf16.gmra.mxu1 %vm756_vm3, %v5602_v56  ;;  %v661_v16 = vrot.slane %v659_v8, 4  ;;  %v668_v59 = vshll.u32 %v7371_v30, 16  ;;  %v7404_v53 = vld [vmem:[%s9533_s1 + $0xa] sm:$0x3] }
  0x5c   : > { %v652_v38 = vrot.slane %v651_v63, 4  ;;  %v664_v28 = vrot.slane %v662_v3, 5  ;;  %v672_v29 = vshrl.u32 %v7371_v30, 16  ;;  %v678_v2 = vshll.u32 %v7374_v41, 16  ;;  %6676 = vmatprep.subr.msk.bf16.mxu1 %vm805_vm0, %v7404_v53 }
  0x5d   : > { %6343 = vmatprep.mubr.msk.bf16.mxu0 %vm756_vm3, %v5569_v52  ;;  %v647_v33 = vsel %vm7159_vm4, %v642_v7, %v646_v24  ;;  %v670_v34 = vrot.slane %v668_v59, 5  ;;  %v5603_v39 = vcombine.low %v298_v57, %v7371_v30  ;;  %v683_v25 = vshrl.u32 %v300_v46, 16  ;;  %v1263_v52 = vld [vmem:[%s7131_s11 + $0xc] sm:$0xe] }
  0x5e   : > { %v657_v37 = vsel %vm7159_vm4, %v652_v38, %v656_v1  ;;  %v665_v43 = vor.u32 %v664_v28, %v661_v16  ;;  %v674_v17 = vrot.slane %v672_v29, 4  ;;  %v680_v48 = vrot.slane %v678_v2, 5  ;;  %v6755_v7 = vld [vmem:[%s7131_s11 + $0xc] sm:$0xff]   ;;  %v1264_v29 = vld [vmem:[%s7131_s11 + $0x18] sm:$0xe] }
  0x5f   : > { %v5570_v56 = vcombine.low %v647_v33, %v657_v37  ;;  %6381 = vmatprep.mubr.msk.bf16.mxu1 %vm756_vm3, %v5603_v39  ;;  %v685_v24 = vrot.slane %v683_v25, 4  ;;  %v686_v57 = vshll.u32 %v300_v46, 16  ;;  %v692_v8 = vshll.u32 %v7385_v14, 16  ;;  %v6791_v37 = vld [vmem:[%s9535_s3 + $0x18] sm:$0xff]  }
  0x60   : > { %v666_v58 = vrot.slane %v665_v43, 4  ;;  %v675_v63 = vor.u32 %v674_v17, %v670_v34  ;;  %v696_v1 = vshrl.u32 %v7385_v14, 16  ;;  %v702_v3 = vshll.u32 %v7390_v23, 16 }
  0x61   : > { %6344 = vmatmul.mubr.msk.bf16.gmra.mxu0 %vm756_vm3, %v5570_v56  ;;  %v688_v16 = vrot.slane %v686_v57, 5  ;;  %v694_v59 = vrot.slane %v692_v8, 5  ;;  %v5604_v38 = vcombine.low %v300_v46, %v7385_v14  ;;  %v5621_v28 = vrot.slane %v1262_v50, 9 }
  0x62   : > { %v671_v2 = vsel %vm7159_vm4, %v666_v58, %v670_v34  ;;  %v676_v33 = vrot.slane %v675_v63, 4  ;;  %v698_v39 = vrot.slane %v696_v1, 4  ;;  %v704_v25 = vrot.slane %v702_v3, 5  ;;  %v1265_v1 = vld [vmem:[%s7131_s11 + $0x24] sm:$0xe] }
  0x63   : > { %v689_v43 = vor.u32 %v688_v16, %v685_v24  ;;  %6382 = vmatmul.mubr.msk.bf16.gmra.mxu1 %vm756_vm3, %v5604_v38  ;;  %v1315_v46 = vrot.slane %v7135_v11, 5  ;;  %v5622_v50 = vrot.slane %v1263_v52, 9  ;;  %v1324_v34 = vrot.slane %v1322_v40, 4  ;;  %v1267_v38 = vld [vmem:[%s7131_s11 + $0x3c] sm:$0xe] }
  0x64   : > { %v681_v17 = vsel %vm7159_vm4, %v676_v33, %v680_v48  ;;  %v699_v56 = vor.u32 %v698_v39, %v694_v59  ;;  %6421 = vmatprep.mubr.msk.bf16.mxu1 %vm756_vm3, %v6755_v7  ;;  %v5623_v57 = vrot.slane %v1264_v29, 9  ;;  %v1329_v8 = vrot.slane %v7165_v45, 5  ;;  %v1266_v7 = vld [vmem:[%s7131_s11 + $0x30] sm:$0xe]  ;;  %v6757_v39 = vld [vmem:[%s7131_s11 + $0x24] sm:$0xff]  }
  0x65   : > { %v5571_v24 = vcombine.low %v671_v2, %v681_v17  ;;  %v690_v58 = vrot.slane %v689_v43, 4  ;;  %v1316_v11 = vsel %vm7421_vm7, %v5621_v28, %v1315_v46  ;;  %v1317_v63 = vrot.slane %v1315_v46, 4  ;;  %v1268_v46 = vld [vmem:[%s7131_s11 + $0x48] sm:$0xe] }
  0x66   : > { %v700_v3 = vrot.slane %v699_v56, 4  ;;  %v7440_v48 = vsel %vm7421_vm7, %v5622_v50, %v1322_v40  ;;  %v7446_v45 = vsel %vm7421_vm7, %v1324_v34, %v1325_v47  ;;  %v7450_v52 = vsel %vm7421_vm7, %v5623_v57, %v1329_v8  ;;  %v6756_v47 = vld [vmem:[%s7131_s11 + $0x18] sm:$0xff]   ;;  %v1269_v57 = vld [vmem:[%s7131_s11 + $0x54] sm:$0xe] }
  0x67   : > { %6347 = vmatprep.mubr.msk.bf16.mxu0 %vm756_vm3, %v5571_v24  ;;  %v695_v21 = vsel %vm7159_vm4, %v690_v58, %v694_v59  ;;  %v1319_v22 = vsel %vm7421_vm7, %v1317_v63, %v1318_v19  ;;  %v5639_v40 = vcombine.low %v7440_v48, %v7446_v45  ;;  %v1331_v16 = vrot.slane %v1329_v8, 4 }
  0x68   : > { %v705_v28 = vsel %vm7159_vm4, %v700_v3, %v704_v25  ;;  %v5638_v29 = vcombine.low %v1316_v11, %v1319_v22  ;;  %v1332_v2 = vrot.slane %v7170_v49, 5  ;;  %v5624_v33 = vrot.slane %v1265_v1, 9  ;;  %v1270_v1 = vld [vmem:[%s7131_s11 + $0x60] sm:$0xe] }
  0x69   : > { %v5572_v59 = vcombine.low %v695_v21, %v705_v28  ;;  %v1336_v12 = vrot.slane %v7182_v0, 5  ;;  %v1339_v19 = vrot.slane %v7189_v4, 5  ;;  %v5625_v43 = vrot.slane %v1266_v7, 9  ;;  %v6758_v7 = vld [vmem:[%s7131_s11 + $0x30] sm:$0xff]  }
  0x6a   : > { %v1333_v50 = vsel %vm7421_vm7, %v1331_v16, %v1332_v2  ;;  %v1343_v34 = vrot.slane %v7199_v27, 5  ;;  %v1346_v25 = vrot.slane %v7204_v31, 5  ;;  %v5626_v17 = vrot.slane %v1267_v38, 9  ;;  %v6759_v2 = vld [vmem:[%s7131_s11 + $0x3c] sm:$0xff]  }
  0x6b   : > { %6348 = vmatmul.mubr.msk.bf16.gmra.mxu0 %vm756_vm3, %v5572_v59  ;;  %6422 = vmatmul.mubr.msk.bf16.vlgmr.msra.gmra.mxu1 %vm756_vm3, %v6756_v47  ;;  %v5640_v49 = vcombine.low %v7450_v52, %v1333_v50  ;;  %v7480_v0 = vsel %vm7421_vm7, %v5624_v33, %v1336_v12  ;;  %v1338_v4 = vrot.slane %v1336_v12, 4  ;;  %v1350_v56 = vrot.slane %v7219_v54, 5  ;;  %v1271_v52 = vld [vmem:[%s7131_s11 + $0x6c] sm:$0xe] }
  0x6c   : > { %6387 = vmatprep.mubr.msk.bf16.mxu0 %vm756_vm3, %v5638_v29  ;;  %6425 = vmatprep.mubr.msk.bf16.mxu1 %vm756_vm3, %v6757_v39  ;;  %v7488_v27 = vsel %vm7421_vm7, %v5625_v43, %v1343_v34  ;;  %v1345_v31 = vrot.slane %v1343_v34, 4  ;;  %v1353_v8 = vrot.slane %v7226_v60, 5  ;;  %v5627_v24 = vrot.slane %v1268_v46, 9  ;;  %v1272_v29 = vld [vmem:[%s7131_s11 + $0x78] sm:$0xe] }
  0x6d   : > { %v7493_v58 = vsel %vm7421_vm7, %v1338_v4, %v1339_v19  ;;  %v7497_v54 = vsel %vm7421_vm7, %v5626_v17, %v1350_v56  ;;  %v1352_v11 = vrot.slane %v1350_v56, 4  ;;  %v1357_v63 = vrot.slane %v7236_v20, 5  ;;  %v1273_v46 = vld [vmem:[%s7131_s11 + $0x84] sm:$0xe]  ;;  %v7543_v50 = vld [vmem:[%s9533_s1 + $0xc] sm:$0x3] }
  0x6e   : > { %v5641_v3 = vcombine.low %v7480_v0, %v7493_v58  ;;  %v7505_v60 = vsel %vm7421_vm7, %v1345_v31, %v1346_v25  ;;  %v1360_v48 = vrot.slane %v7243_v26, 5  ;;  %v5628_v45 = vrot.slane %v1269_v57, 9  ;;  %v1274_v56 = vld [vmem:[%s7131_s11 + $0x90] sm:$0xe]  ;;  %v1275_v31 = vld [vmem:[%s7131_s11 + $0x9c] sm:$0xe] }
  0x6f   : > { %v5642_v21 = vcombine.low %v7488_v27, %v7505_v60  ;;  %v7514_v20 = vsel %vm7421_vm7, %v1352_v11, %v1353_v8  ;;  %v7518_v22 = vsel %vm7421_vm7, %v5627_v24, %v1357_v63  ;;  %v1359_v47 = vrot.slane %v1357_v63, 4  ;;  %v6760_v63 = vld [vmem:[%s7131_s11 + $0x48] sm:$0xff]  }
  0x70   : > { %v5643_v16 = vcombine.low %v7497_v54, %v7514_v20  ;;  %v1364_v26 = vrot.slane %v7253_v44, 5  ;;  %v1367_v38 = vrot.slane %v7260_v51, 5  ;;  %v5629_v28 = vrot.slane %v1270_v1, 9 }
  0x71   : > { %v7528_v33 = vsel %vm7421_vm7, %v1359_v47, %v1360_v48  ;;  %v1371_v39 = vrot.slane %v7270_v5, 5  ;;  %v1374_v59 = vrot.slane %v7275_v15, 5  ;;  %v5630_v12 = vrot.slane %v1271_v52, 9  ;;  %v1276_v52 = vld [vmem:[%s7131_s11 + $0xa8] sm:$0xe] }
  0x72   : > { %v5644_v19 = vcombine.low %v7518_v22, %v7528_v33  ;;  %v7536_v44 = vsel %vm7421_vm7, %v5628_v45, %v1364_v26  ;;  %v1366_v51 = vrot.slane %v1364_v26, 4  ;;  %v1378_v43 = vrot.slane %v7283_v32, 5  ;;  %v5817_v22 = vld [vmem:[%s7131_s11 + $0x18] sm:$0xe] }
  0x73   : > { %6388 = vmatmul.mubr.msk.bf16.vlgmr.msra.gmra.mxu0 %vm756_vm3, %v5639_v40  ;;  %6426 = vmatmul.mubr.msk.bf16.gmra.mxu1 %vm756_vm3, %v6758_v7  ;;  %v7549_v5 = vsel %vm7421_vm7, %v5629_v28, %v1371_v39  ;;  %v1373_v15 = vrot.slane %v1371_v39, 4  ;;  %v1381_v34 = vrot.slane %v7290_v6, 5  ;;  %v5631_v25 = vrot.slane %v1272_v29, 9  ;;  %v6761_v7 = vld [vmem:[%s7131_s11 + $0x54] sm:$0xff]  }
  0x74   : > { %6454 = vmatpush3.bf16.msra.mxu0 %v7126_v9  ;;  %6391 = vmatprep.mubr.msk.bf16.mxu0 %vm756_vm3, %v5640_v49  ;;  %v7556_v32 = vsel %vm7421_vm7, %v1366_v51, %v1367_v38  ;;  %v7560_v40 = vsel %vm7421_vm7, %v5630_v12, %v1378_v43  ;;  %v1380_v17 = vrot.slane %v1378_v43, 4  ;;  %v1385_v4 = vrot.slane %v7303_v62, 5  ;;  %v1277_v39 = vld [vmem:[%s7131_s11 + $0xb4] sm:$0xe] }
  0x75   : > { %6429 = vmatprep.mubr.msk.bf16.mxu1 %vm756_vm3, %v6759_v2  ;;  %v5645_v9 = vcombine.low %v7536_v44, %v7556_v32  ;;  %v7569_v6 = vsel %vm7421_vm7, %v1373_v15, %v1374_v59  ;;  %v1388_v49 = vrot.slane %v7306_v10, 5  ;;  %v5632_v57 = vrot.slane %v1273_v46, 9  ;;  %6677 = vmatprep.subr.msk.bf16.mxu0 %vm805_vm0, %v7543_v50  ;;  %v7639_v15 = vld [vmem:[%s7131_s11 + $0x10] sm:$0xf] }
  0x76   : > { %v5646_v62 = vcombine.low %v7549_v5, %v7569_v6  ;;  %v7579_v8 = vsel %vm7421_vm7, %v1380_v17, %v1381_v34  ;;  %v7583_v24 = vsel %vm7421_vm7, %v5631_v25, %v1385_v4  ;;  %v1387_v11 = vrot.slane %v1385_v4, 4  ;;  %v7654_v4 = vld [vmem:[%s7131_s11 + $0x14] sm:$0x1] }
  0x77   : > { %v5647_v10 = vcombine.low %v7560_v40, %v7579_v8  ;;  %v1392_v1 = vrot.slane %v7317_v35, 5  ;;  %v1395_v48 = vrot.slane %v7322_v42, 5  ;;  %v5633_v45 = vrot.slane %v1274_v56, 9  ;;  %v6762_v56 = vld [vmem:[%s7131_s11 + $0x60] sm:$0xff]  }
  0x78   : > { %v7594_v47 = vsel %vm7421_vm7, %v1387_v11, %v1388_v49  ;;  %v1399_v26 = vrot.slane %v7336_v13, 5  ;;  %v1402_v38 = vrot.slane %v7341_v18, 5  ;;  %v5634_v28 = vrot.slane %v1275_v31, 9 }
  0x79   : > { %v5648_v29 = vcombine.low %v7583_v24, %v7594_v47  ;;  %v7602_v35 = vsel %vm7421_vm7, %v5632_v57, %v1392_v1  ;;  %v1394_v42 = vrot.slane %v1392_v1, 4  ;;  %v1406_v2 = vrot.slane %v7355_v55, 5 }
  0x7a   : > { %v7608_v59 = vsel %vm7421_vm7, %v5633_v45, %v1399_v26  ;;  %v1401_v13 = vrot.slane %v1399_v26, 4  ;;  %v1409_v18 = vrot.slane %v7358_v61, 5  ;;  %v5635_v12 = vrot.slane %v1276_v52, 9  ;;  %v7674_v45 = vld [vmem:[%s7131_s11 + $0x1c] sm:$0xf] }
  0x7b   : > { %6392 = vmatmul.mubr.msk.bf16.gmra.mxu0 %vm756_vm3, %v5641_v3  ;;  %6430 = vmatmul.mubr.msk.bf16.gmra.mxu1 %vm756_vm3, %v6760_v63  ;;  %v7618_v55 = vsel %vm7421_vm7, %v1394_v42, %v1395_v48  ;;  %v7622_v51 = vsel %vm7421_vm7, %v5634_v28, %v1406_v2  ;;  %v1408_v43 = vrot.slane %v1406_v2, 4  ;;  %v1413_v46 = vrot.slane %v7371_v30, 5  ;;  %v5735_v30 = vld [vmem:[%s7131_s11 + $0xc] sm:$0xf]  ;;  %v7682_v2 = vld [vmem:[%s7131_s11 + $0x20] sm:$0x1] }
  0x7c   : > { %6395 = vmatprep.mubr.msk.bf16.mxu0 %vm756_vm3, %v5642_v21  ;;  %6433 = vmatprep.mubr.msk.bf16.mxu1 %vm756_vm3, %v6761_v7  ;;  %v5649_v61 = vcombine.low %v7602_v35, %v7618_v55  ;;  %v7634_v0 = vsel %vm7421_vm7, %v1401_v13, %v1402_v38  ;;  %v1416_v58 = vrot.slane %v7374_v41, 5  ;;  %v5636_v3 = vrot.slane %v1277_v39, 9  ;;  %v6763_v63 = vld [vmem:[%s7131_s11 + $0x6c] sm:$0xff]  }
  0x7d   : > { %v5650_v27 = vcombine.low %v7608_v59, %v7634_v0  ;;  %v7645_v60 = vsel %vm7421_vm7, %v1408_v43, %v1409_v18  ;;  %v1415_v21 = vrot.slane %v1413_v46, 4  ;;  %v1420_v25 = vrot.slane %v7385_v14, 5  ;;  %v5738_v14 = vld [vmem:[%s7131_s11 + $0x18] sm:$0xf] }
  0x7e   : > { %v5651_v34 = vcombine.low %v7622_v51, %v7645_v60  ;;  %v1423_v41 = vrot.slane %v7390_v23, 5  ;;  %v3082_v17 = vsel %vm805_vm0, %v7404_v53, 0  ;;  %v7659_v49 = vsel %vm7421_vm7, %v5635_v12, %v1413_v46 }
  0x7f   : > { %6488 = vmatpush3.bf16.msra.mxu1 %v3082_v17  ;;  %v2130_v57 = vshrl.u32 %v5735_v30, 16  ;;  %v2133_v31 = vshll.u32 %v5735_v30, 16  ;;  %v2139_v11 = vshll.u32 %v7639_v15, 16  ;;  %v7666_v23 = vsel %vm7421_vm7, %v1415_v21, %v1416_v58  ;;  %v5816_v58 = vld [vmem:[%s7131_s11 + $0xc] sm:$0xe] }
  0x80   : > { %v7670_v53 = vsel %vm7421_vm7, %v5636_v3, %v1420_v25  ;;  %v1422_v1 = vrot.slane %v1420_v25, 4  ;;  %v2143_v48 = vshrl.u32 %v7639_v15, 16  ;;  %v2149_v38 = vshll.u32 %v7654_v4, 16 }
  0x81   : > { %v2132_v52 = vrot.slane %v2130_v57, 4  ;;  %v2135_v7 = vrot.slane %v2133_v31, 5  ;;  %v2141_v26 = vrot.slane %v2139_v11, 5  ;;  %v2154_v39 = vshrl.u32 %v5738_v14, 16  ;;  %v6764_v57 = vld [vmem:[%s7131_s11 + $0x78] sm:$0xff]  }
  0x82   : > { %v7679_v28 = vsel %vm7421_vm7, %v1422_v1, %v1423_v41  ;;  %v2145_v42 = vrot.slane %v2143_v48, 4  ;;  %v2157_v13 = vshll.u32 %v5738_v14, 16  ;;  %v2151_v43 = vrot.slane %v2149_v38, 5  ;;  %v5741_v1 = vld [vmem:[%s7131_s11 + $0x24] sm:$0xf] }
  0x83   : > { %6396 = vmatmul.mubr.msk.bf16.gmra.mxu0 %vm756_vm3, %v5643_v16  ;;  %6434 = vmatmul.mubr.msk.bf16.gmra.mxu1 %vm756_vm3, %v6762_v56  ;;  %v5653_v18 = vcombine.low %v7670_v53, %v7679_v28  ;;  %v2136_v12 = vor.u32 %v2135_v7, %v2132_v52  ;;  %v2163_v46 = vshll.u32 %v7674_v45, 16  ;;  %v2156_v20 = vrot.slane %v2154_v39, 4  ;;  %v6765_v48 = vld [vmem:[%s7131_s11 + $0x84] sm:$0xff]  }
  0x84   : > { %6399 = vmatprep.mubr.msk.bf16.mxu0 %vm756_vm3, %v5644_v19  ;;  %6437 = vmatprep.mubr.msk.bf16.mxu1 %vm756_vm3, %v6763_v63  ;;  %v2146_v54 = vor.u32 %v2145_v42, %v2141_v26  ;;  %v2159_v16 = vrot.slane %v2157_v13, 5  ;;  %v2167_v3 = vshrl.u32 %v7674_v45, 16  ;;  %v5652_v30 = vcombine.low %v7659_v49, %v7666_v23  ;;  %v7713_v39 = vld [vmem:[%s7131_s11 + $0x28] sm:$0xf] }
  0x85   : > { %v2137_v21 = vrot.slane %v2136_v12, 4  ;;  %v2165_v25 = vrot.slane %v2163_v46, 5  ;;  %v2173_v41 = vshll.u32 %v7682_v2, 16  ;;  %v5832_v56 = vrot.slane %v5816_v58, 9  ;;  %v7725_v12 = vld [vmem:[%s7131_s11 + $0x2c] sm:$0x1] }
  0x86   : > { %v2147_v33 = vrot.slane %v2146_v54, 4  ;;  %v2160_v19 = vor.u32 %v2159_v16, %v2156_v20  ;;  %v2169_v17 = vrot.slane %v2167_v3, 4  ;;  %v2873_v14 = vrot.slane %v7639_v15, 5  ;;  %v5744_v46 = vld [vmem:[%s7131_s11 + $0x30] sm:$0xf] }
  0x87   : > { %v2142_v31 = vsel %vm7159_vm4, %v2137_v21, %v2141_v26  ;;  %v2175_v11 = vrot.slane %v2173_v41, 5  ;;  %v2876_v63 = vrot.slane %v7654_v4, 5  ;;  %v5833_v42 = vrot.slane %v5817_v22, 9  ;;  %v7763_v41 = vld [vmem:[%s7131_s11 + $0x38] sm:$0x1] }
  0x88   : > { %v2152_v52 = vsel %vm7159_vm4, %v2147_v33, %v2151_v43  ;;  %v2161_v7 = vrot.slane %v2160_v19, 4  ;;  %v2170_v38 = vor.u32 %v2169_v17, %v2165_v25  ;;  %v7717_v26 = vsel %vm805_vm0, %v7543_v50, 0  ;;  %v7732_v50 = vld [vmem:[%s7131_s11 + $0x34] sm:$0xf] }
  0x89   : > { %v7721_v15 = vsel %vm7421_vm7, %v5832_v56, %v2873_v14  ;;  %v2875_v4 = vrot.slane %v2873_v14, 4  ;;  %v2880_v13 = vrot.slane %v7674_v45, 5  ;;  %v2883_v54 = vrot.slane %v7682_v2, 5  ;;  %v7748_v2 = vld [vmem:[%s9533_s1 + $0xe] sm:$0x3] }
  0x8a   : > { %v2166_v43 = vsel %vm7159_vm4, %v2161_v7, %v2165_v25  ;;  %v2171_v58 = vrot.slane %v2170_v38, 4  ;;  %v2178_v20 = vshrl.u32 %v5741_v1, 16  ;;  %v7739_v45 = vcombine.low %v2142_v31, %v2152_v52  ;;  %6678 = vmatprep.subr.msk.bf16.mxu1 %vm805_vm0, %v7748_v2 }
  0x8b   : > { %6400 = vmatmul.mubr.msk.bf16.gmra.mxu0 %vm756_vm3, %v5645_v9  ;;  %6438 = vmatmul.mubr.msk.bf16.gmra.mxu1 %vm756_vm3, %v6764_v57  ;;  %v7743_v16 = vsel %vm7421_vm7, %v2875_v4, %v2876_v63  ;;  %v2882_v3 = vrot.slane %v2880_v13, 4  ;;  %v2181_v21 = vshll.u32 %v5741_v1, 16  ;;  %v7759_v32 = vsel %vm7421_vm7, %v5833_v42, %v2880_v13  ;;  %v6766_v57 = vld [vmem:[%s7131_s11 + $0x90] sm:$0xff]   ;;  %v5818_v1 = vld [vmem:[%s7131_s11 + $0x24] sm:$0xe] }
  0x8c   : > { %6403 = vmatprep.mubr.msk.bf16.mxu0 %vm756_vm3, %v5646_v62  ;;  %6441 = vmatprep.mubr.msk.bf16.mxu1 %vm756_vm3, %v6765_v48  ;;  %v2176_v44 = vsel %vm7159_vm4, %v2171_v58, %v2175_v11  ;;  %v2180_v9 = vrot.slane %v2178_v20, 4  ;;  %v2187_v25 = vshll.u32 %v7713_v39, 16  ;;  %v5849_v6 = vcombine.low %v7721_v15, %v7743_v16  ;;  %v6767_v48 = vld [vmem:[%s7131_s11 + $0x9c] sm:$0xff]   ;;  %v7925_v15 = vld [vmem:[%s7131_s11 + $0x68] sm:$0x1] }
  0x8d   : > { %v7765_v5 = vcombine.low %v2166_v43, %v2176_v44  ;;  %v2183_v62 = vrot.slane %v2181_v21, 5  ;;  %v2191_v22 = vshrl.u32 %v7713_v39, 16  ;;  %v7774_v33 = vsel %vm7421_vm7, %v2882_v3, %v2883_v54  ;;  %v5819_v54 = vld [vmem:[%s7131_s11 + $0x30] sm:$0xe]  ;;  %v5747_v44 = vld [vmem:[%s7131_s11 + $0x3c] sm:$0xf] }
  0x8e   : > { %v2189_v19 = vrot.slane %v2187_v25, 5  ;;  %v2197_v17 = vshll.u32 %v7725_v12, 16  ;;  %v2202_v56 = vshrl.u32 %v5744_v46, 16  ;;  %v2205_v14 = vshll.u32 %v5744_v46, 16 }
  0x8f   : > { %v2184_v31 = vor.u32 %v2183_v62, %v2180_v9  ;;  %v2193_v11 = vrot.slane %v2191_v22, 4  ;;  %v2211_v63 = vshll.u32 %v7732_v50, 16  ;;  %v2215_v38 = vshrl.u32 %v7732_v50, 16 }
  0x90   : > { %v2199_v52 = vrot.slane %v2197_v17, 5  ;;  %v2204_v7 = vrot.slane %v2202_v56, 4  ;;  %v2221_v42 = vshll.u32 %v7763_v41, 16  ;;  %v2207_v43 = vrot.slane %v2205_v14, 5  ;;  %v7795_v17 = vld [vmem:[%s7131_s11 + $0x40] sm:$0xf] }
  0x91   : > { %v2185_v4 = vrot.slane %v2184_v31, 4  ;;  %v2194_v13 = vor.u32 %v2193_v11, %v2189_v19  ;;  %v2213_v58 = vrot.slane %v2211_v63, 5  ;;  %v5850_v46 = vcombine.low %v7759_v32, %v7774_v33  ;;  %v7817_v31 = vld [vmem:[%s7131_s11 + $0x44] sm:$0x1]  ;;  %v6768_v14 = vld [vmem:[%s7131_s11 + $0xa8] sm:$0xff]  }
  0x92   : > { %v2217_v20 = vrot.slane %v2215_v38, 4  ;;  %v5834_v3 = vrot.slane %v5818_v1, 9  ;;  %v2887_v21 = vrot.slane %v7713_v39, 5  ;;  %v2208_v25 = vor.u32 %v2207_v43, %v2204_v7  ;;  %v7828_v7 = vld [vmem:[%s7131_s11 + $0x4c] sm:$0xf]  ;;  %v6769_v38 = vld [vmem:[%s7131_s11 + $0xb4] sm:$0xff]  }
  0x93   : > { %6404 = vmatmul.mubr.msk.bf16.gmra.mxu0 %vm756_vm3, %v5647_v10  ;;  %6442 = vmatmul.mubr.msk.bf16.gmra.mxu1 %vm756_vm3, %v6766_v57  ;;  %v2195_v9 = vrot.slane %v2194_v13, 4  ;;  %v2223_v62 = vrot.slane %v2221_v42, 5  ;;  %v2890_v22 = vrot.slane %v7725_v12, 5  ;;  %v2190_v40 = vsel %vm7159_vm4, %v2185_v4, %v2189_v19  ;;  %v7835_v43 = vld [vmem:[%s7131_s11 + $0x50] sm:$0x1] }
  0x94   : > { %6407 = vmatprep.mubr.msk.bf16.mxu0 %vm756_vm3, %v5648_v29  ;;  %6445 = vmatprep.mubr.msk.bf16.mxu1 %vm756_vm3, %v6767_v48  ;;  %v2218_v8 = vor.u32 %v2217_v20, %v2213_v58  ;;  %v7806_v10 = vsel %vm7421_vm7, %v5834_v3, %v2887_v21  ;;  %v2889_v39 = vrot.slane %v2887_v21, 4  ;;  %v2209_v24 = vrot.slane %v2208_v25, 4  ;;  %v5820_v21 = vld [vmem:[%s7131_s11 + $0x3c] sm:$0xe]  ;;  %v7962_v33 = vld [vmem:[%s7131_s11 + $0x70] sm:$0xf] }
  0x95   : > { %v2200_v12 = vsel %vm7159_vm4, %v2195_v9, %v2199_v52  ;;  %v5835_v47 = vrot.slane %v5819_v54, 9  ;;  %v2894_v29 = vrot.slane %v7732_v50, 5  ;;  %v2897_v57 = vrot.slane %v7763_v41, 5  ;;  %v5750_v52 = vld [vmem:[%s7131_s11 + $0x48] sm:$0xf] }
  0x96   : > { %v2219_v56 = vrot.slane %v2218_v8, 4  ;;  %v7813_v19 = vsel %vm7421_vm7, %v2889_v39, %v2890_v22  ;;  %v2226_v11 = vshrl.u32 %v5747_v44, 16  ;;  %v7820_v63 = vcombine.low %v2190_v40, %v2200_v12  ;;  %v5821_v22 = vld [vmem:[%s7131_s11 + $0x48] sm:$0xe] }
  0x97   : > { %v2214_v1 = vsel %vm7159_vm4, %v2209_v24, %v2213_v58  ;;  %v5851_v50 = vcombine.low %v7806_v10, %v7813_v19  ;;  %v2896_v48 = vrot.slane %v2894_v29, 4  ;;  %v2229_v4 = vshll.u32 %v5747_v44, 16 }
  0x98   : > { %v2224_v41 = vsel %vm7159_vm4, %v2219_v56, %v2223_v62  ;;  %v2228_v42 = vrot.slane %v2226_v11, 4  ;;  %v2235_v13 = vshll.u32 %v7795_v17, 16  ;;  %v7841_v58 = vsel %vm7421_vm7, %v5835_v47, %v2894_v29 }
  0x99   : > { %v7837_v54 = vcombine.low %v2214_v1, %v2224_v41  ;;  %v2239_v20 = vshrl.u32 %v7795_v17, 16  ;;  %v2245_v3 = vshll.u32 %v7817_v31, 16  ;;  %v7848_v9 = vsel %vm7421_vm7, %v2896_v48, %v2897_v57  ;;  %v5753_v41 = vld [vmem:[%s7131_s11 + $0x54] sm:$0xf] }
  0x9a   : > { %v2231_v44 = vrot.slane %v2229_v4, 5  ;;  %v2237_v25 = vrot.slane %v2235_v13, 5  ;;  %v2250_v62 = vshrl.u32 %v5750_v52, 16  ;;  %v2253_v39 = vshll.u32 %v5750_v52, 16 }
  0x9b   : > { %6408 = vmatmul.mubr.msk.bf16.gmra.mxu0 %vm756_vm3, %v5649_v61  ;;  %6446 = vmatmul.mubr.msk.bf16.gmra.mxu1 %vm756_vm3, %v6768_v14  ;;  %v2241_v40 = vrot.slane %v2239_v20, 4  ;;  %v2247_v8 = vrot.slane %v2245_v3, 5  ;;  %v2259_v12 = vshll.u32 %v7828_v7, 16  ;;  %v2263_v35 = vshrl.u32 %v7828_v7, 16  ;;  %v7875_v3 = vld [vmem:[%s7131_s11 + $0x58] sm:$0xf] }
  0x9c   : > { %6411 = vmatprep.mubr.msk.bf16.mxu0 %vm756_vm3, %v5650_v27  ;;  %6449 = vmatprep.mubr.msk.bf16.mxu1 %vm756_vm3, %v6769_v38  ;;  %v2232_v24 = vor.u32 %v2231_v44, %v2228_v42  ;;  %v2252_v47 = vrot.slane %v2250_v62, 4  ;;  %v2269_v55 = vshll.u32 %v7835_v43, 16  ;;  %v2255_v29 = vrot.slane %v2253_v39, 5  ;;  %v6770_v27 = vld [vmem:[%s7131_s11 + $0xc0] sm:$0xff]  }
  0x9d   : > { %v2242_v61 = vor.u32 %v2241_v40, %v2237_v25  ;;  %v2261_v56 = vrot.slane %v2259_v12, 5  ;;  %v5836_v57 = vrot.slane %v5820_v21, 9  ;;  %v2265_v14 = vrot.slane %v2263_v35, 4  ;;  %v7914_v35 = vld [vmem:[%s7131_s11 + $0x64] sm:$0xf] }
  0x9e   : > { %v2233_v11 = vrot.slane %v2232_v24, 4  ;;  %v2271_v59 = vrot.slane %v2269_v55, 5  ;;  %v2901_v0 = vrot.slane %v7795_v17, 5  ;;  %v2256_v48 = vor.u32 %v2255_v29, %v2252_v47  ;;  %v7878_v17 = vld [vmem:[%s7131_s11 + $0x5c] sm:$0x1] }
  0x9f   : > { %v2243_v1 = vrot.slane %v2242_v61, 4  ;;  %v2904_v52 = vrot.slane %v7817_v31, 5  ;;  %v5837_v38 = vrot.slane %v5821_v22, 9  ;;  %v2266_v4 = vor.u32 %v2265_v14, %v2261_v56  ;;  %v5756_v22 = vld [vmem:[%s7131_s11 + $0x60] sm:$0xf] }
  0xa0   : > { %v2238_v42 = vsel %vm7159_vm4, %v2233_v11, %v2237_v25  ;;  %v7872_v13 = vsel %vm7421_vm7, %v5836_v57, %v2901_v0  ;;  %v2903_v20 = vrot.slane %v2901_v0, 4  ;;  %v2257_v44 = vrot.slane %v2256_v48, 4 }
  0xa1   : > { %v2248_v21 = vsel %vm7159_vm4, %v2243_v1, %v2247_v8  ;;  %v2908_v31 = vrot.slane %v7828_v7, 5  ;;  %v2911_v62 = vrot.slane %v7835_v43, 5  ;;  %v5852_v25 = vcombine.low %v7841_v58, %v7848_v9  ;;  %v5825_v58 = vld [vmem:[%s7131_s11 + $0x78] sm:$0xe] }
  0xa2   : > { %v2267_v40 = vrot.slane %v2266_v4, 4  ;;  %v7889_v39 = vsel %vm7421_vm7, %v2903_v20, %v2904_v52  ;;  %v2274_v12 = vshrl.u32 %v5753_v41, 16  ;;  %v7896_v7 = vcombine.low %v2238_v42, %v2248_v21  ;;  %v5823_v52 = vld [vmem:[%s7131_s11 + $0x60] sm:$0xe]  ;;  %v5759_v20 = vld [vmem:[%s7131_s11 + $0x6c] sm:$0xf] }
  0xa3   : > { %6412 = vmatmul.mubr.msk.bf16.gmra.mxu0 %vm756_vm3, %v5651_v34  ;;  %6450 = vmatmul.mubr.msk.bf16.gmra.mxu1 %vm756_vm3, %v6770_v27  ;;  %v2262_v43 = vsel %vm7159_vm4, %v2257_v44, %v2261_v56  ;;  %v5853_v8 = vcombine.low %v7872_v13, %v7889_v39  ;;  %v2910_v24 = vrot.slane %v2908_v31, 4  ;;  %v2277_v34 = vshll.u32 %v5753_v41, 16  ;;  %v5822_v56 = vld [vmem:[%s7131_s11 + $0x54] sm:$0xe] }
  0xa4   : > { %6415 = vmatprep.mubr.msk.bf16.mxu0 %vm756_vm3, %v5652_v30  ;;  %6489 = vmatprep.mubr.msk.bf16.mxu1 %vm756_vm3, %v5849_v6  ;;  %v2272_v51 = vsel %vm7159_vm4, %v2267_v40, %v2271_v59  ;;  %v2276_v60 = vrot.slane %v2274_v12, 4  ;;  %v2283_v47 = vshll.u32 %v7875_v3, 16  ;;  %v7920_v49 = vsel %vm7421_vm7, %v5837_v38, %v2908_v31 }
  0xa5   : > { %v7916_v55 = vcombine.low %v2262_v43, %v2272_v51  ;;  %v2287_v23 = vshrl.u32 %v7875_v3, 16  ;;  %v2293_v30 = vshll.u32 %v7878_v17, 16  ;;  %v7929_v16 = vsel %vm7421_vm7, %v2910_v24, %v2911_v62 }
  0xa6   : > { %v2279_v6 = vrot.slane %v2277_v34, 5  ;;  %v2285_v61 = vrot.slane %v2283_v47, 5  ;;  %v2298_v29 = vshrl.u32 %v5756_v22, 16  ;;  %v2301_v14 = vshll.u32 %v5756_v22, 16 }
  0xa7   : > { %v2289_v57 = vrot.slane %v2287_v23, 4  ;;  %v2295_v11 = vrot.slane %v2293_v30, 5  ;;  %v2307_v59 = vshll.u32 %v7914_v35, 16  ;;  %v2311_v1 = vshrl.u32 %v7914_v35, 16  ;;  %v7983_v30 = vld [vmem:[%s7131_s11 + $0x7c] sm:$0xf] }
  0xa8   : > { %v2280_v0 = vor.u32 %v2279_v6, %v2276_v60  ;;  %v2300_v27 = vrot.slane %v2298_v29, 4  ;;  %v2317_v48 = vshll.u32 %v7925_v15, 16  ;;  %v2303_v41 = vrot.slane %v2301_v14, 5  ;;  %v5762_v60 = vld [vmem:[%s7131_s11 + $0x78] sm:$0xf] }
  0xa9   : > { %v2290_v38 = vor.u32 %v2289_v57, %v2285_v61  ;;  %v2309_v42 = vrot.slane %v2307_v59, 5  ;;  %v5838_v4 = vrot.slane %v5822_v56, 9  ;;  %v5854_v21 = vcombine.low %v7920_v49, %v7929_v16  ;;  %v7986_v6 = vld [vmem:[%s7131_s11 + $0x80] sm:$0x1]  ;;  %v5824_v57 = vld [vmem:[%s7131_s11 + $0x6c] sm:$0xe] }
  0xaa   : > { %v2281_v44 = vrot.slane %v2280_v0, 4  ;;  %v2313_v31 = vrot.slane %v2311_v1, 4  ;;  %v2915_v62 = vrot.slane %v7875_v3, 5  ;;  %v2304_v40 = vor.u32 %v2303_v41, %v2300_v27 }
  0xab   : > { %6416 = vmatmul.mubr.msk.bf16.gmra.mxu0 %vm756_vm3, %v5653_v18  ;;  %6490 = vmatmul.mubr.msk.bf16.vlgmr.msra.gmra.mxu1 %vm756_vm3, %v5850_v46  ;;  %v2291_v22 = vrot.slane %v2290_v38, 4  ;;  %v2319_v12 = vrot.slane %v2317_v48, 5  ;;  %v2918_v43 = vrot.slane %v7878_v17, 5  ;;  %v5839_v10 = vrot.slane %v5823_v52, 9 }
  0xac   : > { %6455 = vmatprep.mubr.msk.bf16.mxu0 %vm756_vm3, %v7739_v45  ;;  %6493 = vmatprep.mubr.msk.bf16.mxu1 %vm756_vm3, %v5851_v50  ;;  %v2286_v53 = vsel %vm7159_vm4, %v2281_v44, %v2285_v61  ;;  %v2314_v28 = vor.u32 %v2313_v31, %v2309_v42  ;;  %v7959_v18 = vsel %vm7421_vm7, %v5838_v4, %v2915_v62  ;;  %v2917_v32 = vrot.slane %v2915_v62, 4  ;;  %v7968_v50 = vld [vmem:[%s7131_s11 + $0x74] sm:$0x1] }
  0xad   : > { %v2296_v45 = vsel %vm7159_vm4, %v2291_v22, %v2295_v11  ;;  %v2305_v46 = vrot.slane %v2304_v40, 4  ;;  %v2922_v19 = vrot.slane %v7914_v35, 5  ;;  %v2925_v24 = vrot.slane %v7925_v15, 5  ;;  %v7995_v11 = vld [vmem:[%s9533_s1 + $0x10] sm:$0x3] }
  0xae   : > { %v2315_v3 = vrot.slane %v2314_v28, 4  ;;  %v7972_v17 = vsel %vm7421_vm7, %v2917_v32, %v2918_v43  ;;  %v2322_v51 = vshrl.u32 %v5759_v20, 16  ;;  %v7976_v34 = vcombine.low %v2286_v53, %v2296_v45  ;;  %v5765_v53 = vld [vmem:[%s7131_s11 + $0x84] sm:$0xf] }
  0xaf   : > { %v2310_v47 = vsel %vm7159_vm4, %v2305_v46, %v2309_v42  ;;  %v5855_v35 = vcombine.low %v7959_v18, %v7972_v17  ;;  %v2924_v23 = vrot.slane %v2922_v19, 4  ;;  %v2325_v15 = vshll.u32 %v5759_v20, 16  ;;  %v5770_v17 = vld [vmem:[%s7131_s11 + $0x98] sm:$0x1] }
  0xb0   : > { %v2320_v61 = vsel %vm7159_vm4, %v2315_v3, %v2319_v12  ;;  %v2324_v29 = vrot.slane %v2322_v51, 4  ;;  %v2331_v56 = vshll.u32 %v7962_v33, 16  ;;  %v8001_v59 = vsel %vm7421_vm7, %v5839_v10, %v2922_v19  ;;  %v8039_v3 = vld [vmem:[%s7131_s11 + $0x8c] sm:$0x1] }
  0xb1   : > { %v7997_v14 = vcombine.low %v2310_v47, %v2320_v61  ;;  %v2335_v0 = vshrl.u32 %v7962_v33, 16  ;;  %v2341_v27 = vshll.u32 %v7968_v50, 16  ;;  %v8007_v1 = vsel %vm7421_vm7, %v2924_v23, %v2925_v24 }
  0xb2   : > { %v2327_v48 = vrot.slane %v2325_v15, 5  ;;  %v2333_v52 = vrot.slane %v2331_v56, 5  ;;  %v2346_v38 = vshrl.u32 %v5762_v60, 16  ;;  %v2349_v4 = vshll.u32 %v5762_v60, 16  ;;  %v5768_v56 = vld [vmem:[%s7131_s11 + $0x90] sm:$0xf] }
  0xb3   : > { %6456 = vmatmul.mubr.msk.bf16.vlgmr.msra.gmra.mxu0 %vm756_vm3, %v7765_v5  ;;  %6494 = vmatmul.mubr.msk.bf16.gmra.mxu1 %vm756_vm3, %v5852_v25  ;;  %v2337_v41 = vrot.slane %v2335_v0, 4  ;;  %v2343_v42 = vrot.slane %v2341_v27, 5  ;;  %v2355_v20 = vshll.u32 %v7983_v30, 16  ;;  %v2359_v5 = vshrl.u32 %v7983_v30, 16 }
  0xb4   : > { %6522 = vmatpush3.bf16.msra.mxu0 %v7717_v26  ;;  %6459 = vmatprep.mubr.msk.bf16.mxu0 %vm756_vm3, %v7820_v63  ;;  %v2328_v44 = vor.u32 %v2327_v48, %v2324_v29  ;;  %v2348_v31 = vrot.slane %v2346_v38, 4  ;;  %v2365_v62 = vshll.u32 %v7986_v6, 16  ;;  %v2351_v25 = vrot.slane %v2349_v4, 5  ;;  %v5827_v38 = vld [vmem:[%s7131_s11 + $0x90] sm:$0xe] }
  0xb5   : > { %6497 = vmatprep.mubr.msk.bf16.mxu1 %vm756_vm3, %v5853_v8  ;;  %v2338_v9 = vor.u32 %v2337_v41, %v2333_v52  ;;  %v2357_v26 = vrot.slane %v2355_v20, 5  ;;  %v5840_v22 = vrot.slane %v5824_v57, 9  ;;  %6679 = vmatprep.subr.msk.bf16.mxu0 %vm805_vm0, %v7995_v11  ;;  %v2361_v40 = vrot.slane %v2359_v5, 4  ;;  %v8032_v8 = vld [vmem:[%s7131_s11 + $0x88] sm:$0xf] }
  0xb6   : > { %v2329_v63 = vrot.slane %v2328_v44, 4  ;;  %v2367_v12 = vrot.slane %v2365_v62, 5  ;;  %v2929_v43 = vrot.slane %v7962_v33, 5  ;;  %v2352_v32 = vor.u32 %v2351_v25, %v2348_v31  ;;  %v5769_v57 = vld [vmem:[%s7131_s11 + $0x94] sm:$0xf] }
  0xb7   : > { %v2339_v28 = vrot.slane %v2338_v9, 4  ;;  %v2932_v13 = vrot.slane %v7968_v50, 5  ;;  %v5841_v39 = vrot.slane %v5825_v58, 9  ;;  %v2362_v46 = vor.u32 %v2361_v40, %v2357_v26 }
  0xb8   : > { %v2334_v45 = vsel %vm7159_vm4, %v2329_v63, %v2333_v52  ;;  %v2930_v10 = vsel %vm7421_vm7, %v5840_v22, %v2929_v43  ;;  %v2931_v19 = vrot.slane %v2929_v43, 4  ;;  %v2353_v24 = vrot.slane %v2352_v32, 4 }
  0xb9   : > { %v2344_v33 = vsel %vm7159_vm4, %v2339_v28, %v2343_v42  ;;  %v2936_v50 = vrot.slane %v7983_v30, 5  ;;  %v2939_v51 = vrot.slane %v7986_v6, 5  ;;  %v5856_v60 = vcombine.low %v8001_v59, %v8007_v1 }
  0xba   : > { %v2363_v47 = vrot.slane %v2362_v46, 4  ;;  %v2933_v23 = vsel %vm7421_vm7, %v2931_v19, %v2932_v13  ;;  %v2370_v61 = vshrl.u32 %v5765_v53, 16  ;;  %v8055_v30 = vcombine.low %v2334_v45, %v2344_v33  ;;  %v5771_v13 = vld [vmem:[%s7131_s11 + $0x9c] sm:$0xf] }
  0xbb   : > { %6460 = vmatmul.mubr.msk.bf16.gmra.mxu0 %vm756_vm3, %v7837_v54  ;;  %6498 = vmatmul.mubr.msk.bf16.gmra.mxu1 %vm756_vm3, %v5854_v21  ;;  %v2358_v6 = vsel %vm7159_vm4, %v2353_v24, %v2357_v26  ;;  %v5857_v29 = vcombine.low %v2930_v10, %v2933_v23  ;;  %v2938_v15 = vrot.slane %v2936_v50, 4  ;;  %v2373_v16 = vshll.u32 %v5765_v53, 16 }
  0xbc   : > { %6463 = vmatprep.mubr.msk.bf16.mxu0 %vm756_vm3, %v7896_v7  ;;  %6501 = vmatprep.mubr.msk.bf16.mxu1 %vm756_vm3, %v5855_v35  ;;  %v2368_v54 = vsel %vm7159_vm4, %v2363_v47, %v2367_v12  ;;  %v2372_v49 = vrot.slane %v2370_v61, 4  ;;  %v2379_v21 = vshll.u32 %v8032_v8, 16  ;;  %v8074_v0 = vsel %vm7421_vm7, %v5841_v39, %v2936_v50  ;;  %v5826_v35 = vld [vmem:[%s7131_s11 + $0x84] sm:$0xe] }
  0xbd   : > { %v8070_v59 = vcombine.low %v2358_v6, %v2368_v54  ;;  %v2383_v7 = vshrl.u32 %v8032_v8, 16  ;;  %v2389_v18 = vshll.u32 %v8039_v3, 16  ;;  %v8082_v27 = vsel %vm7421_vm7, %v2938_v15, %v2939_v51  ;;  %v5773_v51 = vld [vmem:[%s7131_s11 + $0xa4] sm:$0x1] }
  0xbe   : > { %v2375_v1 = vrot.slane %v2373_v16, 5  ;;  %v2381_v48 = vrot.slane %v2379_v21, 5  ;;  %v2394_v52 = vshrl.u32 %v5768_v56, 16  ;;  %v2397_v4 = vshll.u32 %v5768_v56, 16  ;;  %v5775_v16 = vld [vmem:[%s7131_s11 + $0xac] sm:$0xf] }
  0xbf   : > { %v2385_v41 = vrot.slane %v2383_v7, 4  ;;  %v2391_v42 = vrot.slane %v2389_v18, 5  ;;  %v2403_v20 = vshll.u32 %v5769_v57, 16  ;;  %v2407_v5 = vshrl.u32 %v5769_v57, 16  ;;  %v8129_v18 = vld [vmem:[%s7131_s11 + $0xb0] sm:$0x1] }
  0xc0   : > { %v2376_v44 = vor.u32 %v2375_v1, %v2372_v49  ;;  %v2396_v31 = vrot.slane %v2394_v52, 4  ;;  %v2413_v62 = vshll.u32 %v5770_v17, 16  ;;  %v2399_v9 = vrot.slane %v2397_v4, 5 }
  0xc1   : > { %v2386_v58 = vor.u32 %v2385_v41, %v2381_v48  ;;  %v8085_v25 = vrot.slane %v2403_v20, 5  ;;  %v5842_v26 = vrot.slane %v5826_v35, 9  ;;  %v2409_v63 = vrot.slane %v2407_v5, 4  ;;  %v5829_v5 = vld [vmem:[%s7131_s11 + $0xa8] sm:$0xe] }
  0xc2   : > { %v2377_v22 = vrot.slane %v2376_v44, 4  ;;  %v8087_v40 = vrot.slane %v2413_v62, 5  ;;  %v2943_v12 = vrot.slane %v8032_v8, 5  ;;  %v2400_v53 = vor.u32 %v2399_v9, %v2396_v31 }
  0xc3   : > { %6464 = vmatmul.mubr.msk.bf16.gmra.mxu0 %vm756_vm3, %v7916_v55  ;;  %6502 = vmatmul.mubr.msk.bf16.gmra.mxu1 %vm756_vm3, %v5856_v60  ;;  %v2387_v43 = vrot.slane %v2386_v58, 4  ;;  %v2946_v28 = vrot.slane %v8039_v3, 5  ;;  %v5843_v32 = vrot.slane %v5827_v38, 9  ;;  %v2410_v55 = vor.u32 %v2409_v63, %v8085_v25 }
  0xc4   : > { %6467 = vmatprep.mubr.msk.bf16.mxu0 %vm756_vm3, %v7976_v34  ;;  %6505 = vmatprep.mubr.msk.bf16.mxu1 %vm756_vm3, %v5857_v29  ;;  %v2382_v39 = vsel %vm7159_vm4, %v2377_v22, %v2381_v48  ;;  %v2944_v8 = vsel %vm7421_vm7, %v5842_v26, %v2943_v12  ;;  %v2945_v45 = vrot.slane %v2943_v12, 4  ;;  %v8105_v10 = vrot.slane %v2400_v53, 4  ;;  %v5772_v34 = vld [vmem:[%s7131_s11 + $0xa0] sm:$0xf]  ;;  %v5774_v29 = vld [vmem:[%s7131_s11 + $0xa8] sm:$0xf] }
  0xc5   : > { %v2392_v46 = vsel %vm7159_vm4, %v2387_v43, %v2391_v42  ;;  %v2950_v19 = vrot.slane %v5769_v57, 5  ;;  %v2953_v3 = vrot.slane %v5770_v17, 5  ;;  %v5858_v33 = vcombine.low %v8074_v0, %v8082_v27  ;;  %v5828_v48 = vld [vmem:[%s7131_s11 + $0x9c] sm:$0xe] }
  0xc6   : > { %v2411_v24 = vrot.slane %v2410_v55, 4  ;;  %v2947_v50 = vsel %vm7421_vm7, %v2945_v45, %v2946_v28  ;;  %v2418_v60 = vshrl.u32 %v5771_v13, 16  ;;  %v8113_v47 = vcombine.low %v2382_v39, %v2392_v46  ;;  %v8146_v28 = vld [vmem:[%s7131_s11 + $0xb8] sm:$0xf] }
  0xc7   : > { %v2406_v23 = vsel %vm7159_vm4, %v8105_v10, %v8085_v25  ;;  %v2951_v61 = vsel %vm7421_vm7, %v5843_v32, %v2950_v19  ;;  %v2952_v6 = vrot.slane %v2950_v19, 4  ;;  %v5859_v15 = vcombine.low %v2944_v8, %v2947_v50  ;;  %v5777_v25 = vld [vmem:[%s7131_s11 + $0xb4] sm:$0xf] }
  0xc8   : > { %v2420_v56 = vrot.slane %v2418_v60, 4  ;;  %v2421_v54 = vshll.u32 %v5771_v13, 16  ;;  %v2427_v49 = vshll.u32 %v5772_v34, 16  ;;  %v2416_v21 = vsel %vm7159_vm4, %v2411_v24, %v8087_v40 }
  0xc9   : > { %v2954_v57 = vsel %vm7421_vm7, %v2952_v6, %v2953_v3  ;;  %v2431_v0 = vshrl.u32 %v5772_v34, 16  ;;  %v2437_v7 = vshll.u32 %v5773_v51, 16  ;;  %v2442_v1 = vshrl.u32 %v5774_v29, 16 }
  0xca   : > { %v5860_v17 = vcombine.low %v2951_v61, %v2954_v57  ;;  %v2423_v35 = vrot.slane %v2421_v54, 5  ;;  %v2429_v27 = vrot.slane %v2427_v49, 5  ;;  %v2445_v41 = vshll.u32 %v5774_v29, 16  ;;  %v5780_v61 = vld [vmem:[%s7131_s11 + $0xc0] sm:$0xf] }
  0xcb   : > { %6468 = vmatmul.mubr.msk.bf16.gmra.mxu0 %vm756_vm3, %v7997_v14  ;;  %6506 = vmatmul.mubr.msk.bf16.gmra.mxu1 %vm756_vm3, %v5858_v33  ;;  %v2433_v52 = vrot.slane %v2431_v0, 4  ;;  %v2439_v38 = vrot.slane %v2437_v7, 5  ;;  %v2451_v42 = vshll.u32 %v5775_v16, 16  ;;  %v2444_v20 = vrot.slane %v2442_v1, 4  ;;  %v5779_v33 = vld [vmem:[%s7131_s11 + $0xbc] sm:$0x1] }
  0xcc   : > { %6471 = vmatprep.mubr.msk.bf16.mxu0 %vm756_vm3, %v8055_v30  ;;  %6509 = vmatprep.mubr.msk.bf16.mxu1 %vm756_vm3, %v5859_v15  ;;  %v2424_v4 = vor.u32 %v2423_v35, %v2420_v56  ;;  %v2455_v44 = vshrl.u32 %v5775_v16, 16  ;;  %v2461_v31 = vshll.u32 %v8129_v18, 16  ;;  %v2447_v62 = vrot.slane %v2445_v41, 5  ;;  %v5781_v56 = vld [vmem:[%s7131_s11 + $0xc4] sm:$0xf] }
  0xcd   : > { %v2434_v14 = vor.u32 %v2433_v52, %v2429_v27  ;;  %v8140_v58 = vrot.slane %v2451_v42, 5  ;;  %v5844_v9 = vrot.slane %v5828_v48, 9  ;;  %v2957_v30 = vrot.slane %v5772_v34, 5 }
  0xce   : > { %v2425_v26 = vrot.slane %v2424_v4, 4  ;;  %v2457_v22 = vrot.slane %v2455_v44, 4  ;;  %v8143_v63 = vrot.slane %v2461_v31, 5  ;;  %v2448_v12 = vor.u32 %v2447_v62, %v2444_v20  ;;  %v5831_v4 = vld [vmem:[%s7131_s11 + $0xc0] sm:$0xe] }
  0xcf   : > { %v2435_v40 = vrot.slane %v2434_v14, 4  ;;  %v2960_v43 = vrot.slane %v5773_v51, 5  ;;  %v5845_v53 = vrot.slane %v5829_v5, 9  ;;  %v2958_v39 = vsel %vm7421_vm7, %v5844_v9, %v2957_v30 }
  0xd0   : > { %v2430_v32 = vsel %vm7159_vm4, %v2425_v26, %v2429_v27  ;;  %v2458_v13 = vor.u32 %v2457_v22, %v8140_v58  ;;  %v2959_v55 = vrot.slane %v2957_v30, 4  ;;  %v8155_v45 = vrot.slane %v2448_v12, 4 }
  0xd1   : > { %v2440_v8 = vsel %vm7159_vm4, %v2435_v40, %v2439_v38  ;;  %v2964_v46 = vrot.slane %v5775_v16, 5  ;;  %v2967_v10 = vrot.slane %v8129_v18, 5  ;;  %v5795_v19 = vcombine.low %v2406_v23, %v2416_v21  ;;  %v5782_v21 = vld [vmem:[%s7131_s11 + $0xc8] sm:$0x1] }
  0xd2   : > { %v8158_v3 = vrot.slane %v2458_v13, 4  ;;  %v2961_v34 = vsel %vm7421_vm7, %v2959_v55, %v2960_v43  ;;  %v2466_v24 = vshrl.u32 %v5777_v25, 16  ;;  %v5796_v50 = vcombine.low %v2430_v32, %v2440_v8 }
  0xd3   : > { %6472 = vmatmul.mubr.msk.bf16.gmra.mxu0 %vm756_vm3, %v8070_v59  ;;  %6510 = vmatmul.mubr.msk.bf16.gmra.mxu1 %vm756_vm3, %v5860_v17  ;;  %v5861_v51 = vcombine.low %v2958_v39, %v2961_v34  ;;  %v2965_v60 = vsel %vm7421_vm7, %v5845_v53, %v2964_v46  ;;  %v2966_v23 = vrot.slane %v2964_v46, 4  ;;  %v2454_v6 = vsel %vm7159_vm4, %v8155_v45, %v8140_v58  ;;  %v5830_v17 = vld [vmem:[%s7131_s11 + $0xb4] sm:$0xe]  ;;  %v5946_v39 = vld [vmem:[%s7131_s11 + $0x18] sm:$0xf] }
  0xd4   : > { %6475 = vmatprep.mubr.msk.bf16.mxu0 %vm756_vm3, %v8113_v47  ;;  %v2468_v59 = vrot.slane %v2466_v24, 4  ;;  %v2469_v29 = vshll.u32 %v5777_v25, 16  ;;  %v2475_v15 = vshll.u32 %v8146_v28, 16  ;;  %v2464_v54 = vsel %vm7159_vm4, %v8158_v3, %v8143_v63  ;;  %v8209_v46 = vld [vmem:[%s7131_s11 + $0x1c] sm:$0xf] }
  0xd5   : > { %6513 = vmatprep.mubr.msk.bf16.mxu1 %vm756_vm3, %v5861_v51  ;;  %v2968_v47 = vsel %vm7421_vm7, %v2966_v23, %v2967_v10  ;;  %v2479_v49 = vshrl.u32 %v8146_v28, 16  ;;  %v2485_v16 = vshll.u32 %v5779_v33, 16  ;;  %v2490_v18 = vshrl.u32 %v5780_v61, 16 }
  0xd6   : > { %v5862_v57 = vcombine.low %v2965_v60, %v2968_v47  ;;  %v2471_v0 = vrot.slane %v2469_v29, 5  ;;  %v2477_v7 = vrot.slane %v2475_v15, 5  ;;  %v2493_v1 = vshll.u32 %v5780_v61, 16  ;;  %v5949_v60 = vld [vmem:[%s7131_s11 + $0x24] sm:$0xf] }
  0xd7   : > { %v2481_v35 = vrot.slane %v2479_v49, 4  ;;  %v2487_v27 = vrot.slane %v2485_v16, 5  ;;  %v2499_v48 = vshll.u32 %v5781_v56, 16  ;;  %v2492_v38 = vrot.slane %v2490_v18, 4  ;;  %v8229_v29 = vld [vmem:[%s7131_s11 + $0x28] sm:$0xf] }
  0xd8   : > { %v2472_v52 = vor.u32 %v2471_v0, %v2468_v59  ;;  %v2503_v41 = vshrl.u32 %v5781_v56, 16  ;;  %v2509_v42 = vshll.u32 %v5782_v21, 16  ;;  %v2495_v44 = vrot.slane %v2493_v1, 5  ;;  %v8233_v49 = vld [vmem:[%s7131_s11 + $0x2c] sm:$0x1] }
  0xd9   : > { %v2482_v20 = vor.u32 %v2481_v35, %v2477_v7  ;;  %v8188_v31 = vrot.slane %v2499_v48, 5  ;;  %v5846_v5 = vrot.slane %v5830_v17, 9  ;;  %v2971_v9 = vrot.slane %v8146_v28, 5 }
  0xda   : > { %v2473_v14 = vrot.slane %v2472_v52, 4  ;;  %v2505_v62 = vrot.slane %v2503_v41, 4  ;;  %v8190_v58 = vrot.slane %v2509_v42, 5  ;;  %v2496_v26 = vor.u32 %v2495_v44, %v2492_v38  ;;  %v5952_v41 = vld [vmem:[%s7131_s11 + $0x30] sm:$0xf] }
  0xdb   : > { %6476 = vmatmul.mubr.msk.bf16.gmra.mxu0 %vm756_vm3, %v5795_v19  ;;  %6514 = vmatmul.mubr.msk.bf16.gmra.mxu1 %vm756_vm3, %v5862_v57  ;;  %v2483_v25 = vrot.slane %v2482_v20, 4  ;;  %v2974_v22 = vrot.slane %v5779_v33, 5  ;;  %v5847_v63 = vrot.slane %v5831_v4, 9  ;;  %v2972_v12 = vsel %vm7421_vm7, %v5846_v5, %v2971_v9  ;;  %v8214_v33 = vld [vmem:[%s7131_s11 + $0x20] sm:$0x1] }
  0xdc   : > { %6479 = vmatprep.mubr.msk.bf16.mxu0 %vm756_vm3, %v5796_v50  ;;  %v2478_v30 = vsel %vm7159_vm4, %v2473_v14, %v2477_v7  ;;  %v2506_v40 = vor.u32 %v2505_v62, %v8188_v31  ;;  %v2973_v43 = vrot.slane %v2971_v9, 4  ;;  %v2497_v28 = vrot.slane %v2496_v26, 4  ;;  %v8243_v44 = vld [vmem:[%s7131_s11 + $0x34] sm:$0xf]  ;;  %v6771_v9 = vld [vmem:[%s7131_s11 + $0x18] sm:$0xff]  }
  0xdd   : > { %v2488_v53 = vsel %vm7159_vm4, %v2483_v25, %v2487_v27  ;;  %v2978_v32 = vrot.slane %v5781_v56, 5  ;;  %v2981_v13 = vrot.slane %v5782_v21, 5  ;;  %v4170_v45 = vsel %vm805_vm0, %v7748_v2, 0 }
  0xde   : > { %v2507_v55 = vrot.slane %v2506_v40, 4  ;;  %v2975_v8 = vsel %vm7421_vm7, %v2973_v43, %v2974_v22  ;;  %v5797_v10 = vcombine.low %v2454_v6, %v2464_v54  ;;  %6556 = vmatpush3.bf16.msra.mxu1 %v4170_v45  ;;  %v5798_v24 = vcombine.low %v2478_v30, %v2488_v53  ;;  %v8249_v22 = vld [vmem:[%s7131_s11 + $0x38] sm:$0x1] }
  0xdf   : > { %v5863_v19 = vcombine.low %v2972_v12, %v2975_v8  ;;  %v2979_v3 = vsel %vm7421_vm7, %v5847_v63, %v2978_v32  ;;  %v2980_v34 = vrot.slane %v2978_v32, 4  ;;  %v2502_v50 = vsel %vm7159_vm4, %v2497_v28, %v8188_v31  ;;  %v5955_v32 = vld [vmem:[%s7131_s11 + $0x3c] sm:$0xf] }
  0xe0   : > { %v3688_v51 = vshrl.u32 %v5946_v39, 16  ;;  %v3691_v2 = vshll.u32 %v5946_v39, 16  ;;  %v2512_v23 = vsel %vm7159_vm4, %v2507_v55, %v8190_v58  ;;  %v3697_v6 = vshll.u32 %v8209_v46, 16 }
  0xe1   : > { %6517 = vmatprep.mubr.msk.bf16.mxu1 %vm756_vm3, %v5863_v19  ;;  %v2982_v61 = vsel %vm7421_vm7, %v2980_v34, %v2981_v13  ;;  %v3701_v59 = vshrl.u32 %v8209_v46, 16  ;;  %v3707_v47 = vshll.u32 %v8214_v33, 16  ;;  %v3712_v57 = vshrl.u32 %v5949_v60, 16 }
  0xe2   : > { %v5864_v15 = vcombine.low %v2979_v3, %v2982_v61  ;;  %v3690_v56 = vrot.slane %v3688_v51, 4  ;;  %v3693_v54 = vrot.slane %v3691_v2, 5  ;;  %v3699_v16 = vrot.slane %v3697_v6, 5 }
  0xe3   : > { %6480 = vmatmul.mubr.msk.bf16.gmra.mxu0 %vm756_vm3, %v5797_v10  ;;  %v3703_v21 = vrot.slane %v3701_v59, 4  ;;  %v3715_v0 = vshll.u32 %v5949_v60, 16  ;;  %v3709_v18 = vrot.slane %v3707_v47, 5  ;;  %v3721_v17 = vshll.u32 %v8229_v29, 16 }
  0xe4   : > { %6483 = vmatprep.mubr.msk.bf16.mxu0 %vm756_vm3, %v5798_v24  ;;  %6518 = vmatmul.mubr.msk.bf16.gmra.mxu1 %vm756_vm3, %v5864_v15  ;;  %v3694_v7 = vor.u32 %v3693_v54, %v3690_v56  ;;  %v3725_v35 = vshrl.u32 %v8229_v29, 16  ;;  %v3714_v48 = vrot.slane %v3712_v57, 4  ;;  %v3731_v38 = vshll.u32 %v8233_v49, 16 }
  0xe5   : > { %v6355_v27 = vpop.f32.mrf.mxu1  ;;  %v3704_v1 = vor.u32 %v3703_v21, %v3699_v16  ;;  %v3717_v52 = vrot.slane %v3715_v0, 5  ;;  %v3723_v4 = vrot.slane %v3721_v17, 5  ;;  %v5799_v31 = vcombine.low %v2502_v50, %v2512_v23  ;;  %v8261_v50 = vld [vmem:[%s7131_s11 + $0x40] sm:$0xf]  ;;  %v8270_v23 = vld [vmem:[%s7131_s11 + $0x44] sm:$0x1] }
  0xe6   : > { %v3695_v42 = vrot.slane %v3694_v7, 4  ;;  %v3727_v20 = vrot.slane %v3725_v35, 4  ;;  %v3733_v58 = vrot.slane %v3731_v38, 5  ;;  %v3736_v63 = vshrl.u32 %v5952_v41, 16 }
  0xe7   : > { %v3705_v5 = vrot.slane %v3704_v1, 4  ;;  %v1135_v14 = vpop.f32.mrf.mxu1  ;;  %v3718_v62 = vor.u32 %v3717_v52, %v3714_v48  ;;  %v3739_v30 = vshll.u32 %v5952_v41, 16  ;;  %v3745_v53 = vshll.u32 %v8243_v44, 16  ;;  %v5958_v52 = vld [vmem:[%s7131_s11 + $0x48] sm:$0xf] }
  0xe8   : > { %v3700_v25 = vsel %vm7159_vm4, %v3695_v42, %v3699_v16  ;;  %v3728_v26 = vor.u32 %v3727_v20, %v3723_v4  ;;  %v3749_v28 = vshrl.u32 %v8243_v44, 16  ;;  %v3738_v55 = vrot.slane %v3736_v63, 4  ;;  %v6772_v16 = vld [vmem:[%s7131_s11 + $0x24] sm:$0xff]   ;;  %v6773_v42 = vld [vmem:[%s7131_s11 + $0x30] sm:$0xff]  }
  0xe9   : > { %v3710_v40 = vsel %vm7159_vm4, %v3705_v5, %v3709_v18  ;;  %v3719_v12 = vrot.slane %v3718_v62, 4  ;;  %v6356_v43 = vpop.f32.mrf.mxu1  ;;  %v3741_v8 = vrot.slane %v3739_v30, 5  ;;  %v3747_v3 = vrot.slane %v3745_v53, 5 }
  0xea   : > { %v5995_v13 = vcombine.low %v3700_v25, %v3710_v40  ;;  %v3729_v39 = vrot.slane %v3728_v26, 4  ;;  %v3751_v34 = vrot.slane %v3749_v28, 4  ;;  %v3755_v24 = vshll.u32 %v8249_v22, 16  ;;  %v8293_v26 = vld [vmem:[%s7131_s11 + $0x50] sm:$0x1] }
  0xeb   : > { %6484 = vmatmul.mubr.msk.bf16.gmra.mxu0 %vm756_vm3, %v5799_v31  ;;  %v6321_v45 = vpop.f32.mrf.mxu0  ;;  %v3724_v10 = vsel %vm7159_vm4, %v3719_v12, %v3723_v4  ;;  %v1138_v19 = vpop.f32.mrf.mxu1  ;;  %v3742_v60 = vor.u32 %v3741_v8, %v3738_v55  ;;  %v3760_v61 = vshrl.u32 %v5955_v32, 16  ;;  %v3763_v47 = vshll.u32 %v5955_v32, 16  ;;  %v8288_v31 = vld [vmem:[%s7131_s11 + $0x4c] sm:$0xf] }
  0xec   : > { %6523 = vmatprep.mubr.msk.bf16.mxu0 %vm756_vm3, %v6771_v9  ;;  %v8264_v51 = vadd.f32 %v6355_v27, %v6321_v45  ;;  %6557 = vmatprep.mubr.msk.bf16.mxu1 %vm756_vm3, %v5995_v13  ;;  %v3734_v2 = vsel %vm7159_vm4, %v3729_v39, %v3733_v58  ;;  %v3752_v56 = vor.u32 %v3751_v34, %v3747_v3  ;;  %v3757_v54 = vrot.slane %v3755_v24, 5  ;;  %v8304_v45 = vld [vmem:[%s7131_s11 + $0x58] sm:$0xf] }
  0xed   : > { %v843_v6 = vpop.f32.mrf.mxu0  ;;  %v5996_v59 = vcombine.low %v3724_v10, %v3734_v2  ;;  %v6359_v15 = vpop.f32.mrf.mxu1  ;;  %v3743_v57 = vrot.slane %v3742_v60, 4  ;;  %v3762_v0 = vrot.slane %v3760_v61, 4  ;;  %v3769_v7 = vshll.u32 %v8261_v50, 16 }
  0xee   : > { %v8273_v21 = vadd.f32 %v1135_v14, %v843_v6  ;;  %v3753_v17 = vrot.slane %v3752_v56, 4  ;;  %v3765_v27 = vrot.slane %v3763_v47, 5  ;;  %v3773_v1 = vshrl.u32 %v8261_v50, 16 }
  0xef   : > { %6558 = vmatmul.mubr.msk.bf16.vlgmr.msra.gmra.mxu1 %vm756_vm3, %v5996_v59  ;;  %v6322_v18 = vpop.f32.mrf.mxu0  ;;  %v1151_v35 = vpop.f32.mrf.mxu1  ;;  %v3779_v48 = vshll.u32 %v8270_v23, 16  ;;  %v4640_v38 = vsel %vm805_vm0, %v7995_v11, 0  ;;  %v3748_v4 = vsel %vm7159_vm4, %v3743_v57, %v3747_v3  ;;  %v3771_v20 = vrot.slane %v3769_v7, 5  ;;  %v5961_v11 = vld [vmem:[%s7131_s11 + $0x54] sm:$0xf] }
  0xf0   : > { %v8282_v41 = vadd.f32 %v6356_v43, %v6322_v18  ;;  %v3758_v14 = vsel %vm7159_vm4, %v3753_v17, %v3757_v54  ;;  %v3766_v62 = vor.u32 %v3765_v27, %v3762_v0  ;;  %v3775_v58 = vrot.slane %v3773_v1, 4  ;;  %v8312_v59 = vld [vmem:[%s7131_s11 + $0x5c] sm:$0x1]  ;;  %v6775_v27 = vld [vmem:[%s7131_s11 + $0x48] sm:$0xff]  }
  0xf1   : > { %v846_v5 = vpop.f32.mrf.mxu0  ;;  %v3781_v9 = vrot.slane %v3779_v48, 5  ;;  %v6360_v25 = vpop.f32.mrf.mxu1  ;;  %v5997_v30 = vcombine.low %v3748_v4, %v3758_v14  ;;  %v3784_v40 = vshrl.u32 %v5958_v52, 16  ;;  %v3787_v12 = vshll.u32 %v5958_v52, 16  ;;  %v6774_v54 = vld [vmem:[%s7131_s11 + $0x3c] sm:$0xff]  }
  0xf2   : > { %v8296_v63 = vadd.f32 %v1138_v19, %v846_v5  ;;  %v3767_v43 = vrot.slane %v3766_v62, 4  ;;  %v3776_v53 = vor.u32 %v3775_v58, %v3771_v20  ;;  %v3793_v32 = vshll.u32 %v8288_v31, 16  ;;  %v5964_v52 = vld [vmem:[%s7131_s11 + $0x60] sm:$0xf] }
  0xf3   : > { %6524 = vmatmul.mubr.msk.bf16.vlgmr.msra.gmra.mxu0 %vm756_vm3, %v6772_v16  ;;  %v1154_v28 = vpop.f32.mrf.mxu1  ;;  %v3797_v13 = vshrl.u32 %v8288_v31, 16  ;;  %v3786_v39 = vrot.slane %v3784_v40, 4  ;;  %v3789_v55 = vrot.slane %v3787_v12, 5  ;;  %v3803_v8 = vshll.u32 %v8293_v26, 16  ;;  %6561 = vmatprep.mubr.msk.bf16.mxu1 %vm756_vm3, %v5997_v30 }
  0xf4   : > { %6590 = vmatpush3.bf16.msra.mxu0 %v4640_v38  ;;  %6527 = vmatprep.mubr.msk.bf16.mxu0 %vm756_vm3, %v6773_v42  ;;  %v3808_v10 = vshrl.u32 %v5961_v11, 16  ;;  %v3772_v3 = vsel %vm7159_vm4, %v3767_v43, %v3771_v20  ;;  %v3777_v34 = vrot.slane %v3776_v53, 4  ;;  %v3795_v24 = vrot.slane %v3793_v32, 5  ;;  %v8336_v53 = vld [vmem:[%s7131_s11 + $0x68] sm:$0x1] }
  0xf5   : > { %v6325_v19 = vpop.f32.mrf.mxu0  ;;  %v3799_v2 = vrot.slane %v3797_v13, 4  ;;  %v3790_v61 = vor.u32 %v3789_v55, %v3786_v39  ;;  %v3805_v6 = vrot.slane %v3803_v8, 5  ;;  %v3811_v7 = vshll.u32 %v5961_v11, 16  ;;  %v5967_v8 = vld [vmem:[%s7131_s11 + $0x6c] sm:$0xf] }
  0xf6   : > { %v8309_v60 = vadd.f32 %v6359_v15, %v6325_v19  ;;  %v3810_v56 = vrot.slane %v3808_v10, 4  ;;  %v3782_v16 = vsel %vm7159_vm4, %v3777_v34, %v3781_v9  ;;  %v3817_v18 = vshll.u32 %v8304_v45, 16  ;;  %v8330_v9 = vld [vmem:[%s7131_s11 + $0x64] sm:$0xf] }
  0xf7   : > { %v859_v47 = vpop.f32.mrf.mxu0  ;;  %v6363_v57 = vpop.f32.mrf.mxu1  ;;  %v3800_v0 = vor.u32 %v3799_v2, %v3795_v24  ;;  %v5998_v15 = vcombine.low %v3772_v3, %v3782_v16  ;;  %v3791_v1 = vrot.slane %v3790_v61, 4  ;;  %v3821_v48 = vshrl.u32 %v8304_v45, 16 }
  0xf8   : > { %v8318_v17 = vadd.f32 %v1151_v35, %v859_v47  ;;  %v3813_v20 = vrot.slane %v3811_v7, 5  ;;  %v3819_v5 = vrot.slane %v3817_v18, 5  ;;  %v3827_v14 = vshll.u32 %v8312_v59, 16 }
  0xf9   : > { %v6326_v38 = vpop.f32.mrf.mxu0  ;;  %v3801_v42 = vrot.slane %v3800_v0, 4  ;;  %v1167_v4 = vpop.f32.mrf.mxu1  ;;  %6562 = vmatmul.mubr.msk.bf16.gmra.mxu1 %vm756_vm3, %v5998_v15  ;;  %v3796_v35 = vsel %vm7159_vm4, %v3791_v1, %v3795_v24  ;;  %v3823_v58 = vrot.slane %v3821_v48, 4  ;;  %v3835_v55 = vshll.u32 %v5964_v52, 16  ;;  %v8352_v15 = vld [vmem:[%s7131_s11 + $0x70] sm:$0xf]  ;;  %v6777_v48 = vld [vmem:[%s7131_s11 + $0x60] sm:$0xff]  }
  0xfa   : > { %v8325_v62 = vadd.f32 %v6360_v25, %v6326_v38  ;;  %v3814_v40 = vor.u32 %v3813_v20, %v3810_v56  ;;  %v3829_v12 = vrot.slane %v3827_v14, 5  ;;  %v3832_v25 = vshrl.u32 %v5964_v52, 16 }
  0xfb   : > { %6528 = vmatmul.mubr.msk.bf16.gmra.mxu0 %vm756_vm3, %v6774_v54  ;;  %v862_v11 = vpop.f32.mrf.mxu0  ;;  %v3806_v30 = vsel %vm7159_vm4, %v3801_v42, %v3805_v6  ;;  %v6364_v43 = vpop.f32.mrf.mxu1  ;;  %v3824_v39 = vor.u32 %v3823_v58, %v3819_v5  ;;  %v3841_v24 = vshll.u32 %v8330_v9, 16  ;;  %v3845_v2 = vshrl.u32 %v8330_v9, 16  ;;  %v6776_v54 = vld [vmem:[%s7131_s11 + $0x54] sm:$0xff]  }
  0xfc   : > { %v8338_v32 = vadd.f32 %v1154_v28, %v862_v11  ;;  %6531 = vmatprep.mubr.msk.bf16.mxu0 %vm756_vm3, %v6775_v27  ;;  %v5999_v13 = vcombine.low %v3796_v35, %v3806_v30  ;;  %v3815_v19 = vrot.slane %v3814_v40, 4  ;;  %v3834_v34 = vrot.slane %v3832_v25, 4  ;;  %v8360_v42 = vld [vmem:[%s7131_s11 + $0x74] sm:$0x1]  ;;  %v5970_v25 = vld [vmem:[%s7131_s11 + $0x78] sm:$0xf] }
  0xfd   : > { %v6329_v10 = vpop.f32.mrf.mxu0  ;;  %v1170_v3 = vpop.f32.mrf.mxu1  ;;  %v3825_v28 = vrot.slane %v3824_v39, 4  ;;  %v3837_v6 = vrot.slane %v3835_v55, 5  ;;  %v3851_v56 = vshll.u32 %v8336_v53, 16  ;;  %v3843_v7 = vrot.slane %v3841_v24, 5 }
  0xfe   : > { %v8344_v61 = vadd.f32 %v6363_v57, %v6329_v10  ;;  %6565 = vmatprep.mubr.msk.bf16.mxu1 %vm756_vm3, %v5999_v13  ;;  %v3820_v16 = vsel %vm7159_vm4, %v3815_v19, %v3819_v5  ;;  %v3847_v18 = vrot.slane %v3845_v2, 4  ;;  %v3856_v27 = vshrl.u32 %v5967_v8, 16 }
  0xff   : > { %v875_v47 = vpop.f32.mrf.mxu0  ;;  %v6367_v0 = vpop.f32.mrf.mxu1  ;;  %v3830_v1 = vsel %vm7159_vm4, %v3825_v28, %v3829_v12  ;;  %v3838_v52 = vor.u32 %v3837_v6, %v3834_v34  ;;  %v3853_v38 = vrot.slane %v3851_v56, 5  ;;  %v3859_v11 = vshll.u32 %v5967_v8, 16  ;;  %v8371_v8 = vld [vmem:[%s7131_s11 + $0x7c] sm:$0xf]  ;;  %v8379_v28 = vld [vmem:[%s7131_s11 + $0x80] sm:$0x1] }
 0x100   : > { %v8354_v57 = vadd.f32 %v1167_v4, %v875_v47  ;;  %v6000_v20 = vcombine.low %v3820_v16, %v3830_v1  ;;  %v3848_v5 = vor.u32 %v3847_v18, %v3843_v7  ;;  %v3858_v58 = vrot.slane %v3856_v27, 4 }
 0x101   : > { %v6330_v14 = vpop.f32.mrf.mxu0  ;;  %v1183_v35 = vpop.f32.mrf.mxu1  ;;  %v3839_v4 = vrot.slane %v3838_v52, 4  ;;  %v3865_v40 = vshll.u32 %v8352_v15, 16  ;;  %v3869_v12 = vshrl.u32 %v8352_v15, 16  ;;  %v3861_v55 = vrot.slane %v3859_v11, 5  ;;  %v6778_v52 = vld [vmem:[%s7131_s11 + $0x6c] sm:$0xff]  }
 0x102   : > { %v8362_v30 = vadd.f32 %v6364_v43, %v6330_v14  ;;  %6566 = vmatmul.mubr.msk.bf16.gmra.mxu1 %vm756_vm3, %v6000_v20  ;;  %v3849_v39 = vrot.slane %v3848_v5, 4  ;;  %v3875_v10 = vshll.u32 %v8360_v42, 16  ;;  %v3880_v16 = vshrl.u32 %v5970_v25, 16 }
 0x103   : > { %6532 = vmatmul.mubr.msk.bf16.gmra.mxu0 %vm756_vm3, %v6776_v54  ;;  %v878_v13 = vpop.f32.mrf.mxu0  ;;  %v6368_v19 = vpop.f32.mrf.mxu1  ;;  %v3844_v34 = vsel %vm7159_vm4, %v3839_v4, %v3843_v7  ;;  %v3867_v24 = vrot.slane %v3865_v40, 5  ;;  %v3871_v2 = vrot.slane %v3869_v12, 4  ;;  %v3862_v56 = vor.u32 %v3861_v55, %v3858_v58  ;;  %v6779_v4 = vld [vmem:[%s7131_s11 + $0x78] sm:$0xff]  }
 0x104   : > { %v8373_v43 = vadd.f32 %v1170_v3, %v878_v13  ;;  %6535 = vmatprep.mubr.msk.bf16.mxu0 %vm756_vm3, %v6777_v48  ;;  %v3854_v6 = vsel %vm7159_vm4, %v3849_v39, %v3853_v38  ;;  %v3877_v54 = vrot.slane %v3875_v10, 5  ;;  %v3883_v27 = vshll.u32 %v5970_v25, 16  ;;  %v5973_v48 = vld [vmem:[%s7131_s11 + $0x84] sm:$0xf]  ;;  %v8393_v25 = vld [vmem:[%s7131_s11 + $0x88] sm:$0xf] }
 0x105   : > { %v1186_v47 = vpop.f32.mrf.mxu1  ;;  %v6001_v3 = vcombine.low %v3844_v34, %v3854_v6  ;;  %v3872_v18 = vor.u32 %v3871_v2, %v3867_v24  ;;  %v3889_v1 = vshll.u32 %v8371_v8, 16  ;;  %v3863_v20 = vrot.slane %v3862_v56, 4 }
 0x106   : > { %9554 = vst [vmem:[#allocation5_spill] sm:$0xff] %v8373_v43  ;;  %v3882_v14 = vrot.slane %v3880_v16, 4  ;;  %v3893_v5 = vshrl.u32 %v8371_v8, 16  ;;  %v3899_v38 = vshll.u32 %v8379_v28, 16  ;;  %v3885_v40 = vrot.slane %v3883_v27, 5 }
 0x107   : > { %v6333_v7 = vpop.f32.mrf.mxu0  ;;  %6569 = vmatprep.mubr.msk.bf16.mxu1 %vm756_vm3, %v6001_v3  ;;  %v3873_v11 = vrot.slane %v3872_v18, 4  ;;  %v3891_v12 = vrot.slane %v3889_v1, 5  ;;  %v3868_v39 = vsel %vm7159_vm4, %v3863_v20, %v3867_v24  ;;  %v3904_v2 = vshrl.u32 %v5973_v48, 16  ;;  %v8402_v16 = vld [vmem:[%s7131_s11 + $0x8c] sm:$0x1] }
 0x108   : > { %v8388_v58 = vadd.f32 %v6367_v0, %v6333_v7  ;;  %v3895_v10 = vrot.slane %v3893_v5, 4  ;;  %v3901_v34 = vrot.slane %v3899_v38, 5  ;;  %v3886_v56 = vor.u32 %v3885_v40, %v3882_v14  ;;  %v5976_v18 = vld [vmem:[%s7131_s11 + $0x90] sm:$0xf] }
 0x109   : > { %v891_v13 = vpop.f32.mrf.mxu0  ;;  %v6371_v55 = vpop.f32.mrf.mxu1  ;;  %v3878_v6 = vsel %vm7159_vm4, %v3873_v11, %v3877_v54  ;;  %v3907_v3 = vshll.u32 %v5973_v48, 16  ;;  %v3906_v20 = vrot.slane %v3904_v2, 4  ;;  %v3913_v5 = vshll.u32 %v8393_v25, 16 }
 0x10a   : > { %9555 = vst [vmem:[#allocation6_spill] sm:$0xff] %v8388_v58  ;;  %v8397_v0 = vadd.f32 %v1183_v35, %v891_v13  ;;  %v6002_v27 = vcombine.low %v3868_v39, %v3878_v6  ;;  %v3896_v7 = vor.u32 %v3895_v10, %v3891_v12  ;;  %v3887_v35 = vrot.slane %v3886_v56, 4  ;;  %v8418_v6 = vld [vmem:[%s7131_s11 + $0x94] sm:$0xf]  ;;  %v8421_v56 = vld [vmem:[%s7131_s11 + $0x98] sm:$0x1] }
 0x10b   : > { %6536 = vmatmul.mubr.msk.bf16.gmra.mxu0 %vm756_vm3, %v6778_v52  ;;  %v6334_v1 = vpop.f32.mrf.mxu0  ;;  %v1199_v24 = vpop.f32.mrf.mxu1  ;;  %v3909_v54 = vrot.slane %v3907_v3, 5  ;;  %v3917_v48 = vshrl.u32 %v8393_v25, 16  ;;  %v3915_v11 = vrot.slane %v3913_v5, 5  ;;  %v3923_v40 = vshll.u32 %v8402_v16, 16  ;;  %9559 = vst [vmem:[#allocation10_spill] sm:$0xff] %v8421_v56 }
 0x10c   : > { %9556 = vst [vmem:[#allocation7_spill] sm:$0xff] %v8397_v0  ;;  %v8407_v38 = vadd.f32 %v6368_v19, %v6334_v1  ;;  %6539 = vmatprep.mubr.msk.bf16.mxu0 %vm756_vm3, %v6779_v4  ;;  %6570 = vmatmul.mubr.msk.bf16.gmra.mxu1 %vm756_vm3, %v6002_v27  ;;  %v3897_v14 = vrot.slane %v3896_v7, 4  ;;  %v3928_v19 = vshrl.u32 %v5976_v18, 16  ;;  %v3892_v4 = vsel %vm7159_vm4, %v3887_v35, %v3891_v12  ;;  %v6780_v27 = vld [vmem:[%s7131_s11 + $0x84] sm:$0xff]  }
 0x10d   : > { %v894_v52 = vpop.f32.mrf.mxu0  ;;  %v6372_v13 = vpop.f32.mrf.mxu1  ;;  %v3910_v10 = vor.u32 %v3909_v54, %v3906_v20  ;;  %v3919_v2 = vrot.slane %v3917_v48, 4  ;;  %v3925_v7 = vrot.slane %v3923_v40, 5  ;;  %v6781_v48 = vld [vmem:[%s7131_s11 + $0x90] sm:$0xff]   ;;  %v3937_v43 = vshll.u32 %v8418_v6, 16 }
 0x10e   : > { %9557 = vst [vmem:[#allocation8_spill] sm:$0xff] %v8407_v38  ;;  %v8413_v39 = vadd.f32 %v1186_v47, %v894_v52  ;;  %v3902_v1 = vsel %vm7159_vm4, %v3897_v14, %v3901_v34  ;;  %v3930_v47 = vrot.slane %v3928_v19, 4  ;;  %v3931_v52 = vshll.u32 %v5976_v18, 16  ;;  %v8441_v19 = vld [vmem:[%s7131_s11 + $0xa0] sm:$0xf] }
 0x10f   : > { %v6337_v3 = vpop.f32.mrf.mxu0  ;;  %v8426_v5 = vpop.f32.mrf.mxu1  ;;  %v6003_v20 = vcombine.low %v3892_v4, %v3902_v1  ;;  %v3911_v35 = vrot.slane %v3910_v10, 4  ;;  %v3920_v54 = vor.u32 %v3919_v2, %v3915_v11  ;;  %v3941_v34 = vshrl.u32 %v8418_v6, 16  ;;  %9563 = vst [vmem:[#allocation14_spill] sm:$0xff] %v8441_v19 }
 0x110   : > { %9558 = vst [vmem:[#allocation9_spill] sm:$0xff] %v8413_v39  ;;  %9560 = vst [vmem:[#allocation11_spill] sm:$0xff] %v8426_v5  ;;  %v5979_v39 = vld [vmem:[%s7131_s11 + $0x9c] sm:$0xf]  ;;  %v8429_v12 = vadd.f32 %v6371_v55, %v6337_v3  ;;  %v3933_v58 = vrot.slane %v3931_v52, 5  ;;  %v3947_v14 = vshll.u32 %v8421_v56, 16 }
 0x111   : > { %v907_v38 = vpop.f32.mrf.mxu0  ;;  %v6375_v0 = vpop.f32.mrf.mxu1  ;;  %6573 = vmatprep.mubr.msk.bf16.mxu1 %vm756_vm3, %v6003_v20  ;;  %v3916_v55 = vsel %vm7159_vm4, %v3911_v35, %v3915_v11  ;;  %v3921_v40 = vrot.slane %v3920_v54, 4  ;;  %v3952_v4 = vshrl.u32 %v5979_v39, 16  ;;  %v3939_v3 = vrot.slane %v3937_v43, 5 }
 0x112   : > { %9561 = vst [vmem:[#allocation12_spill] sm:$0xff] %v8429_v12  ;;  %v8436_v18 = vadd.f32 %v1199_v24, %v907_v38  ;;  %v3934_v2 = vor.u32 %v3933_v58, %v3930_v47  ;;  %v3943_v1 = vrot.slane %v3941_v34, 4  ;;  %v3949_v52 = vrot.slane %v3947_v14, 5  ;;  %v8445_v12 = vld [vmem:[%s7131_s11 + $0xa4] sm:$0x1] }
 0x113   : > { %6540 = vmatmul.mubr.msk.bf16.gmra.mxu0 %vm756_vm3, %v6780_v27  ;;  %v6338_v10 = vpop.f32.mrf.mxu0  ;;  %v1215_v5 = vpop.f32.mrf.mxu1  ;;  %9564 = vst [vmem:[#allocation15_spill] sm:$0xff] %v8445_v12  ;;  %v3926_v24 = vsel %vm7159_vm4, %v3921_v40, %v3925_v7  ;;  %v3954_v11 = vrot.slane %v3952_v4, 4  ;;  %v3955_v20 = vshll.u32 %v5979_v39, 16  ;;  %v5982_v27 = vld [vmem:[%s7131_s11 + $0xa8] sm:$0xf]  ;;  %v3961_v54 = vshll.u32 %v8441_v19, 16 }
 0x114   : > { %9562 = vst [vmem:[#allocation13_spill] sm:$0xff] %v8436_v18  ;;  %v8449_v38 = vadd.f32 %v6372_v13, %v6338_v10  ;;  %6543 = vmatprep.mubr.msk.bf16.mxu0 %vm756_vm3, %v6781_v48  ;;  %v6004_v35 = vcombine.low %v3916_v55, %v3926_v24  ;;  %v3935_v43 = vrot.slane %v3934_v2, 4  ;;  %v3944_v47 = vor.u32 %v3943_v1, %v3939_v3  ;;  %v8459_v40 = vld [vmem:[%s7131_s11 + $0xac] sm:$0xf]  ;;  %v6782_v39 = vld [vmem:[%s7131_s11 + $0x9c] sm:$0xff]  }
 0x115   : > { %v8453_v58 = vpop.f32.mrf.mxu0  ;;  %v6376_v34 = vpop.f32.mrf.mxu1  ;;  %v3957_v14 = vrot.slane %v3955_v20, 5  ;;  %v3965_v13 = vshrl.u32 %v8441_v19, 16  ;;  %v3971_v7 = vshll.u32 %v8445_v12, 16  ;;  %9567 = vst [vmem:[#allocation18_spill] sm:$0xff] %v8459_v40  ;;  %v3963_v4 = vrot.slane %v3961_v54, 5 }
 0x116   : > { %9565 = vst [vmem:[#allocation16_spill] sm:$0xff] %v8449_v38  ;;  %9566 = vst [vmem:[#allocation17_spill] sm:$0xff] %v8453_v58  ;;  %6574 = vmatmul.mubr.msk.bf16.gmra.mxu1 %vm756_vm3, %v6004_v35  ;;  %v3940_v48 = vsel %vm7159_vm4, %v3935_v43, %v3939_v3  ;;  %v3945_v55 = vrot.slane %v3944_v47, 4  ;;  %v3976_v2 = vshrl.u32 %v5982_v27, 16  ;;  %v6783_v38 = vld [vmem:[%s7131_s11 + $0xa8] sm:$0xff]   ;;  %v3979_v18 = vshll.u32 %v5982_v27, 16 }
 0x117   : > { %v8465_v10 = vpop.f32.mrf.mxu1  ;;  %v3958_v1 = vor.u32 %v3957_v14, %v3954_v11  ;;  %v3967_v24 = vrot.slane %v3965_v13, 4  ;;  %v3973_v20 = vrot.slane %v3971_v7, 5  ;;  %v8469_v58 = vld [vmem:[%s7131_s11 + $0xb0] sm:$0x1]  ;;  %v3985_v3 = vshll.u32 %v8459_v40, 16 }
 0x118   : > { %9568 = vst [vmem:[#allocation19_spill] sm:$0xff] %v8465_v10  ;;  %9569 = vst [vmem:[#allocation20_spill] sm:$0xff] %v8469_v58  ;;  %v3950_v35 = vsel %vm7159_vm4, %v3945_v55, %v3949_v52  ;;  %v3978_v19 = vrot.slane %v3976_v2, 4  ;;  %v3989_v43 = vshrl.u32 %v8459_v40, 16  ;;  %v5985_v47 = vld [vmem:[%s7131_s11 + $0xb4] sm:$0xf] }
 0x119   : > { %v6341_v12 = vpop.f32.mrf.mxu0  ;;  %v6005_v11 = vcombine.low %v3940_v48, %v3950_v35  ;;  %v3959_v14 = vrot.slane %v3958_v1, 4  ;;  %v3968_v13 = vor.u32 %v3967_v24, %v3963_v4  ;;  %v3981_v10 = vrot.slane %v3979_v18, 5  ;;  %v8481_v2 = vld [vmem:[%s7131_s11 + $0xb8] sm:$0xf] }
 0x11a   : > { %v8476_v54 = vadd.f32 %v6375_v0, %v6341_v12  ;;  %v3987_v56 = vrot.slane %v3985_v3, 5  ;;  %v3991_v52 = vrot.slane %v3989_v43, 4  ;;  %v3995_v55 = vshll.u32 %v8469_v58, 16  ;;  %9571 = vst [vmem:[#allocation22_spill] sm:$0xff] %v8481_v2  ;;  %v8490_v3 = vld [vmem:[%s7131_s11 + $0xbc] sm:$0x1] }
 0x11b   : > { %6544 = vmatmul.mubr.msk.bf16.gmra.mxu0 %vm756_vm3, %v6782_v39  ;;  %v923_v7 = vpop.f32.mrf.mxu0  ;;  %v6379_v27 = vpop.f32.mrf.mxu1  ;;  %6577 = vmatprep.mubr.msk.bf16.mxu1 %vm756_vm3, %v6005_v11  ;;  %v3964_v0 = vsel %vm7159_vm4, %v3959_v14, %v3963_v4  ;;  %v3969_v12 = vrot.slane %v3968_v13, 4  ;;  %v4000_v18 = vshrl.u32 %v5985_v47, 16  ;;  %v3982_v48 = vor.u32 %v3981_v10, %v3978_v19  ;;  %9573 = vst [vmem:[#allocation24_spill] sm:$0xff] %v8490_v3  ;;  %v5988_v14 = vld [vmem:[%s7131_s11 + $0xc0] sm:$0xf]  ;;  %v6784_v19 = vld [vmem:[%s7131_s11 + $0xb4] sm:$0xff]  }
 0x11c   : > { %9570 = vst [vmem:[#allocation21_spill] sm:$0xff] %v8476_v54  ;;  %v8484_v40 = vadd.f32 %v1215_v5, %v923_v7  ;;  %6547 = vmatprep.mubr.msk.bf16.mxu0 %vm756_vm3, %v6783_v38  ;;  %v3992_v1 = vor.u32 %v3991_v52, %v3987_v56  ;;  %v3997_v24 = vrot.slane %v3995_v55, 5  ;;  %v4003_v43 = vshll.u32 %v5985_v47, 16  ;;  %v6785_v47 = vld [vmem:[%s7131_s11 + $0xc0] sm:$0xff]  }
 0x11d   : > { %v6342_v39 = vpop.f32.mrf.mxu0  ;;  %v1231_v35 = vpop.f32.mrf.mxu1  ;;  %v3974_v5 = vsel %vm7159_vm4, %v3969_v12, %v3973_v20  ;;  %v4002_v4 = vrot.slane %v4000_v18, 4  ;;  %v4009_v38 = vshll.u32 %v8481_v2, 16  ;;  %v3983_v10 = vrot.slane %v3982_v48, 4  ;;  %v8506_v18 = vld [vmem:[%s7131_s11 + $0xc4] sm:$0xf] }
 0x11e   : > { %9572 = vst [vmem:[#allocation23_spill] sm:$0xff] %v8484_v40  ;;  %v8494_v11 = vadd.f32 %v6376_v34, %v6342_v39  ;;  %v6006_v13 = vcombine.low %v3964_v0, %v3974_v5  ;;  %v3993_v52 = vrot.slane %v3992_v1, 4  ;;  %v4005_v55 = vrot.slane %v4003_v43, 5  ;;  %9576 = vst [vmem:[#allocation27_spill] sm:$0xff] %v8506_v18  ;;  %v8516_v5 = vld [vmem:[%s7131_s11 + $0xc8] sm:$0x1] }
 0x11f   : > { %v8498_v7 = vpop.f32.mrf.mxu0  ;;  %v6380_v40 = vpop.f32.mrf.mxu1  ;;  %v4011_v20 = vrot.slane %v4009_v38, 5  ;;  %v4013_v34 = vshrl.u32 %v8481_v2, 16  ;;  %v4019_v12 = vshll.u32 %v8490_v3, 16  ;;  %v3988_v39 = vsel %vm7159_vm4, %v3983_v10, %v3987_v56  ;;  %9578 = vst [vmem:[#allocation29_spill] sm:$0xff] %v8516_v5 }
 0x120   : > { %9574 = vst [vmem:[#allocation25_spill] sm:$0xff] %v8494_v11  ;;  %9575 = vst [vmem:[#allocation26_spill] sm:$0xff] %v8498_v7  ;;  %6578 = vmatmul.mubr.msk.bf16.gmra.mxu1 %vm756_vm3, %v6006_v13  ;;  %v3998_v48 = vsel %vm7159_vm4, %v3993_v52, %v3997_v24  ;;  %v4006_v1 = vor.u32 %v4005_v55, %v4002_v4  ;;  %v4024_v38 = vshrl.u32 %v5988_v14, 16  ;;  %v5991_v13 = vld [vmem:[%s7131_s11 + $0xcc] sm:$0xf]  ;;  %v4027_v24 = vshll.u32 %v5988_v14, 16 }
 0x121   : > { %v6345_v0 = vpop.f32.mrf.mxu0  ;;  %v8513_v43 = vpop.f32.mrf.mxu1  ;;  %v6007_v11 = vcombine.low %v3988_v39, %v3998_v48  ;;  %v4015_v7 = vrot.slane %v4013_v34, 4  ;;  %v4021_v3 = vrot.slane %v4019_v12, 5  ;;  %v4033_v4 = vshll.u32 %v8506_v18, 16  ;;  %v8530_v34 = vld [vmem:[%s7131_s11 + $0xd0] sm:$0xf] }
 0x122   : > { %9577 = vst [vmem:[#allocation28_spill] sm:$0xff] %v8513_v43  ;;  %v8518_v54 = vadd.f32 %v6379_v27, %v6345_v0  ;;  %v4007_v56 = vrot.slane %v4006_v1, 4  ;;  %v4026_v58 = vrot.slane %v4024_v38, 4  ;;  %v4037_v55 = vshrl.u32 %v8506_v18, 16  ;;  %v8538_v1 = vld [vmem:[%s7131_s11 + $0xd4] sm:$0x1] }
 0x123   : > { %6548 = vmatmul.mubr.msk.bf16.gmra.mxu0 %vm756_vm3, %v6784_v19  ;;  %v939_v2 = vpop.f32.mrf.mxu0  ;;  %v6383_v10 = vpop.f32.mrf.mxu1  ;;  %6581 = vmatprep.mubr.msk.bf16.mxu1 %vm756_vm3, %v6007_v11  ;;  %v4016_v27 = vor.u32 %v4015_v7, %v4011_v20  ;;  %v4043_v19 = vshll.u32 %v8516_v5, 16  ;;  %v4029_v0 = vrot.slane %v4027_v24, 5  ;;  %v4035_v39 = vrot.slane %v4033_v4, 5  ;;  %v6786_v43 = vld [vmem:[%s7131_s11 + $0xcc] sm:$0xff]   ;;  %v6027_v5 = vld [vmem:[%s7131_s11 + $0x18] sm:$0xe] }
 0x124   : > { %9579 = vst [vmem:[#allocation30_spill] sm:$0xff] %v8518_v54  ;;  %v8524_v52 = vadd.f32 %v1231_v35, %v939_v2  ;;  %6551 = vmatprep.mubr.msk.bf16.mxu0 %vm756_vm3, %v6785_v47  ;;  %v4048_v2 = vshrl.u32 %v5991_v13, 16  ;;  %v4012_v35 = vsel %vm7159_vm4, %v4007_v56, %v4011_v20  ;;  %v4039_v48 = vrot.slane %v4037_v55, 4 }
 0x125   : > { %v6346_v14 = vpop.f32.mrf.mxu0  ;;  %v1247_v11 = vpop.f32.mrf.mxu1  ;;  %v4017_v7 = vrot.slane %v4016_v27, 4  ;;  %v4051_v54 = vshll.u32 %v5991_v13, 16  ;;  %v4057_v24 = vshll.u32 %v8530_v34, 16  ;;  %v4045_v56 = vrot.slane %v4043_v19, 5 }
 0x126   : > { %9580 = vst [vmem:[#allocation31_spill] sm:$0xff] %v8524_v52  ;;  %v8535_v47 = vadd.f32 %v6380_v40, %v6346_v14  ;;  %v4030_v52 = vor.u32 %v4029_v0, %v4026_v58  ;;  %v4050_v12 = vrot.slane %v4048_v2, 4  ;;  %v4040_v20 = vor.u32 %v4039_v48, %v4035_v39 }
 0x127   : > { %v8540_v38 = vpop.f32.mrf.mxu0  ;;  %v6384_v4 = vpop.f32.mrf.mxu1  ;;  %v4022_v18 = vsel %vm7159_vm4, %v4017_v7, %v4021_v3  ;;  %v4061_v40 = vshrl.u32 %v8530_v34, 16  ;;  %v4053_v14 = vrot.slane %v4051_v54, 5  ;;  %v4067_v0 = vshll.u32 %v8538_v1, 16 }
 0x128   : > { %9581 = vst [vmem:[#allocation32_spill] sm:$0xff] %v8535_v47  ;;  %9582 = vst [vmem:[#allocation33_spill] sm:$0xff] %v8540_v38  ;;  %v6008_v27 = vcombine.low %v4012_v35, %v4022_v18  ;;  %v4031_v55 = vrot.slane %v4030_v52, 4  ;;  %v4059_v47 = vrot.slane %v4057_v24, 5  ;;  %v4041_v58 = vrot.slane %v4040_v20, 4 }
 0x129   : > { %v8548_v38 = vpop.f32.mrf.mxu1  ;;  %v4063_v13 = vrot.slane %v4061_v40, 4  ;;  %v6043_v2 = vrot.slane %v6027_v5, 9  ;;  %v4054_v19 = vor.u32 %v4053_v14, %v4050_v12  ;;  %v4431_v54 = vrot.slane %v8209_v46, 5  ;;  %v6028_v35 = vld [vmem:[%s7131_s11 + $0x24] sm:$0xe] }
 0x12a   : > { %9583 = vst [vmem:[#allocation34_spill] sm:$0xff] %v8548_v38  ;;  %6582 = vmatmul.mubr.msk.bf16.gmra.mxu1 %vm756_vm3, %v6008_v27  ;;  %v4036_v18 = vsel %vm7159_vm4, %v4031_v55, %v4035_v39  ;;  %v4434_v52 = vrot.slane %v8214_v33, 5  ;;  %v4046_v5 = vsel %vm7159_vm4, %v4041_v58, %v4045_v56  ;;  %v4069_v20 = vrot.slane %v4067_v0, 5  ;;  %v6029_v40 = vld [vmem:[%s7131_s11 + $0x30] sm:$0xe] }
 0x12b   : > { %v6349_v3 = vpop.f32.mrf.mxu0  ;;  %6552 = vmatmul.mubr.msk.bf16.gmra.mxu0 %vm756_vm3, %v6786_v43  ;;  %v6423_v7 = vpop.f32.mrf.mxu1  ;;  %v4064_v24 = vor.u32 %v4063_v13, %v4059_v47  ;;  %v6009_v27 = vcombine.low %v4036_v18, %v4046_v5  ;;  %v4055_v38 = vrot.slane %v4054_v19, 4  ;;  %v4432_v12 = vsel %vm7421_vm7, %v6043_v2, %v4431_v54  ;;  %v6030_v18 = vld [vmem:[%s7131_s11 + $0x3c] sm:$0xe] }
 0x12c   : > { %v8558_v48 = vadd.f32 %v6383_v10, %v6349_v3  ;;  %v4433_v46 = vrot.slane %v4431_v54, 4  ;;  %v6044_v55 = vrot.slane %v6028_v35, 9  ;;  %v9584_v14 = vrot.slane %v8229_v29, 5 }
 0x12d   : > { %v955_v43 = vpop.f32.mrf.mxu0  ;;  %v1922_v39 = vpop.f32.mrf.mxu1  ;;  %v4065_v10 = vrot.slane %v4064_v24, 4  ;;  %6585 = vmatprep.mubr.msk.bf16.mxu1 %vm756_vm3, %v6009_v27  ;;  %v4060_v58 = vsel %vm7159_vm4, %v4055_v38, %v4059_v47  ;;  %v4445_v3 = vrot.slane %v8243_v44, 5  ;;  %v6031_v38 = vld [vmem:[%s7131_s11 + $0x48] sm:$0xe]  ;;  %v9586_v44 = vrot.slane %v8233_v49, 5 }
 0x12e   : > { %v8565_v33 = vadd.f32 %v1247_v11, %v955_v43  ;;  %v4440_v56 = vrot.slane %v9584_v14, 4  ;;  %v4435_v0 = vsel %vm7421_vm7, %v4433_v46, %v4434_v52  ;;  %v6045_v11 = vrot.slane %v6029_v40, 9  ;;  %v6032_v40 = vld [vmem:[%s7131_s11 + $0x54] sm:$0xe] }
 0x12f   : > { %v6350_v13 = vpop.f32.mrf.mxu0  ;;  %v8574_v2 = vpop.f32.mrf.mxu1  ;;  %v4070_v19 = vsel %vm7159_vm4, %v4065_v10, %v4069_v20  ;;  %v6060_v35 = vcombine.low %v4432_v12, %v4435_v0  ;;  %v9585_v5 = vmov %v9584_v14  ;;  %v4455_v52 = vrot.slane %v8270_v23, 5 }
 0x130   : > { %v8580_v54 = vadd.f32 %v6384_v4, %v6350_v13  ;;  %v4439_v47 = vsel %vm7421_vm7, %v6044_v55, %v9585_v5  ;;  %v6010_v24 = vcombine.low %v4060_v58, %v4070_v19  ;;  %v4442_v36 = vsel %vm7421_vm7, %v4440_v56, %v9586_v44 }
 0x131   : > { %v8588_v27 = vpop.f32.mrf.mxu0  ;;  %v4447_v20 = vrot.slane %v4445_v3, 4  ;;  %v8594_v4 = vpop.f32.mrf.mxu1  ;;  %6591 = vmatprep.mubr.msk.bf16.mxu0 %vm756_vm3, %v6060_v35  ;;  %v6061_v29 = vcombine.low %v4439_v47, %v4442_v36  ;;  %v4446_v43 = vsel %vm7421_vm7, %v6045_v11, %v4445_v3  ;;  %v4448_v23 = vrot.slane %v8249_v22, 5  ;;  %v6033_v47 = vld [vmem:[%s7131_s11 + $0x60] sm:$0xe] }
 0x132   : > { %v6046_v12 = vrot.slane %v6030_v18, 9  ;;  %6586 = vmatmul.mubr.msk.bf16.gmra.mxu1 %vm756_vm3, %v6010_v24  ;;  %v4452_v49 = vrot.slane %v8261_v50, 5  ;;  %v6047_v55 = vrot.slane %v6031_v38, 9  ;;  %v4459_v14 = vrot.slane %v8288_v31, 5 }
 0x133   : > { %v6389_v46 = vpop.f32.mrf.mxu0  ;;  %v6427_v10 = vpop.f32.mrf.mxu1  ;;  %v4462_v56 = vrot.slane %v8293_v26, 5  ;;  %6592 = vmatmul.mubr.msk.bf16.vlgmr.msra.gmra.mxu0 %vm756_vm3, %v6061_v29  ;;  %v4449_v22 = vsel %vm7421_vm7, %v4447_v20, %v4448_v23  ;;  %v6048_v13 = vrot.slane %v6032_v40, 9  ;;  %v4466_v0 = vrot.slane %v8304_v45, 5  ;;  %v6034_v29 = vld [vmem:[%s7131_s11 + $0x6c] sm:$0xe] }
 0x134   : > { %v1689_v58 = vadd.f32 %v6389_v46, %v8264_v51  ;;  %v4469_v11 = vrot.slane %v8312_v59, 5  ;;  %v6062_v3 = vcombine.low %v4446_v43, %v4449_v22  ;;  %v4453_v31 = vsel %vm7421_vm7, %v6046_v12, %v4452_v49 }
 0x135   : > { %v1560_v50 = vpop.f32.mrf.mxu0  ;;  %v4454_v18 = vrot.slane %v4452_v49, 4  ;;  %v1938_v26 = vpop.f32.mrf.mxu1  ;;  %v4460_v35 = vsel %vm7421_vm7, %v6047_v55, %v4459_v14  ;;  %v4461_v5 = vrot.slane %v4459_v14, 4  ;;  %v4467_v24 = vsel %vm7421_vm7, %v6048_v13, %v4466_v0 }
 0x136   : > { %v1687_v19 = vadd.f32 %v1560_v50, %v8273_v21  ;;  %v8614_v51 = vadd.f32 %v6423_v7, %v1689_v58  ;;  %6595 = vmatprep.mubr.msk.bf16.mxu0 %vm756_vm3, %v6062_v3  ;;  %v4468_v44 = vrot.slane %v4466_v0, 4  ;;  %v4473_v21 = vrot.slane %v8330_v9, 5 }
 0x137   : > { %v6390_v45 = vpop.f32.mrf.mxu0  ;;  %v4456_v59 = vsel %vm7421_vm7, %v4454_v18, %v4455_v52  ;;  %v6428_v38 = vpop.f32.mrf.mxu1  ;;  %v4463_v40 = vsel %vm7421_vm7, %v4461_v5, %v4462_v56  ;;  %v6049_v46 = vrot.slane %v6033_v47, 9  ;;  %v4476_v55 = vrot.slane %v8336_v53, 5 }
 0x138   : > { %v1690_v7 = vadd.f32 %v6390_v45, %v8282_v41  ;;  %v8626_v36 = vadd.f32 %v1922_v39, %v1687_v19  ;;  %v6063_v20 = vcombine.low %v4453_v31, %v4456_v59  ;;  %v6064_v23 = vcombine.low %v4460_v35, %v4463_v40  ;;  %v6787_v40 = vld [vmem:[%s9535_s3 + $0x38] sm:$0xff]  }
 0x139   : > { %v1563_v43 = vpop.f32.mrf.mxu0  ;;  %v8631_v12 = vpop.f32.mrf.mxu1  ;;  %v4470_v52 = vsel %vm7421_vm7, %v4468_v44, %v4469_v11  ;;  %v4475_v49 = vrot.slane %v4473_v21, 4  ;;  %v4483_v14 = vrot.slane %v8360_v42, 5  ;;  %v6050_v22 = vrot.slane %v6034_v29, 9  ;;  %6623 = vmatprep.subr.bf16.mxu1 %v6787_v40 }
 0x13a   : > { %v8636_v9 = vadd.f32 %v1563_v43, %v8296_v63  ;;  %v8639_v41 = vadd.f32 %v8574_v2, %v1690_v7  ;;  %v6065_v39 = vcombine.low %v4467_v24, %v4470_v52  ;;  %v4480_v13 = vrot.slane %v8352_v15, 5  ;;  %v6035_v15 = vld [vmem:[%s7131_s11 + $0x78] sm:$0xe]  ;;  %v6036_v43 = vld [vmem:[%s7131_s11 + $0x84] sm:$0xe]  ;;  %6624 = vmatpush3.bf16.msra.mxu1 %v6787_v40 }
 0x13b   : > { %v6393_v56 = vpop.f32.mrf.mxu0  ;;  %v6431_v58 = vpop.f32.mrf.mxu1  ;;  %6596 = vmatmul.mubr.msk.bf16.gmra.mxu0 %vm756_vm3, %v6063_v20  ;;  %v4474_v11 = vsel %vm7421_vm7, %v6049_v46, %v4473_v21  ;;  %v4487_v31 = vrot.slane %v8371_v8, 5  ;;  %v6051_v24 = vrot.slane %v6035_v15, 9  ;;  %v4490_v7 = vrot.slane %v8379_v28, 5  ;;  %v6037_v46 = vld [vmem:[%s7131_s11 + $0x90] sm:$0xe]  ;;  %v9589_v15 = vld [vmem:[#allocation6_spill] sm:$0xff] }
 0x13c   : > { %v1693_v0 = vadd.f32 %v6393_v56, %v8309_v60  ;;  %6599 = vmatprep.mubr.msk.bf16.mxu0 %vm756_vm3, %v6064_v23  ;;  %v4481_v53 = vsel %vm7421_vm7, %v6050_v22, %v4480_v13  ;;  %v4482_v42 = vrot.slane %v4480_v13, 4  ;;  %v4477_v60 = vsel %vm7421_vm7, %v4475_v49, %v4476_v55  ;;  %v6039_v40 = vld [vmem:[%s7131_s11 + $0xa8] sm:$0xe] }
 0x13d   : > { %v1576_v63 = vpop.f32.mrf.mxu0  ;;  %v1954_v2 = vpop.f32.mrf.mxu1  ;;  %v4489_v21 = vrot.slane %v4487_v31, 4  ;;  %v4494_v28 = vrot.slane %v8393_v25, 5  ;;  %v4501_v49 = vrot.slane %v8418_v6, 5  ;;  %v6052_v22 = vrot.slane %v6036_v43, 9 }
 0x13e   : > { %v1691_v50 = vadd.f32 %v1576_v63, %v8318_v17  ;;  %v8652_v3 = vadd.f32 %v6427_v10, %v1693_v0  ;;  %v4484_v35 = vsel %vm7421_vm7, %v4482_v42, %v4483_v14  ;;  %v6066_v17 = vcombine.low %v4474_v11, %v4477_v60  ;;  %v9587_v11 = vld [vmem:[#allocation5_spill] sm:$0xff] }
 0x13f   : > { %v6394_v18 = vpop.f32.mrf.mxu0  ;;  %v6432_v19 = vpop.f32.mrf.mxu1  ;;  %v6067_v45 = vcombine.low %v4481_v53, %v4484_v35  ;;  %v4497_v0 = vrot.slane %v8402_v16, 5  ;;  %v6053_v63 = vrot.slane %v6037_v46, 9  ;;  %v4503_v42 = vrot.slane %v4501_v49, 4  ;;  %v6788_v16 = vld [vmem:[%s9535_s3 + $0x30] sm:$0xff]  }
 0x140   : > { %v1694_v5 = vadd.f32 %v6394_v18, %v8325_v62  ;;  %v8661_v47 = vadd.f32 %v1938_v26, %v1691_v50  ;;  %v9588_v50 = vld [vmem:[#allocation10_spill] sm:$0xff]  ;;  %6625 = vmatprep.subr.bf16.mxu1 %v6788_v16 }
 0x141   : > { %v1579_v59 = vpop.f32.mrf.mxu0  ;;  %v8663_v10 = vpop.f32.mrf.mxu1  ;;  %6626 = vmatpush3.bf16.msra.mxu1 %v6788_v16 }
 0x142   : > { %v8666_v44 = vadd.f32 %v1579_v59, %v8338_v32  ;;  %v8668_v8 = vadd.f32 %v6428_v38, %v1694_v5  ;;  %v4488_v38 = vsel %vm7421_vm7, %v6051_v24, %v4487_v31  ;;  %v4502_v59 = vsel %vm7421_vm7, %v6053_v63, %v4501_v49  ;;  %v9590_v24 = vld [vmem:[#allocation14_spill] sm:$0xff]  ;;  %v9595_v63 = vld [vmem:[#allocation9_spill] sm:$0xff] }
 0x143   : > { %v6397_v20 = vpop.f32.mrf.mxu0  ;;  %v6435_v62 = vpop.f32.mrf.mxu1  ;;  %6600 = vmatmul.mubr.msk.bf16.gmra.mxu0 %vm756_vm3, %v6065_v39 }
 0x144   : > { %v1697_v26 = vadd.f32 %v6397_v20, %v8344_v61  ;;  %6603 = vmatprep.mubr.msk.bf16.mxu0 %vm756_vm3, %v6066_v17  ;;  %v4491_v61 = vsel %vm7421_vm7, %v4489_v21, %v4490_v7  ;;  %v6038_v17 = vld [vmem:[%s7131_s11 + $0x9c] sm:$0xe]  ;;  %v9591_v21 = vld [vmem:[#allocation7_spill] sm:$0xff] }
 0x145   : > { %v1592_v29 = vpop.f32.mrf.mxu0  ;;  %v1970_v32 = vpop.f32.mrf.mxu1  ;;  %v6068_v13 = vcombine.low %v4488_v38, %v4491_v61 }
 0x146   : > { %v1695_v23 = vadd.f32 %v1592_v29, %v8354_v57  ;;  %v8682_v52 = vadd.f32 %v6431_v58, %v1697_v26  ;;  %v4496_v58 = vrot.slane %v4494_v28, 4  ;;  %v9592_v29 = vld [vmem:[#allocation18_spill] sm:$0xff] }
 0x147   : > { %v6398_v39 = vpop.f32.mrf.mxu0  ;;  %v6436_v55 = vpop.f32.mrf.mxu1  ;;  %v4515_v38 = vrot.slane %v9592_v29, 5 }
 0x148   : > { %v1698_v14 = vadd.f32 %v6398_v39, %v8362_v30  ;;  %v8689_v56 = vadd.f32 %v1954_v2, %v1695_v23  ;;  %v4504_v30 = vrot.slane %v9588_v50, 5  ;;  %v4498_v35 = vsel %vm7421_vm7, %v4496_v58, %v4497_v0  ;;  %v9593_v23 = vld [vmem:[#allocation8_spill] sm:$0xff] }
 0x149   : > { %v1595_v25 = vpop.f32.mrf.mxu0  ;;  %v8691_v57 = vpop.f32.mrf.mxu1  ;;  %v6054_v39 = vrot.slane %v6038_v17, 9  ;;  %v6055_v0 = vrot.slane %v6039_v40, 9  ;;  %v4517_v50 = vrot.slane %v4515_v38, 4 }
 0x14a   : > { %v8695_v6 = vadd.f32 %v1595_v25, %v9587_v11  ;;  %v8697_v53 = vadd.f32 %v6432_v19, %v1698_v14  ;;  %v4495_v19 = vsel %vm7421_vm7, %v6052_v22, %v4494_v28  ;;  %v4505_v26 = vsel %vm7421_vm7, %v4503_v42, %v4504_v30  ;;  %v9596_v30 = vld [vmem:[#allocation20_spill] sm:$0xff] }
 0x14b   : > { %v6401_v2 = vpop.f32.mrf.mxu0  ;;  %v6439_v60 = vpop.f32.mrf.mxu1  ;;  %6604 = vmatmul.mubr.msk.bf16.gmra.mxu0 %vm756_vm3, %v6067_v45  ;;  %v4508_v45 = vrot.slane %v9590_v24, 5  ;;  %v6069_v49 = vcombine.low %v4495_v19, %v4498_v35  ;;  %v6070_v22 = vcombine.low %v4502_v59, %v4505_v26  ;;  %v4516_v17 = vsel %vm7421_vm7, %v6055_v0, %v4515_v38  ;;  %v6040_v24 = vld [vmem:[%s7131_s11 + $0xb4] sm:$0xe]  ;;  %v9599_v26 = vld [vmem:[#allocation13_spill] sm:$0xff]  ;;  %v9603_v38 = vld [vmem:[#allocation16_spill] sm:$0xff] }
 0x14c   : > { %v1701_v31 = vadd.f32 %v6401_v2, %v9589_v15  ;;  %6607 = vmatprep.mubr.msk.bf16.mxu0 %vm756_vm3, %v6068_v13  ;;  %v9594_v13 = vld [vmem:[#allocation15_spill] sm:$0xff]  ;;  %v4518_v2 = vrot.slane %v9596_v30, 5 }
 0x14d   : > { %v1608_v18 = vpop.f32.mrf.mxu0  ;;  %v1986_v5 = vpop.f32.mrf.mxu1  ;;  %v4510_v25 = vrot.slane %v4508_v45, 4  ;;  %v4511_v58 = vrot.slane %v9594_v13, 5 }
 0x14e   : > { %v1699_v7 = vadd.f32 %v1608_v18, %v9591_v21  ;;  %v8715_v20 = vadd.f32 %v6435_v62, %v1701_v31  ;;  %v9597_v31 = vld [vmem:[#allocation12_spill] sm:$0xff]  ;;  %v6789_v18 = vld [vmem:[%s9535_s3 + $0x28] sm:$0xff]  }
 0x14f   : > { %v6402_v43 = vpop.f32.mrf.mxu0  ;;  %v6440_v28 = vpop.f32.mrf.mxu1  ;;  %v4512_v35 = vsel %vm7421_vm7, %v4510_v25, %v4511_v58  ;;  %v9598_v21 = vld [vmem:[#allocation22_spill] sm:$0xff]  ;;  %6627 = vmatprep.subr.bf16.mxu1 %v6789_v18 }
 0x150   : > { %v1702_v61 = vadd.f32 %v6402_v43, %v9593_v23  ;;  %v8722_v46 = vadd.f32 %v1970_v32, %v1699_v7  ;;  %v4522_v7 = vrot.slane %v9598_v21, 5  ;;  %v4519_v43 = vsel %vm7421_vm7, %v4517_v50, %v4518_v2  ;;  %v6041_v23 = vld [vmem:[%s7131_s11 + $0xc0] sm:$0xe]  ;;  %6628 = vmatpush3.bf16.msra.mxu1 %v6789_v18  ;;  %v9604_v2 = vld [vmem:[#allocation24_spill] sm:$0xff] }
 0x151   : > { %v1611_v14 = vpop.f32.mrf.mxu0  ;;  %v1989_v62 = vpop.f32.mrf.mxu1  ;;  %v6072_v30 = vcombine.low %v4516_v17, %v4519_v43  ;;  %v4536_v43 = vrot.slane %v8530_v34, 5 }
 0x152   : > { %v8726_v11 = vadd.f32 %v1611_v14, %v9595_v63  ;;  %v8728_v42 = vadd.f32 %v6436_v55, %v1702_v61  ;;  %v4509_v55 = vsel %vm7421_vm7, %v6054_v39, %v4508_v45  ;;  %v9600_v61 = vld [vmem:[#allocation27_spill] sm:$0xff]  ;;  %v4524_v50 = vrot.slane %v4522_v7, 4 }
 0x153   : > { %v6405_v32 = vpop.f32.mrf.mxu0  ;;  %v6443_v15 = vpop.f32.mrf.mxu1  ;;  %6608 = vmatmul.mubr.msk.bf16.gmra.mxu0 %vm756_vm3, %v6069_v49  ;;  %v4529_v45 = vrot.slane %v9600_v61, 5  ;;  %v9601_v49 = vld [vmem:[#allocation17_spill] sm:$0xff]  ;;  %v9602_v39 = vld [vmem:[#allocation11_spill] sm:$0xff]  ;;  %v6071_v0 = vcombine.low %v4509_v55, %v4512_v35 }
 0x154   : > { %v1705_v16 = vadd.f32 %v6405_v32, %v9597_v31  ;;  %6611 = vmatprep.mubr.msk.bf16.mxu0 %vm756_vm3, %v6070_v22  ;;  %v1203_v14 = vadd.f32 %v9602_v39, %v9601_v49  ;;  %v4525_v31 = vrot.slane %v9604_v2, 5  ;;  %v9605_v61 = vld [vmem:[#allocation29_spill] sm:$0xff] }
 0x155   : > { %v1624_v19 = vpop.f32.mrf.mxu0  ;;  %v2002_v59 = vpop.f32.mrf.mxu1  ;;  %v4532_v49 = vrot.slane %v9605_v61, 5  ;;  %v4538_v61 = vrot.slane %v4536_v43, 4 }
 0x156   : > { %v1703_v40 = vadd.f32 %v1624_v19, %v9599_v26  ;;  %v8746_v29 = vadd.f32 %v6439_v60, %v1705_v16  ;;  %v6056_v60 = vrot.slane %v6040_v24, 9  ;;  %v6057_v16 = vrot.slane %v6041_v23, 9  ;;  %v9607_v23 = vld [vmem:[#allocation23_spill] sm:$0xff] }
 0x157   : > { %v6406_v22 = vpop.f32.mrf.mxu0  ;;  %v6444_v25 = vpop.f32.mrf.mxu1  ;;  %v4531_v26 = vrot.slane %v4529_v45, 4 }
 0x158   : > { %v1706_v13 = vadd.f32 %v6406_v22, %v9603_v38  ;;  %v8755_v58 = vadd.f32 %v1986_v5, %v1703_v40  ;;  %v9606_v5 = vld [vmem:[#allocation21_spill] sm:$0xff]  ;;  %v4523_v17 = vsel %vm7421_vm7, %v6056_v60, %v4522_v7 }
 0x159   : > { %v1627_v63 = vpop.f32.mrf.mxu0  ;;  %v2005_v32 = vpop.f32.mrf.mxu1  ;;  %v4533_v38 = vsel %vm7421_vm7, %v4531_v26, %v4532_v49  ;;  %v6790_v7 = vld [vmem:[%s9535_s3 + $0x20] sm:$0xff]   ;;  %v4539_v49 = vrot.slane %v8538_v1, 5 }
 0x15a   : > { %v1704_v19 = vadd.f32 %v1627_v63, %v1203_v14  ;;  %v8758_v21 = vadd.f32 %v6440_v28, %v1706_v13  ;;  %v4526_v28 = vsel %vm7421_vm7, %v4524_v50, %v4525_v31  ;;  %v6042_v13 = vld [vmem:[%s7131_s11 + $0xcc] sm:$0xe]  ;;  %v9610_v50 = vld [vmem:[#allocation25_spill] sm:$0xff]  ;;  %6629 = vmatprep.subr.bf16.mxu1 %v6790_v7  ;;  %s256_s11 = sand.u32 1, %s6983_s22  }
 0x15b   : > { %v6409_v18 = vpop.f32.mrf.mxu0  ;;  %v6447_v39 = vpop.f32.mrf.mxu1  ;;  %6612 = vmatmul.mubr.msk.bf16.gmra.mxu0 %vm756_vm3, %v6071_v0  ;;  %v9608_v63 = vld [vmem:[#allocation26_spill] sm:$0xff]  ;;  %v6073_v31 = vcombine.low %v4523_v17, %v4526_v28  ;;  %v6058_v26 = vrot.slane %v6042_v13, 9  ;;  %6630 = vmatpush3.bf16.msra.mxu1 %v6790_v7  ;;  %v4540_v1 = vsel %vm7421_vm7, %v4538_v61, %v4539_v49  ;;  %v9614_v7 = vld [vmem:[#allocation28_spill] sm:$0xff]  ;;  %s5554_s15 = sshll.u32 %s256_s11, 8  ;;  %s9487_s24 = scalar_lea.sflag [#allocation3], %s256_s11 }
 0x15c   : > { %v1709_v40 = vadd.f32 %v6409_v18, %v9606_v5  ;;  %v8762_v55 = vadd.f32 %v1989_v62, %v1704_v19  ;;  %6615 = vmatprep.mubr.msk.bf16.mxu0 %vm756_vm3, %v6072_v30  ;;  %v4530_v62 = vsel %vm7421_vm7, %v6057_v16, %v4529_v45  ;;  %v9609_v30 = vld [vmem:[#allocation19_spill] sm:$0xff]  ;;  %6631 = vmatprep.subr.bf16.mxu1 %v6791_v37  ;;  %s9288_s16 = scalar_lea.vmem [#allocation2], %s5554_s15 }
 0x15d   : > { %v1640_v35 = vpop.f32.mrf.mxu0  ;;  %v2018_v24 = vpop.f32.mrf.mxu1  ;;  %v1219_v34 = vadd.f32 %v9609_v30, %v9608_v63  ;;  %v6074_v16 = vcombine.low %v4530_v62, %v4533_v38  ;;  %v4537_v17 = vsel %vm7421_vm7, %v6058_v26, %v4536_v43  ;;  %s5466_s18 = sshll.u32 %s9288_s16, 4  ;;  %s9478_s18 = int_to_ptr.vmem [resolvable:$true] %s5466_s18 }
 0x15e   : > { %v1707_v14 = vadd.f32 %v1640_v35, %v9607_v23  ;;  %v8772_v22 = vadd.f32 %v6443_v15, %v1709_v40  ;;  %v9611_v23 = vld [vmem:[#allocation30_spill] sm:$0xff]  ;;  %s6923_s28 = scalar_lea.vmem %s9478_s18, 4096  ;;  %p6930_p1 = scmp.lt.s32.totalorder %s9478_s18, %s6928_s8 }
 0x15f   : > { %v6410_v0 = vpop.f32.mrf.mxu0  ;;  %v6448_v60 = vpop.f32.mrf.mxu1  ;;  %6632 = vmatpush3.bf16.msra.mxu1 %v6791_v37  ;;  %v2050_v37 = vadd.f32 %v8594_v4, %v8636_v9  ;;  %p6924_p12 = scmp.ne.s32.totalorder %s9478_s18, %s6923_s28  ;;  %p6931_p2 = scmp.lt.s32.totalorder %s6929_s12, %s6923_s28 }
 0x160   : > { %v1710_v2 = vadd.f32 %v6410_v0, %v9610_v50  ;;  %v8785_v15 = vadd.f32 %v2002_v59, %v1707_v14 }
 0x161   : > { %v1643_v45 = vpop.f32.mrf.mxu0  ;;  %v2021_v19 = vpop.f32.mrf.mxu1  ;;  %p6925_p13 = pnand %p6924_p12, %p7080_p4  ;;  %p6932_p3 = por %p6931_p2, %p6930_p1 }
 0x162   : > { %v1708_v18 = vadd.f32 %v1643_v45, %v1219_v34  ;;  %v8788_v5 = vadd.f32 %v6444_v25, %v1710_v2  ;;  %v9612_v25 = vld [vmem:[#allocation31_spill] sm:$0xff]  ;;  %v9615_v34 = vld [vmem:[#allocation32_spill] sm:$0xff] }
 0x163   : > { %v6413_v40 = vpop.f32.mrf.mxu0  ;;  %v6451_v35 = vpop.f32.mrf.mxu1  ;;  %6616 = vmatmul.mubr.msk.bf16.gmra.mxu0 %vm756_vm3, %v6073_v31  ;;  %v6075_v31 = vcombine.low %v4537_v17, %v4540_v1  ;;  %p6926_p0 = pneg %p6925_p13 }
 0x164   : > { %v1713_v63 = vadd.f32 %v6413_v40, %v9611_v23  ;;  %v8791_v0 = vadd.f32 %v2005_v32, %v1708_v18  ;;  %6619 = vmatprep.mubr.msk.bf16.mxu0 %vm756_vm3, %v6074_v16  ;;  %v9613_v32 = vld [vmem:[#allocation33_spill] sm:$0xff] }
 0x165   : > { %v1656_v59 = vpop.f32.mrf.mxu0  ;;  %v2034_v28 = vpop.f32.mrf.mxu1  ;;  %v1235_v30 = vadd.f32 %v9614_v7, %v9613_v32  ;;  %p6933_p5 = pnand %p6932_p3, %p6926_p0 }
 0x166   : > { %v1711_v14 = vadd.f32 %v1656_v59, %v9612_v25  ;;  %v8800_v62 = vadd.f32 %v6447_v39, %v1713_v63 }
 0x167   : > { %v6414_v38 = vpop.f32.mrf.mxu0  ;;  %v6452_v13 = vpop.f32.mrf.mxu1 }
 0x168   : > { %v1714_v50 = vadd.f32 %v6414_v38, %v9615_v34  ;;  %v8805_v2 = vadd.f32 %v2018_v24, %v1711_v14 }
 0x169   : > { %v1659_v43 = vpop.f32.mrf.mxu0  ;;  %v2037_v45 = vpop.f32.mrf.mxu1 }
 0x16a   : > { %v1712_v16 = vadd.f32 %v1659_v43, %v1235_v30  ;;  %v8810_v26 = vadd.f32 %v6448_v60, %v1714_v50  ;;  %v9616_v60 = vld [vmem:[#allocation34_spill] sm:$0xff] }
 0x16b   : > { %v6417_v39 = vpop.f32.mrf.mxu0  ;;  %v6491_v61 = vpop.f32.mrf.mxu1  ;;  %6620 = vmatmul.mubr.msk.bf16.gmra.mxu0 %vm756_vm3, %v6075_v31  ;;  %v1251_v1 = vadd.f32 %v9616_v60, %v8588_v27  ;;  %v2054_v60 = vadd.f32 %v8631_v12, %v8666_v44 }
 0x16c   : > { %v1717_v49 = vadd.f32 %v6417_v39, %v8558_v48  ;;  %v8813_v18 = vadd.f32 %v2021_v19, %v1712_v16 }
 0x16d   : > { %v1672_v24 = vpop.f32.mrf.mxu0  ;;  %v3118_v40 = vpop.f32.mrf.mxu1 }
 0x16e   : > { %v1715_v23 = vadd.f32 %v1672_v24, %v8565_v33  ;;  %v8817_v63 = vadd.f32 %v6451_v35, %v1717_v49  ;;  %v6792_v33 = vld [vmem:[%s9535_s3 + $0x10] sm:$0xff]  }
 0x16f   : > { %v6418_v59 = vpop.f32.mrf.mxu0  ;;  %v8819_v17 = vpop.f32.mrf.mxu1  ;;  %6633 = vmatprep.subr.bf16.mxu1 %v6792_v33 }
 0x170   : > { %v1718_v25 = vadd.f32 %v6418_v59, %v8580_v54  ;;  %v8824_v14 = vadd.f32 %v2034_v28, %v1715_v23  ;;  %6634 = vmatpush3.bf16.msra.mxu1 %v6792_v33 }
 0x171   : > { %v1675_v48 = vpop.f32.mrf.mxu0  ;;  %v8826_v19 = vpop.f32.mrf.mxu1 }
 0x172   : > { %v1716_v38 = vadd.f32 %v1675_v48, %v1251_v1  ;;  %v8828_v32 = vadd.f32 %v6452_v13, %v1718_v25 }
 0x173   : > { %v6457_v35 = vpop.f32.mrf.mxu0  ;;  %v6495_v7 = vpop.f32.mrf.mxu1 }
 0x174   : > { %v8833_v30 = vadd.f32 %v2037_v45, %v1716_v38  ;;  %v2777_v27 = vadd.f32 %v6457_v35, %v8614_v51 }
 0x175   : > { %v2648_v54 = vpop.f32.mrf.mxu0  ;;  %v3134_v28 = vpop.f32.mrf.mxu1 }
 0x176   : > { %v2775_v34 = vadd.f32 %v2648_v54, %v8626_v36  ;;  %v8837_v50 = vadd.f32 %v6491_v61, %v2777_v27  ;;  %v6793_v36 = vld [vmem:[%s9535_s3 + $0x8] sm:$0xff]  }
 0x177   : > { %v6458_v13 = vpop.f32.mrf.mxu0  ;;  %v6496_v31 = vpop.f32.mrf.mxu1  ;;  %6635 = vmatprep.subr.bf16.mxu1 %v6793_v36 }
 0x178   : > { %v8842_v43 = vadd.f32 %v6458_v13, %v8639_v41  ;;  %v8844_v45 = vadd.f32 %v3118_v40, %v2775_v34  ;;  %6636 = vmatpush3.bf16.msra.mxu1 %v6793_v36  ;;  %v2058_v13 = vadd.f32 %v8663_v10, %v8695_v6 }
 0x179   : > { %v2651_v16 = vpop.f32.mrf.mxu0  ;;  %v8846_v51 = vpop.f32.mrf.mxu1 }
 0x17a   : > { %v8848_v39 = vadd.f32 %v2651_v16, %v2050_v37 }
 0x17b   : > { %v6461_v49 = vpop.f32.mrf.mxu0  ;;  %v6499_v24 = vpop.f32.mrf.mxu1 }
 0x17c   : > { %v2781_v61 = vadd.f32 %v6461_v49, %v8652_v3 }
 0x17d   : > { %v2664_v23 = vpop.f32.mrf.mxu0  ;;  %v3150_v4 = vpop.f32.mrf.mxu1 }
 0x17e   : > { %v2779_v9 = vadd.f32 %v2664_v23, %v8661_v47  ;;  %v8855_v41 = vadd.f32 %v6495_v7, %v2781_v61  ;;  %v6794_v7 = vld [vmem:[%s9535_s3] sm:$0xff]  }
 0x17f   : > { %v6462_v40 = vpop.f32.mrf.mxu0  ;;  %v6500_v59 = vpop.f32.mrf.mxu1  ;;  %6637 = vmatprep.subr.bf16.mxu1 %v6794_v7 }
 0x180   : > { %v2782_v1 = vadd.f32 %v6462_v40, %v8668_v8  ;;  %v8860_v25 = vadd.f32 %v3134_v28, %v2779_v9  ;;  %6638 = vmatpush3.bf16.msra.mxu1 %v6794_v7 }
 0x181   : > { %v2667_v48 = vpop.f32.mrf.mxu0  ;;  %v8862_v38 = vpop.f32.mrf.mxu1 }
 0x182   : > { %v8864_v3 = vadd.f32 %v2667_v48, %v2054_v60  ;;  %v8866_v33 = vadd.f32 %v6496_v31, %v2782_v1 }
 0x183   : > { %v6465_v47 = vpop.f32.mrf.mxu0  ;;  %v6503_v35 = vpop.f32.mrf.mxu1 }
 0x184   : > { %v2785_v27 = vadd.f32 %v6465_v47, %v8682_v52 }
 0x185   : > { %v2680_v12 = vpop.f32.mrf.mxu0  ;;  %v3166_v44 = vpop.f32.mrf.mxu1 }
 0x186   : > { %v2783_v8 = vadd.f32 %v2680_v12, %v8689_v56  ;;  %v8873_v54 = vadd.f32 %v6499_v24, %v2785_v27 }
 0x187   : > { %v6466_v28 = vpop.f32.mrf.mxu0  ;;  %v6504_v34 = vpop.f32.mrf.mxu1 }
 0x188   : > { %v2786_v31 = vadd.f32 %v6466_v28, %v8697_v53  ;;  %v8878_v37 = vadd.f32 %v3150_v4, %v2783_v8  ;;  %v2062_v4 = vadd.f32 %v8691_v57, %v8726_v11 }
 0x189   : > { %v2683_v16 = vpop.f32.mrf.mxu0  ;;  %v8880_v49 = vpop.f32.mrf.mxu1 }
 0x18a   : > { %v8882_v52 = vadd.f32 %v2683_v16, %v2058_v13  ;;  %v8884_v36 = vadd.f32 %v6500_v59, %v2786_v31 }
 0x18b   : > { %v6469_v56 = vpop.f32.mrf.mxu0  ;;  %v6507_v24 = vpop.f32.mrf.mxu1 }
 0x18c   : > { %v2789_v61 = vadd.f32 %v6469_v56, %v8715_v20 }
 0x18d   : > { %v2696_v23 = vpop.f32.mrf.mxu0  ;;  %v3182_v9 = vpop.f32.mrf.mxu1 }
 0x18e   : > { %v2787_v40 = vadd.f32 %v2696_v23, %v8722_v46  ;;  %v8888_v10 = vadd.f32 %v6503_v35, %v2789_v61 }
 0x18f   : > { %v6470_v6 = vpop.f32.mrf.mxu0  ;;  %v6508_v53 = vpop.f32.mrf.mxu1 }
 0x190   : > { %v2790_v60 = vadd.f32 %v6470_v6, %v8728_v42  ;;  %v8893_v1 = vadd.f32 %v3166_v44, %v2787_v40 }
 0x191   : > { %v2699_v59 = vpop.f32.mrf.mxu0  ;;  %v8895_v48 = vpop.f32.mrf.mxu1 }
 0x192   : > { %v8897_v47 = vadd.f32 %v2699_v59, %v2062_v4  ;;  %v8899_v20 = vadd.f32 %v6504_v34, %v2790_v60 }
 0x193   : > { %v6473_v7 = vpop.f32.mrf.mxu0  ;;  %v6511_v46 = vpop.f32.mrf.mxu1 }
 0x194   : > { %v2793_v35 = vadd.f32 %v6473_v7, %v8746_v29 }
 0x195   : > { %v2712_v27 = vpop.f32.mrf.mxu0  ;;  %v3198_v12 = vpop.f32.mrf.mxu1 }
 0x196   : > { %v2791_v8 = vadd.f32 %v2712_v27, %v8755_v58  ;;  %v8903_v57 = vadd.f32 %v6507_v24, %v2793_v35 }
 0x197   : > { %v6474_v11 = vpop.f32.mrf.mxu0  ;;  %v6512_v42 = vpop.f32.mrf.mxu1 }
 0x198   : > { %v2794_v44 = vadd.f32 %v6474_v11, %v8758_v21  ;;  %v8906_v28 = vadd.f32 %v3182_v9, %v2791_v8 }
 0x199   : > { %v2715_v13 = vpop.f32.mrf.mxu0  ;;  %v8908_v31 = vpop.f32.mrf.mxu1 }
 0x19a   : > { %9617 = vst [vmem:[#allocation5_spill] sm:$0xff] %v8908_v31  ;;  %v8911_v34 = vadd.f32 %v2715_v13, %v8762_v55  ;;  %v8913_v16 = vadd.f32 %v6508_v53, %v2794_v44 }
 0x19b   : > { %v6477_v29 = vpop.f32.mrf.mxu0  ;;  %v6515_v56 = vpop.f32.mrf.mxu1 }
 0x19c   : > { %v2797_v58 = vadd.f32 %v6477_v29, %v8772_v22 }
 0x19d   : > { %v2728_v24 = vpop.f32.mrf.mxu0  ;;  %v3214_v61 = vpop.f32.mrf.mxu1 }
 0x19e   : > { %v2795_v23 = vadd.f32 %v2728_v24, %v8785_v15  ;;  %v8917_v40 = vadd.f32 %v6511_v46, %v2797_v58 }
 0x19f   : > { %v6478_v21 = vpop.f32.mrf.mxu0  ;;  %v6516_v9 = vpop.f32.mrf.mxu1 }
 0x1a0   : > { %v2798_v6 = vadd.f32 %v6478_v21, %v8788_v5  ;;  %v8920_v4 = vadd.f32 %v3198_v12, %v2795_v23 }
 0x1a1   : > { %v2731_v55 = vpop.f32.mrf.mxu0  ;;  %v8922_v60 = vpop.f32.mrf.mxu1 }
 0x1a2   : > { %9618 = vst [vmem:[#allocation10_spill] sm:$0xff] %v8922_v60  ;;  %v8925_v53 = vadd.f32 %v2731_v55, %v8791_v0  ;;  %v8927_v59 = vadd.f32 %v6512_v42, %v2798_v6 }
 0x1a3   : > { %v6481_v22 = vpop.f32.mrf.mxu0 }
 0x1a4   : > { %v2801_v7 = vadd.f32 %v6481_v22, %v8800_v62  ;;  %v6519_v15 = vpop.f32.mrf.mxu1 }
 0x1a5   : > { %v2744_v46 = vpop.f32.mrf.mxu0 }
 0x1a6   : > { %v2799_v35 = vadd.f32 %v2744_v46, %v8805_v2  ;;  %v8931_v27 = vadd.f32 %v6515_v56, %v2801_v7  ;;  %v3230_v5 = vpop.f32.mrf.mxu1 }
 0x1a7   : > { %v6482_v12 = vpop.f32.mrf.mxu0 }
 0x1a8   : > { %v2802_v8 = vadd.f32 %v6482_v12, %v8810_v26  ;;  %v8934_v11 = vadd.f32 %v3214_v61, %v2799_v35  ;;  %v6520_v0 = vpop.f32.mrf.mxu1 }
 0x1a9   : > { %v2747_v44 = vpop.f32.mrf.mxu0 }
 0x1aa   : > { %v8937_v42 = vadd.f32 %v2747_v44, %v8813_v18  ;;  %v8939_v13 = vadd.f32 %v6516_v9, %v2802_v8  ;;  %v8942_v2 = vpop.f32.mrf.mxu1 }
 0x1ab   : > { %v6485_v62 = vpop.f32.mrf.mxu0  ;;  %9620 = vst [vmem:[#allocation14_spill] sm:$0xff] %v8942_v2 }
 0x1ac   : > { %9619 = vst [vmem:[#allocation6_spill] sm:$0xff] %v8937_v42  ;;  %v2805_v29 = vadd.f32 %v6485_v62, %v8817_v63 }
 0x1ad   : > { %v2760_v58 = vpop.f32.mrf.mxu0 }
 0x1ae   : > { %v2803_v56 = vadd.f32 %v2760_v58, %v8824_v14  ;;  %v8945_v24 = vadd.f32 %v6519_v15, %v2805_v29 }
 0x1af   : > { %v6486_v26 = vpop.f32.mrf.mxu0  ;;  %v8950_v18 = vpop.f32.mrf.mxu1 }
 0x1b0   : > { %v2806_v61 = vadd.f32 %v6486_v26, %v8828_v32  ;;  %v8948_v23 = vadd.f32 %v3230_v5, %v2803_v56 }
 0x1b1   : > { %v2763_v21 = vpop.f32.mrf.mxu0  ;;  %v8960_v22 = vpop.f32.mrf.mxu1 }
 0x1b2   : > { %v8953_v9 = vadd.f32 %v2763_v21, %v8833_v30  ;;  %v8955_v6 = vadd.f32 %v6520_v0, %v2806_v61 }
 0x1b3   : > { %v6525_v63 = vpop.f32.mrf.mxu0  ;;  %v8969_v46 = vpop.f32.mrf.mxu1 }
 0x1b4   : > { %9621 = vst [vmem:[#allocation7_spill] sm:$0xff] %v8953_v9  ;;  %v8958_v55 = vadd.f32 %v6525_v63, %v8837_v50 }
 0x1b5   : > { %v3480_v14 = vpop.f32.mrf.mxu0  ;;  %v8974_v5 = vpop.f32.mrf.mxu1 }
 0x1b6   : > { %v8963_v7 = vadd.f32 %v3480_v14, %v8844_v45 }
 0x1b7   : > { %v8965_v32 = vpop.f32.mrf.mxu0 }
 0x1b9   : > { %v8967_v15 = vpop.f32.mrf.mxu0  ;;  %v8982_v44 = vpop.f32.mrf.mxu1 }
 0x1bb   : > { %v6529_v30 = vpop.f32.mrf.mxu0 }
 0x1bc   : > { %v8972_v35 = vadd.f32 %v6529_v30, %v8855_v41  ;;  %v8989_v41 = vpop.f32.mrf.mxu1 }
 0x1bd   : > { %v3496_v50 = vpop.f32.mrf.mxu0 }
 0x1be   : > { %v8977_v12 = vadd.f32 %v3496_v50, %v8860_v25 }
 0x1bf   : > { %v6530_v8 = vpop.f32.mrf.mxu0 }
 0x1c0   : > { %v8980_v45 = vadd.f32 %v6530_v8, %v8866_v33  ;;  %v8997_v33 = vpop.f32.mrf.mxu1 }
 0x1c1   : > { %v8984_v0 = vpop.f32.mrf.mxu0 }
 0x1c3   : > { %v6533_v62 = vpop.f32.mrf.mxu0 }
 0x1c4   : > { %v8987_v29 = vadd.f32 %v6533_v62, %v8873_v54  ;;  %v9004_v54 = vpop.f32.mrf.mxu1 }
 0x1c5   : > { %v3512_v58 = vpop.f32.mrf.mxu0 }
 0x1c6   : > { %v8992_v56 = vadd.f32 %v3512_v58, %v8878_v37 }
 0x1c7   : > { %v6534_v25 = vpop.f32.mrf.mxu0 }
 0x1c8   : > { %v8995_v26 = vadd.f32 %v6534_v25, %v8884_v36  ;;  %v9012_v36 = vpop.f32.mrf.mxu1 }
 0x1c9   : > { %v8999_v61 = vpop.f32.mrf.mxu0 }
 0x1cb   : > { %v6537_v21 = vpop.f32.mrf.mxu0 }
 0x1cc   : > { %v9002_v63 = vadd.f32 %v6537_v21, %v8888_v10  ;;  %v9019_v10 = vpop.f32.mrf.mxu1 }
 0x1cd   : > { %v3528_v14 = vpop.f32.mrf.mxu0 }
 0x1ce   : > { %v9007_v30 = vadd.f32 %v3528_v14, %v8893_v1 }
 0x1cf   : > { %v6538_v37 = vpop.f32.mrf.mxu0 }
 0x1d0   : > { %v9010_v50 = vadd.f32 %v6538_v37, %v8899_v20  ;;  %v9027_v20 = vpop.f32.mrf.mxu1 }
 0x1d1   : > { %v9014_v8 = vpop.f32.mrf.mxu0 }
 0x1d3   : > { %v6541_v62 = vpop.f32.mrf.mxu0 }
 0x1d4   : > { %v9017_v58 = vadd.f32 %v6541_v62, %v8903_v57  ;;  %v9034_v57 = vpop.f32.mrf.mxu1 }
 0x1d5   : > { %v3544_v25 = vpop.f32.mrf.mxu0 }
 0x1d6   : > { %v9022_v21 = vadd.f32 %v3544_v25, %v8906_v28 }
 0x1d7   : > { %v6542_v1 = vpop.f32.mrf.mxu0 }
 0x1d8   : > { %v9025_v14 = vadd.f32 %v6542_v1, %v8913_v16  ;;  %v9042_v16 = vpop.f32.mrf.mxu1 }
 0x1d9   : > { %v9029_v37 = vpop.f32.mrf.mxu0 }
 0x1db   : > { %v6545_v2 = vpop.f32.mrf.mxu0 }
 0x1dc   : > { %v9032_v9 = vadd.f32 %v6545_v2, %v8917_v40  ;;  %v9049_v40 = vpop.f32.mrf.mxu1 }
 0x1dd   : > { %v3560_v62 = vpop.f32.mrf.mxu0 }
 0x1de   : > { %9622 = vst [vmem:[#allocation18_spill] sm:$0xff] %v9032_v9  ;;  %v9037_v60 = vadd.f32 %v3560_v62, %v8920_v4 }
 0x1df   : > { %v6546_v28 = vpop.f32.mrf.mxu0 }
 0x1e0   : > { %v9040_v25 = vadd.f32 %v6546_v28, %v8927_v59  ;;  %v9057_v59 = vpop.f32.mrf.mxu1 }
 0x1e1   : > { %v9044_v1 = vpop.f32.mrf.mxu0 }
 0x1e2   : > { %9623 = vst [vmem:[#allocation8_spill] sm:$0xff] %v9040_v25  ;;  %9624 = vst [vmem:[#allocation15_spill] sm:$0xff] %v9044_v1 }
 0x1e3   : > { %v6549_v42 = vpop.f32.mrf.mxu0 }
 0x1e4   : > { %v9047_v31 = vadd.f32 %v6549_v42, %v8931_v27  ;;  %v9064_v27 = vpop.f32.mrf.mxu1 }
 0x1e5   : > { %v3576_v2 = vpop.f32.mrf.mxu0 }
 0x1e6   : > { %9625 = vst [vmem:[#allocation9_spill] sm:$0xff] %v9047_v31  ;;  %v9052_v9 = vadd.f32 %v3576_v2, %v8934_v11 }
 0x1e7   : > { %v6550_v4 = vpop.f32.mrf.mxu0 }
 0x1e8   : > { %v9055_v62 = vadd.f32 %v6550_v4, %v8939_v13  ;;  %v3248_v13 = vadd.f32 %v8819_v17, %v8842_v43  ;;  %v9074_v4 = vpop.f32.mrf.mxu1  ;;  %v4333_v17 = vadd.f32 %v8960_v22, %v8963_v7  ;;  %v3250_v22 = vadd.f32 %v8846_v51, %v8864_v3 }
 0x1e9   : > { %v9059_v28 = vpop.f32.mrf.mxu0 }
 0x1ea   : > { %9626 = vst [vmem:[#allocation20_spill] sm:$0xff] %v9055_v62 }
 0x1eb   : > { %v6553_v25 = vpop.f32.mrf.mxu0 }
 0x1ec   : > { %v9062_v1 = vadd.f32 %v6553_v25, %v8945_v24  ;;  %v3246_v24 = vadd.f32 %v8826_v19, %v8848_v39  ;;  %v4335_v25 = vadd.f32 %v8950_v18, %v8958_v55 }
 0x1ed   : > { %v3592_v42 = vpop.f32.mrf.mxu0 }
 0x1ee   : > { %9627 = vst [vmem:[#allocation12_spill] sm:$0xff] %v9062_v1  ;;  %v9067_v31 = vadd.f32 %v3592_v42, %v8948_v23  ;;  %v3610_v23 = vadd.f32 %v8965_v32, %v3248_v13  ;;  %v3608_v43 = vadd.f32 %v8967_v15, %v3246_v24  ;;  %v4339_v15 = vadd.f32 %v8982_v44, %v8972_v35 }
 0x1ef   : > { %v6554_v11 = vpop.f32.mrf.mxu0 }
 0x1f0   : > { %9628 = vst [vmem:[#allocation22_spill] sm:$0xff] %v9067_v31  ;;  %v9070_v2 = vadd.f32 %v6554_v11, %v8955_v6  ;;  %v9086_v6 = vld [vmem:[%s9534_s2] ss:$0 sm:$0xff]  ;;  %v9091_v11 = vpop.f32.mrf.mxu1  ;;  %v4336_v39 = vadd.f32 %v8969_v46, %v3610_v23  ;;  %v4334_v13 = vadd.f32 %v8974_v5, %v3608_v43  ;;  %v3612_v5 = vadd.f32 %v8984_v0, %v3250_v22 }
 0x1f1   : > { %v9076_v62 = vpop.f32.mrf.mxu0 }
 0x1f2   : > { %9629 = vst [vmem:[#allocation13_spill] sm:$0xff] %v9070_v2  ;;  %9630 = vst [vmem:[#allocation27_spill] sm:$0xff] %v9076_v62  ;;  %v9096_v62 = vpop.f32.mrf.mxu1  ;;  %v4338_v0 = vadd.f32 %v9004_v54, %v3612_v5 }
 0x1f3   : > { %v6593_v42 = vpop.f32.mrf.mxu0 }
 0x1f4   : > { %v4805_v2 = vadd.f32 %v6593_v42, %v4335_v25  ;;  %v4337_v25 = vadd.f32 %v8989_v41, %v8977_v12  ;;  %v9107_v42 = vpop.f32.mrf.mxu1 }
 0x1f5   : > { %v4676_v19 = vpop.f32.mrf.mxu0 }
 0x1f6   : > { %v4844_v18 = vadd.f32 %v9086_v6, %v4805_v2  ;;  %v4803_v55 = vadd.f32 %v4676_v19, %v4333_v17 }
 0x1f7   : > { %v6594_v32 = vpop.f32.mrf.mxu0 }
 0x1f8   : > { %v4842_v31 = vadd.f32 %v9086_v6, %v4803_v55  ;;  %v4806_v1 = vadd.f32 %v6594_v32, %v4336_v39  ;;  %v4876_v24 = vmul.f32 0.01, %v4844_v18  ;;  %v9114_v32 = vpop.f32.mrf.mxu1 }
 0x1f9   : > { %v4679_v7 = vpop.f32.mrf.mxu0 }
 0x1fa   : > { %v4845_v46 = vadd.f32 %v9086_v6, %v4806_v1  ;;  %v4804_v2 = vadd.f32 %v4679_v7, %v4334_v13  ;;  %v4874_v17 = vmul.f32 0.01, %v4842_v31  ;;  %v4908_v39 = vmax.f32 %v4844_v18, %v4876_v24 }
 0x1fb   : > { %v6597_v23 = vpop.f32.mrf.mxu0  ;;  %v4340_v1 = vadd.f32 %v8997_v33, %v8980_v45  ;;  %v3254_v24 = vadd.f32 %v8862_v38, %v8882_v52  ;;  %v4343_v45 = vadd.f32 %v9012_v36, %v8987_v29  ;;  %v4344_v36 = vadd.f32 %v9027_v20, %v8995_v26 }
 0x1fc   : > { %v4877_v43 = vmul.f32 0.01, %v4845_v46  ;;  %v4843_v51 = vadd.f32 %v9086_v6, %v4804_v2  ;;  %v4809_v3 = vadd.f32 %v6597_v23, %v4339_v15  ;;  %v4906_v13 = vmax.f32 %v4842_v31, %v4874_v17  ;;  %v9125_v17 = vpop.f32.mrf.mxu1 }
 0x1fd   : > { %v4692_v19 = vpop.f32.mrf.mxu0  ;;  %v4341_v31 = vadd.f32 %v9019_v10, %v8992_v56  ;;  %v3616_v23 = vadd.f32 %v8999_v61, %v3254_v24 }
 0x1fe   : > { %v4909_v35 = vmax.f32 %v4845_v46, %v4877_v43  ;;  %v4875_v44 = vmul.f32 0.01, %v4843_v51  ;;  %v4807_v55 = vadd.f32 %v4692_v19, %v4337_v25  ;;  %v4848_v12 = vadd.f32 %v9086_v6, %v4809_v3 }
 0x1ff   : > { %v6598_v41 = vpop.f32.mrf.mxu0 }
 0x200   : > { %v4939_v22 = vpack.c.bf16 %v4909_v35, %v4908_v39  ;;  %v4907_v7 = vmax.f32 %v4843_v51, %v4875_v44  ;;  %v4846_v15 = vadd.f32 %v9086_v6, %v4807_v55  ;;  %v4810_v2 = vadd.f32 %v6598_v41, %v4340_v1  ;;  %v9132_v44 = vpop.f32.mrf.mxu1 }
 0x201   : > { %v4695_v18 = vpop.f32.mrf.mxu0  ;;  %v4880_v25 = vmul.f32 0.01, %v4848_v12  ;;  %v4342_v35 = vadd.f32 %v9034_v57, %v3616_v23  ;;  %v4345_v57 = vadd.f32 %v9049_v40, %v9007_v30  ;;  %v4348_v30 = vadd.f32 %v9057_v59, %v9010_v50 }
 0x202   : > { %v4808_v33 = vadd.f32 %v4695_v18, %v4338_v0  ;;  %v4938_v46 = vpack.c.bf16 %v4907_v7, %v4906_v13  ;;  %v4849_v54 = vadd.f32 %v9086_v6, %v4810_v2  ;;  %v4878_v38 = vmul.f32 0.01, %v4846_v15 }
 0x203   : > { %v6601_v5 = vpop.f32.mrf.mxu0  ;;  %v4912_v56 = vmax.f32 %v4848_v12, %v4880_v25  ;;  %v3258_v0 = vadd.f32 %v8880_v49, %v8897_v47  ;;  %v4351_v50 = vadd.f32 %v9074_v4, %v9017_v58  ;;  %v4352_v58 = vadd.f32 %v9096_v62, %v9025_v14 }
 0x204   : > { %v4847_v43 = vadd.f32 %v9086_v6, %v4808_v33  ;;  %v4813_v51 = vadd.f32 %v6601_v5, %v4343_v45  ;;  %6639 = vmatprep.mubr.bf16.mxu1 %v4938_v46  ;;  %v4881_v52 = vmul.f32 0.01, %v4849_v54  ;;  %v4910_v13 = vmax.f32 %v4846_v15, %v4878_v38  ;;  %v9143_v33 = vpop.f32.mrf.mxu1 }
 0x205   : > { %v4708_v29 = vpop.f32.mrf.mxu0  ;;  %6640 = vmatmul.mubr.bf16.vlgmr.msra.gmra.mxu1 %v4939_v22  ;;  %v4347_v22 = vadd.f32 %v9042_v16, %v9002_v63  ;;  %v3620_v18 = vadd.f32 %v9014_v8, %v3258_v0 }
 0x206   : > { %v4879_v3 = vmul.f32 0.01, %v4847_v43  ;;  %v4852_v19 = vadd.f32 %v9086_v6, %v4813_v51  ;;  %v4811_v39 = vadd.f32 %v4708_v29, %v4341_v31  ;;  %v4913_v10 = vmax.f32 %v4849_v54, %v4881_v52  ;;  %v9150_v23 = vpop.f32.mrf.mxu1 }
 0x207   : > { %v6602_v61 = vpop.f32.mrf.mxu0  ;;  %v4346_v31 = vadd.f32 %v9064_v27, %v3620_v18 }
 0x208   : > { %v4911_v55 = vmax.f32 %v4847_v43, %v4879_v3  ;;  %v4850_v1 = vadd.f32 %v9086_v6, %v4811_v39  ;;  %v4814_v41 = vadd.f32 %v6602_v61, %v4344_v36  ;;  %v4941_v26 = vpack.c.bf16 %v4913_v10, %v4912_v56 }
 0x209   : > { %v4711_v20 = vpop.f32.mrf.mxu0  ;;  %v4884_v12 = vmul.f32 0.01, %v4852_v19  ;;  %v3262_v3 = vadd.f32 %v8895_v48, %v8911_v34  ;;  %v4349_v10 = vadd.f32 %v9091_v11, %v9022_v21 }
 0x20a   : > { %v4853_v7 = vadd.f32 %v9086_v6, %v4814_v41  ;;  %v4812_v2 = vadd.f32 %v4711_v20, %v4342_v35  ;;  %v4940_v45 = vpack.c.bf16 %v4911_v55, %v4910_v13  ;;  %v4882_v49 = vmul.f32 0.01, %v4850_v1  ;;  %v4302_v35 = vpop.f32.mrf.mxu1 }
 0x20b   : > { %v6605_v24 = vpop.f32.mrf.mxu0  ;;  %v4916_v16 = vmax.f32 %v4852_v19, %v4884_v12  ;;  %v3624_v61 = vadd.f32 %v9029_v37, %v3262_v3 }
 0x20c   : > { %v4885_v47 = vmul.f32 0.01, %v4853_v7  ;;  %v4851_v15 = vadd.f32 %v9086_v6, %v4812_v2  ;;  %v4817_v46 = vadd.f32 %v6605_v24, %v4347_v22  ;;  %6643 = vmatprep.mubr.bf16.mxu1 %v4940_v45  ;;  %v4914_v43 = vmax.f32 %v4850_v1, %v4882_v49  ;;  %v6584_v20 = vpop.f32.mrf.mxu1  ;;  %v9631_v2 = vld [vmem:[#allocation5_spill] sm:$0xff]  ;;  %v9632_v24 = vld [vmem:[#allocation18_spill] sm:$0xff] }
 0x20d   : > { %v4724_v63 = vpop.f32.mrf.mxu0  ;;  %6644 = vmatmul.mubr.bf16.gmra.mxu1 %v4941_v26  ;;  %v4350_v37 = vadd.f32 %v9107_v42, %v3624_v61  ;;  %v4355_v45 = vadd.f32 %v9114_v32, %v9632_v24  ;;  %v4353_v42 = vadd.f32 %v9125_v17, %v9037_v60 }
 0x20e   : > { %v4917_v25 = vmax.f32 %v4853_v7, %v4885_v47  ;;  %v4883_v54 = vmul.f32 0.01, %v4851_v15  ;;  %v4815_v5 = vadd.f32 %v4724_v63, %v4345_v57  ;;  %v4856_v8 = vadd.f32 %v9086_v6, %v4817_v46  ;;  %v9633_v46 = vld [vmem:[#allocation15_spill] sm:$0xff] }
 0x20f   : > { %v6606_v40 = vpop.f32.mrf.mxu0  ;;  %v3266_v57 = vadd.f32 %v9631_v2, %v8925_v53 }
 0x210   : > { %v4943_v51 = vpack.c.bf16 %v4917_v25, %v4916_v16  ;;  %v4915_v38 = vmax.f32 %v4851_v15, %v4883_v54  ;;  %v4854_v52 = vadd.f32 %v9086_v6, %v4815_v5  ;;  %v4818_v29 = vadd.f32 %v6606_v40, %v4348_v30  ;;  %v4305_v54 = vpop.f32.mrf.mxu1 }
 0x211   : > { %v4727_v36 = vpop.f32.mrf.mxu0  ;;  %v4888_v39 = vmul.f32 0.01, %v4856_v8  ;;  %v3628_v63 = vadd.f32 %v9633_v46, %v3266_v57  ;;  %v9641_v46 = vld [vmem:[#allocation12_spill] sm:$0xff] }
 0x212   : > { %v4816_v59 = vadd.f32 %v4727_v36, %v4346_v31  ;;  %v4942_v19 = vpack.c.bf16 %v4915_v38, %v4914_v43  ;;  %v4857_v27 = vadd.f32 %v9086_v6, %v4818_v29  ;;  %v4886_v48 = vmul.f32 0.01, %v4854_v52  ;;  %v9634_v38 = vld [vmem:[#allocation8_spill] sm:$0xff]  ;;  %v6587_v36 = vpop.f32.mrf.mxu1 }
 0x213   : > { %v6609_v56 = vpop.f32.mrf.mxu0  ;;  %v4920_v26 = vmax.f32 %v4856_v8, %v4888_v39  ;;  %v4356_v60 = vadd.f32 %v9132_v44, %v9634_v38  ;;  %v4354_v29 = vadd.f32 %v9143_v33, %v3628_v63  ;;  %v4363_v63 = vadd.f32 %v6587_v36, %v9641_v46 }
 0x214   : > { %v4855_v55 = vadd.f32 %v9086_v6, %v4816_v59  ;;  %v4821_v1 = vadd.f32 %v6609_v56, %v4351_v50  ;;  %6647 = vmatprep.mubr.bf16.mxu1 %v4942_v19  ;;  %v4889_v34 = vmul.f32 0.01, %v4857_v27  ;;  %v4918_v18 = vmax.f32 %v4854_v52, %v4886_v48  ;;  %v9635_v56 = vld [vmem:[#allocation6_spill] sm:$0xff] }
 0x215   : > { %v4740_v41 = vpop.f32.mrf.mxu0  ;;  %6648 = vmatmul.mubr.bf16.gmra.mxu1 %v4943_v51 }
 0x216   : > { %v4887_v4 = vmul.f32 0.01, %v4855_v55  ;;  %v4860_v0 = vadd.f32 %v9086_v6, %v4821_v1  ;;  %v4819_v13 = vadd.f32 %v4740_v41, %v4349_v10  ;;  %v4921_v21 = vmax.f32 %v4857_v27, %v4889_v34  ;;  %v9636_v10 = vld [vmem:[#allocation10_spill] sm:$0xff] }
 0x217   : > { %v6610_v11 = vpop.f32.mrf.mxu0  ;;  %v3270_v61 = vadd.f32 %v9636_v10, %v9635_v56 }
 0x218   : > { %v4919_v22 = vmax.f32 %v4855_v55, %v4887_v4  ;;  %v4858_v12 = vadd.f32 %v9086_v6, %v4819_v13  ;;  %v4822_v7 = vadd.f32 %v6610_v11, %v4352_v58  ;;  %v4945_v14 = vpack.c.bf16 %v4921_v21, %v4920_v26  ;;  %v9637_v55 = vld [vmem:[#allocation9_spill] sm:$0xff] }
 0x219   : > { %v4743_v62 = vpop.f32.mrf.mxu0  ;;  %v4892_v49 = vmul.f32 0.01, %v4860_v0  ;;  %v4359_v1 = vadd.f32 %v9150_v23, %v9637_v55  ;;  %v4357_v58 = vadd.f32 %v4302_v35, %v9052_v9  ;;  %v3632_v4 = vadd.f32 %v9059_v28, %v3270_v61 }
 0x21a   : > { %v4861_v47 = vadd.f32 %v9086_v6, %v4822_v7  ;;  %v4820_v15 = vadd.f32 %v4743_v62, %v4350_v37  ;;  %v4944_v25 = vpack.c.bf16 %v4919_v22, %v4918_v18  ;;  %v4890_v5 = vmul.f32 0.01, %v4858_v12  ;;  %v9638_v22 = vld [vmem:[#allocation20_spill] sm:$0xff] }
 0x21b   : > { %v6613_v16 = vpop.f32.mrf.mxu0  ;;  %v4924_v32 = vmax.f32 %v4860_v0, %v4892_v49  ;;  %v4318_v0 = vpop.f32.mrf.mxu1  ;;  %v4360_v23 = vadd.f32 %v6584_v20, %v9638_v22  ;;  %v4358_v35 = vadd.f32 %v4305_v54, %v3632_v4  ;;  %v9640_v49 = vld [vmem:[#allocation14_spill] sm:$0xff]  ;;  %v9643_v54 = vld [vmem:[#allocation27_spill] sm:$0xff] }
 0x21c   : > { %v4893_v53 = vmul.f32 0.01, %v4861_v47  ;;  %v4859_v30 = vadd.f32 %v9086_v6, %v4820_v15  ;;  %v4825_v8 = vadd.f32 %v6613_v16, %v4355_v45  ;;  %6651 = vmatprep.mubr.bf16.mxu1 %v4944_v25  ;;  %v4922_v3 = vmax.f32 %v4858_v12, %v4890_v5  ;;  %v9639_v45 = vld [vmem:[#allocation7_spill] sm:$0xff] }
 0x21d   : > { %v4756_v40 = vpop.f32.mrf.mxu0  ;;  %6652 = vmatmul.mubr.bf16.gmra.mxu1 %v4945_v14  ;;  %v6588_v28 = vpop.f32.mrf.mxu1 }
 0x21e   : > { %v4925_v31 = vmax.f32 %v4861_v47, %v4893_v53  ;;  %v4891_v43 = vmul.f32 0.01, %v4859_v30  ;;  %v4823_v51 = vadd.f32 %v4756_v40, %v4353_v42  ;;  %v4864_v17 = vadd.f32 %v9086_v6, %v4825_v8  ;;  %v9642_v53 = vld [vmem:[#allocation22_spill] sm:$0xff] }
 0x21f   : > { %v6614_v52 = vpop.f32.mrf.mxu0  ;;  %v3274_v47 = vadd.f32 %v9640_v49, %v9639_v45 }
 0x220   : > { %v4947_v50 = vpack.c.bf16 %v4925_v31, %v4924_v32  ;;  %v4923_v59 = vmax.f32 %v4859_v30, %v4891_v43  ;;  %v4862_v19 = vadd.f32 %v9086_v6, %v4823_v51  ;;  %v4826_v39 = vadd.f32 %v6614_v52, %v4356_v60  ;;  %v4321_v31 = vpop.f32.mrf.mxu1 }
 0x221   : > { %v4759_v27 = vpop.f32.mrf.mxu0  ;;  %v4896_v34 = vmul.f32 0.01, %v4864_v17  ;;  %v4361_v30 = vadd.f32 %v4318_v0, %v9642_v53  ;;  %v3636_v8 = vadd.f32 %v9643_v54, %v3274_v47 }
 0x222   : > { %v4824_v44 = vadd.f32 %v4759_v27, %v4354_v29  ;;  %v4946_v48 = vpack.c.bf16 %v4923_v59, %v4922_v3  ;;  %v4865_v41 = vadd.f32 %v9086_v6, %v4826_v39  ;;  %v4894_v21 = vmul.f32 0.01, %v4862_v19 }
 0x223   : > { %v6617_v33 = vpop.f32.mrf.mxu0  ;;  %v4928_v57 = vmax.f32 %v4864_v17, %v4896_v34 }
 0x224   : > { %v4863_v13 = vadd.f32 %v9086_v6, %v4824_v44  ;;  %v4829_v26 = vadd.f32 %v6617_v33, %v4359_v1  ;;  %6655 = vmatprep.mubr.bf16.mxu1 %v4946_v48  ;;  %v4897_v11 = vmul.f32 0.01, %v4865_v41  ;;  %v4926_v15 = vmax.f32 %v4862_v19, %v4894_v21 }
 0x225   : > { %v4772_v37 = vpop.f32.mrf.mxu0  ;;  %6656 = vmatmul.mubr.bf16.gmra.mxu1 %v4947_v50  ;;  %v9644_v50 = vld [vmem:[#allocation13_spill] sm:$0xff]  ;;  %v4362_v19 = vadd.f32 %v4321_v31, %v3636_v8 }
 0x226   : > { %v4895_v12 = vmul.f32 0.01, %v4863_v13  ;;  %v4868_v7 = vadd.f32 %v9086_v6, %v4829_v26  ;;  %v4827_v2 = vadd.f32 %v4772_v37, %v4357_v58  ;;  %v4929_v18 = vmax.f32 %v4865_v41, %v4897_v11 }
 0x227   : > { %v6618_v9 = vpop.f32.mrf.mxu0  ;;  %v4364_v59 = vadd.f32 %v6588_v28, %v9644_v50 }
 0x228   : > { %v4927_v14 = vmax.f32 %v4863_v13, %v4895_v12  ;;  %v4866_v62 = vadd.f32 %v9086_v6, %v4827_v2  ;;  %v4830_v24 = vadd.f32 %v6618_v9, %v4360_v23  ;;  %v4949_v42 = vpack.c.bf16 %v4929_v18, %v4928_v57  ;;  %v9207_v12 = vld [vmem:[%s9536_s4] ss:$0 sm:$0xff] }
 0x229   : > { %v4775_v20 = vpop.f32.mrf.mxu0  ;;  %v4900_v16 = vmul.f32 0.01, %v4868_v7 }
 0x22a   : > { %v4869_v25 = vadd.f32 %v9086_v6, %v4830_v24  ;;  %v4828_v5 = vadd.f32 %v4775_v20, %v4358_v35  ;;  %v4948_v32 = vpack.c.bf16 %v4927_v14, %v4926_v15  ;;  %v4898_v43 = vmul.f32 0.01, %v4866_v62 }
 0x22b   : > { %v6621_v40 = vpop.f32.mrf.mxu0  ;;  %v4932_v52 = vmax.f32 %v4868_v7, %v4900_v16 }
 0x22c   : > { %v4901_v51 = vmul.f32 0.01, %v4869_v25  ;;  %v4867_v38 = vadd.f32 %v9086_v6, %v4828_v5  ;;  %v4833_v60 = vadd.f32 %v6621_v40, %v4363_v63  ;;  %6659 = vmatprep.mubr.bf16.mxu1 %v4948_v32  ;;  %v4930_v56 = vmax.f32 %v4866_v62, %v4898_v43  ;;  %v5186_v40 = vld [vmem:[%s9537_s5] sm:$0x1] }
 0x22d   : > { %v4788_v17 = vpop.f32.mrf.mxu0  ;;  %6660 = vmatmul.mubr.bf16.gmra.mxu1 %v4949_v42  ;;  %vm5187_vm8 = vcmp.gt.f32.partialorder %v5186_v40, 0.5 }
 0x22e   : > { %v4933_v29 = vmax.f32 %v4869_v25, %v4901_v51  ;;  %v4899_v36 = vmul.f32 0.01, %v4867_v38  ;;  %v4831_v3 = vadd.f32 %v4788_v17, %v4361_v30  ;;  %v4872_v39 = vadd.f32 %v9086_v6, %v4833_v60 }
 0x22f   : > { %v6622_v27 = vpop.f32.mrf.mxu0  ;;  %v5381_v25 = vlaneseq }
 0x230   : > { %v4951_v10 = vpack.c.bf16 %v4933_v29, %v4932_v52  ;;  %v4931_v61 = vmax.f32 %v4867_v38, %v4899_v36  ;;  %v4870_v55 = vadd.f32 %v9086_v6, %v4831_v3  ;;  %v4834_v1 = vadd.f32 %v6622_v27, %v4364_v59 }
 0x231   : > { %v4791_v44 = vpop.f32.mrf.mxu0  ;;  %v4904_v41 = vmul.f32 0.01, %v4872_v39  ;;  %v5382_v51 = vshrl.u32 %v5381_v25, 7 }
 0x232   : > { %v4832_v48 = vadd.f32 %v4791_v44, %v4362_v19  ;;  %v4950_v34 = vpack.c.bf16 %v4931_v61, %v4930_v56  ;;  %v4873_v33 = vadd.f32 %v9086_v6, %v4834_v1  ;;  %v4902_v58 = vmul.f32 0.01, %v4870_v55 }
 0x233   : > { %v4936_v26 = vmax.f32 %v4872_v39, %v4904_v41  ;;  %v5383_v19 = vsub.s32 0, %v5382_v51 }
 0x234   : > { %v4871_v4 = vadd.f32 %v9086_v6, %v4832_v48  ;;  %6663 = vmatprep.mubr.bf16.mxu1 %v4950_v34  ;;  %v4905_v0 = vmul.f32 0.01, %v4873_v33  ;;  %v4934_v11 = vmax.f32 %v4870_v55, %v4902_v58 }
 0x235   : > { %6664 = vmatmul.mubr.bf16.gmra.mxu1 %v4951_v10  ;;  %v7001_v10 = vmov 0  }
 0x236   : > { %v4903_v13 = vmul.f32 0.01, %v4871_v4  ;;  %v4937_v21 = vmax.f32 %v4873_v33, %v4905_v0  ;;  %v5380_v61 = vsel %vm5187_vm8, 1, %v7001_v10 }
 0x237   : > { %v9264_v58 = vrot.slane %v5380_v61, %v5383_v19 }
 0x238   : > { %v4935_v37 = vmax.f32 %v4871_v4, %v4903_v13  ;;  %v4953_v22 = vpack.c.bf16 %v4937_v21, %v4936_v26 }
 0x239   : > { %vm5385_vm9 = vcmp.eq.s32.totalorder %v9264_v58, 1 }
 0x23a   : > { %v4952_v23 = vpack.c.bf16 %v4935_v37, %v4934_v11 }
 0x23c   : > { %6667 = vmatprep.mubr.bf16.mxu1 %v4952_v23 }
 0x23d   : > { %6668 = vmatmul.mubr.bf16.gmra.mxu1 %v4953_v22 }
 0x2c5   : > { %v6641_v7 = vpop.f32.mrf.mxu1 }
 0x2c6   : > { %v9210_v6 = vadd.f32 %v6641_v7, %v9207_v12 }
 0x2c7   : > { %v5059_v2 = vpop.f32.mrf.mxu1 }
 0x2c8   : > { %v6104_v57 = vmul.f32 -1.442695, %v9210_v6  ;;  %v9214_v18 = vadd.f32 %v9207_v12, %v5059_v2 }
 0x2c9   : > { %v6642_v9 = vpop.f32.mrf.mxu1 }
 0x2ca   : > { %6795 = vpow2.f32 %v6104_v57  ;;  %v6102_v35 = vmul.f32 -1.442695, %v9214_v18  ;;  %v9218_v28 = vadd.f32 %v6642_v9, %v9207_v12 }
 0x2cb   : > { %v5062_v14 = vpop.f32.mrf.mxu1 }
 0x2cc   : > { %6797 = vpow2.f32 %v6102_v35  ;;  %v6105_v62 = vmul.f32 -1.442695, %v9218_v28  ;;  %v9222_v24 = vadd.f32 %v9207_v12, %v5062_v14 }
 0x2cd   : > { %v6645_v49 = vpop.f32.mrf.mxu1 }
 0x2ce   : > { %6799 = vpow2.f32 %v6105_v62  ;;  %v6103_v45 = vmul.f32 -1.442695, %v9222_v24  ;;  %v9226_v47 = vadd.f32 %v6645_v49, %v9207_v12 }
 0x2cf   : > { %v5075_v15 = vpop.f32.mrf.mxu1 }
 0x2d0   : > { %6801 = vpow2.f32 %v6103_v45  ;;  %v6108_v42 = vmul.f32 -1.442695, %v9226_v47  ;;  %v9230_v20 = vadd.f32 %v9207_v12, %v5075_v15 }
 0x2d1   : > { %v6646_v46 = vpop.f32.mrf.mxu1 }
 0x2d2   : > { %6803 = vpow2.f32 %v6108_v42  ;;  %v6106_v63 = vmul.f32 -1.442695, %v9230_v20  ;;  %v9234_v16 = vadd.f32 %v6646_v46, %v9207_v12 }
 0x2d3   : > { %v5078_v5 = vpop.f32.mrf.mxu1 }
 0x2d4   : > { %6805 = vpow2.f32 %v6106_v63  ;;  %v6109_v53 = vmul.f32 -1.442695, %v9234_v16  ;;  %v9238_v30 = vadd.f32 %v9207_v12, %v5078_v5 }
 0x2d5   : > { %v6649_v54 = vpop.f32.mrf.mxu1 }
 0x2d6   : > { %6807 = vpow2.f32 %v6109_v53  ;;  %v6107_v32 = vmul.f32 -1.442695, %v9238_v30  ;;  %v9245_v31 = vadd.f32 %v6649_v54, %v9207_v12 }
 0x2d7   : > { %v6796_v8 = vpop.eup %6795  ;;  %v5091_v38 = vpop.f32.mrf.mxu1 }
 0x2d8   : > { %v5286_v43 = vadd.f32 1.0, %v6796_v8  ;;  %6809 = vpow2.f32 %v6107_v32  ;;  %v6112_v17 = vmul.f32 -1.442695, %v9245_v31  ;;  %v9249_v52 = vadd.f32 %v9207_v12, %v5091_v38 }
 0x2d9   : > { %v6798_v60 = vpop.eup %6797  ;;  %v6650_v36 = vpop.f32.mrf.mxu1 }
 0x2da   : > { %6811 = vrcp.f32 %v5286_v43  ;;  %v5284_v29 = vadd.f32 1.0, %v6798_v60  ;;  %v6110_v50 = vmul.f32 -1.442695, %v9249_v52  ;;  %v9253_v59 = vadd.f32 %v6650_v36, %v9207_v12 }
 0x2db   : > { %v6800_v3 = vpop.eup %6799  ;;  %6813 = vpow2.f32 %v6112_v17  ;;  %v5094_v27 = vpop.f32.mrf.mxu1 }
 0x2dc   : > { %6815 = vrcp.f32 %v5284_v29  ;;  %v5287_v39 = vadd.f32 1.0, %v6800_v3  ;;  %v6113_v55 = vmul.f32 -1.442695, %v9253_v59  ;;  %v9257_v1 = vadd.f32 %v9207_v12, %v5094_v27 }
 0x2dd   : > { %v6802_v56 = vpop.eup %6801  ;;  %6817 = vpow2.f32 %v6110_v50  ;;  %v6653_v48 = vpop.f32.mrf.mxu1 }
 0x2de   : > { %6819 = vrcp.f32 %v5287_v39  ;;  %v5285_v44 = vadd.f32 1.0, %v6802_v56  ;;  %v6111_v34 = vmul.f32 -1.442695, %v9257_v1  ;;  %v9261_v41 = vadd.f32 %v6653_v48, %v9207_v12 }
 0x2df   : > { %6821 = vpow2.f32 %v6113_v55  ;;  %v6804_v33 = vpop.eup %6803  ;;  %v5107_v4 = vpop.f32.mrf.mxu1 }
 0x2e0   : > { %6823 = vrcp.f32 %v5285_v44  ;;  %v5290_v0 = vadd.f32 1.0, %v6804_v33  ;;  %v6116_v13 = vmul.f32 -1.442695, %v9261_v41  ;;  %v9268_v26 = vadd.f32 %v9207_v12, %v5107_v4 }
 0x2e1   : > { %6825 = vpow2.f32 %v6111_v34  ;;  %v6806_v21 = vpop.eup %6805  ;;  %v6654_v11 = vpop.f32.mrf.mxu1 }
 0x2e2   : > { %6827 = vrcp.f32 %v5290_v0  ;;  %v5288_v37 = vadd.f32 1.0, %v6806_v21  ;;  %v6114_v22 = vmul.f32 -1.442695, %v9268_v26  ;;  %v9274_v23 = vadd.f32 %v6654_v11, %v9207_v12 }
 0x2e3   : > { %v6808_v7 = vpop.eup %6807  ;;  %6829 = vpow2.f32 %v6116_v13  ;;  %v5110_v2 = vpop.f32.mrf.mxu1 }
 0x2e4   : > { %6831 = vrcp.f32 %v5288_v37  ;;  %v5291_v57 = vadd.f32 1.0, %v6808_v7  ;;  %v6117_v9 = vmul.f32 -1.442695, %v9274_v23  ;;  %v9279_v35 = vadd.f32 %v9207_v12, %v5110_v2 }
 0x2e5   : > { %v6810_v14 = vpop.eup %6809  ;;  %6833 = vpow2.f32 %v6114_v22  ;;  %v6657_v62 = vpop.f32.mrf.mxu1 }
 0x2e6   : > { %6835 = vrcp.f32 %v5291_v57  ;;  %v5289_v49 = vadd.f32 1.0, %v6810_v14  ;;  %v6115_v15 = vmul.f32 -1.442695, %v9279_v35  ;;  %v9283_v42 = vadd.f32 %v6657_v62, %v9207_v12 }
 0x2e7   : > { %v6812_v45 = vpop.eup %6811  ;;  %6837 = vpow2.f32 %v6117_v9  ;;  %v5123_v25 = vpop.f32.mrf.mxu1 }
 0x2e8   : > { %v6814_v46 = vpop.eup %6813  ;;  %v5388_v63 = vsel %vm5385_vm9, %v6812_v45, %v9210_v6  ;;  %6839 = vrcp.f32 %v5289_v49  ;;  %v6120_v54 = vmul.f32 -1.442695, %v9283_v42  ;;  %v9293_v8 = vadd.f32 %v9207_v12, %v5123_v25 }
 0x2e9   : > { %v6816_v5 = vpop.eup %6815  ;;  %5420 = vst [vmem:[%s9288_s16 + $0x10] sm:$0xff] %v5388_v63  ;;  %v5294_v53 = vadd.f32 1.0, %v6814_v46  ;;  %6841 = vpow2.f32 %v6115_v15  ;;  %v6658_v32 = vpop.f32.mrf.mxu1 }
 0x2ea   : > { %v6818_v40 = vpop.eup %6817  ;;  %v5386_v6 = vsel %vm5385_vm9, %v6816_v5, %v9214_v18  ;;  %v6118_v38 = vmul.f32 -1.442695, %v9293_v8  ;;  %v9301_v60 = vadd.f32 %v6658_v32, %v9207_v12 }
 0x2eb   : > { %v6820_v43 = vpop.eup %6819  ;;  %5418 = vst [vmem:[%s9288_s16] sm:$0xff] %v5386_v6  ;;  %6843 = vrcp.f32 %v5294_v53  ;;  %v5292_v51 = vadd.f32 1.0, %v6818_v40  ;;  %v5126_v36 = vpop.f32.mrf.mxu1 }
 0x2ec   : > { %v6822_v17 = vpop.eup %6821  ;;  %v5389_v29 = vsel %vm5385_vm9, %v6820_v43, %v9218_v28  ;;  %6845 = vpow2.f32 %v6120_v54  ;;  %v6121_v50 = vmul.f32 -1.442695, %v9301_v60  ;;  %v9309_v19 = vadd.f32 %v9207_v12, %v5126_v36 }
 0x2ed   : > { %v6824_v18 = vpop.eup %6823  ;;  %5421 = vst [vmem:[%s9288_s16 + $0x18] sm:$0xff] %v5389_v29  ;;  %6847 = vrcp.f32 %v5292_v51  ;;  %v5295_v3 = vadd.f32 1.0, %v6822_v17  ;;  %v6661_v56 = vpop.f32.mrf.mxu1 }
 0x2ee   : > { %v6826_v39 = vpop.eup %6825  ;;  %v5387_v27 = vsel %vm5385_vm9, %v6824_v18, %v9222_v24  ;;  %6849 = vpow2.f32 %v6118_v38  ;;  %v6119_v10 = vmul.f32 -1.442695, %v9309_v19  ;;  %v9317_v61 = vadd.f32 %v6661_v56, %v9207_v12 }
 0x2ef   : > { %5419 = vst [vmem:[%s9288_s16 + $0x8] sm:$0xff] %v5387_v27  ;;  %6851 = vrcp.f32 %v5295_v3  ;;  %v5293_v28 = vadd.f32 1.0, %v6826_v39  ;;  %v6828_v55 = vpop.eup %6827  ;;  %v5139_v44 = vpop.f32.mrf.mxu1 }
 0x2f0   : > { %6853 = vpow2.f32 %v6121_v50  ;;  %v6830_v48 = vpop.eup %6829  ;;  %v5392_v24 = vsel %vm5385_vm9, %v6828_v55, %v9226_v47  ;;  %v6124_v34 = vmul.f32 -1.442695, %v9317_v61  ;;  %v9324_v33 = vadd.f32 %v9207_v12, %v5139_v44 }
 0x2f1   : > { %6855 = vrcp.f32 %v5293_v28  ;;  %v6832_v4 = vpop.eup %6831  ;;  %5424 = vst [vmem:[%s9288_s16 + $0x30] sm:$0xff] %v5392_v24  ;;  %v5298_v0 = vadd.f32 1.0, %v6830_v48  ;;  %v6662_v13 = vpop.f32.mrf.mxu1 }
 0x2f2   : > { %6857 = vpow2.f32 %v6119_v10  ;;  %v6834_v21 = vpop.eup %6833  ;;  %v5390_v11 = vsel %vm5385_vm9, %v6832_v4, %v9230_v20  ;;  %v6122_v47 = vmul.f32 -1.442695, %v9324_v33  ;;  %v9332_v37 = vadd.f32 %v6662_v13, %v9207_v12 }
 0x2f3   : > { %6859 = vpow2.f32 %v6124_v34  ;;  %v6836_v22 = vpop.eup %6835  ;;  %5422 = vst [vmem:[%s9288_s16 + $0x20] sm:$0xff] %v5390_v11  ;;  %v5296_v7 = vadd.f32 1.0, %v6834_v21  ;;  %v5142_v2 = vpop.f32.mrf.mxu1 }
 0x2f4   : > { %6861 = vrcp.f32 %v5298_v0  ;;  %v6838_v57 = vpop.eup %6837  ;;  %v5393_v9 = vsel %vm5385_vm9, %v6836_v22, %v9234_v16  ;;  %v6125_v20 = vmul.f32 -1.442695, %v9332_v37  ;;  %v9340_v14 = vadd.f32 %v9207_v12, %v5142_v2 }
 0x2f5   : > { %6863 = vpow2.f32 %v6122_v47  ;;  %v6840_v62 = vpop.eup %6839  ;;  %5425 = vst [vmem:[%s9288_s16 + $0x38] sm:$0xff] %v5393_v9  ;;  %v5299_v45 = vadd.f32 1.0, %v6838_v57  ;;  %v6665_v49 = vpop.f32.mrf.mxu1 }
 0x2f6   : > { %6865 = vrcp.f32 %v5296_v7  ;;  %v6842_v15 = vpop.eup %6841  ;;  %v5391_v46 = vsel %vm5385_vm9, %v6840_v62, %v9238_v30  ;;  %v6123_v16 = vmul.f32 -1.442695, %v9340_v14  ;;  %v9348_v63 = vadd.f32 %v6665_v49, %v9207_v12 }
 0x2f7   : > { %6867 = vpow2.f32 %v6125_v20  ;;  %5423 = vst [vmem:[%s9288_s16 + $0x28] sm:$0xff] %v5391_v46  ;;  %v5297_v5 = vadd.f32 1.0, %v6842_v15  ;;  %v5155_v53 = vpop.f32.mrf.mxu1 }
 0x2f8   : > { %v6844_v25 = vpop.eup %6843  ;;  %6869 = vrcp.f32 %v5299_v45  ;;  %v6128_v30 = vmul.f32 -1.442695, %v9348_v63  ;;  %v9356_v6 = vadd.f32 %v9207_v12, %v5155_v53 }
 0x2f9   : > { %v6846_v54 = vpop.eup %6845  ;;  %v5396_v40 = vsel %vm5385_vm9, %v6844_v25, %v9245_v31  ;;  %6871 = vpow2.f32 %v6123_v16  ;;  %v6666_v51 = vpop.f32.mrf.mxu1 }
 0x2fa   : > { %v6848_v32 = vpop.eup %6847  ;;  %5428 = vst [vmem:[%s9288_s16 + $0x50] sm:$0xff] %v5396_v40  ;;  %6873 = vrcp.f32 %v5297_v5  ;;  %v5302_v43 = vadd.f32 1.0, %v6846_v54  ;;  %v6126_v31 = vmul.f32 -1.442695, %v9356_v6  ;;  %v9364_v29 = vadd.f32 %v6666_v51, %v9207_v12 }
 0x2fb   : > { %v6850_v38 = vpop.eup %6849  ;;  %v5394_v17 = vsel %vm5385_vm9, %v6848_v32, %v9249_v52  ;;  %6875 = vpow2.f32 %v6128_v30  ;;  %v5158_v3 = vpop.f32.mrf.mxu1 }
 0x2fc   : > { %v6852_v36 = vpop.eup %6851  ;;  %5426 = vst [vmem:[%s9288_s16 + $0x40] sm:$0xff] %v5394_v17  ;;  %6877 = vrcp.f32 %v5302_v43  ;;  %v5300_v18 = vadd.f32 1.0, %v6850_v38  ;;  %v6129_v52 = vmul.f32 -1.442695, %v9364_v29  ;;  %v9372_v27 = vadd.f32 %v9207_v12, %v5158_v3 }
 0x2fd   : > { %v6854_v50 = vpop.eup %6853  ;;  %v5397_v39 = vsel %vm5385_vm9, %v6852_v36, %v9253_v59  ;;  %6879 = vpow2.f32 %v6126_v31  ;;  %v6669_v10 = vpop.f32.mrf.mxu1 }
 0x2fe   : > { %v6856_v56 = vpop.eup %6855  ;;  %5429 = vst [vmem:[%s9288_s16 + $0x58] sm:$0xff] %v5397_v39  ;;  %6881 = vrcp.f32 %v5300_v18  ;;  %v5303_v28 = vadd.f32 1.0, %v6854_v50  ;;  %v6127_v48 = vmul.f32 -1.442695, %v9372_v27  ;;  %v9380_v59 = vadd.f32 %v6669_v10, %v9207_v12 }
 0x2ff   : > { %v6858_v55 = vpop.eup %6857  ;;  %v5395_v44 = vsel %vm5385_vm9, %v6856_v56, %v9257_v1  ;;  %6883 = vpow2.f32 %v6129_v52  ;;  %v5171_v4 = vpop.f32.mrf.mxu1 }
 0x300   : > { %v6860_v24 = vpop.eup %6859  ;;  %5427 = vst [vmem:[%s9288_s16 + $0x48] sm:$0xff] %v5395_v44  ;;  %6885 = vrcp.f32 %v5303_v28  ;;  %v5301_v34 = vadd.f32 1.0, %v6858_v55  ;;  %v6132_v21 = vmul.f32 -1.442695, %v9380_v59  ;;  %v9385_v11 = vadd.f32 %v9207_v12, %v5171_v4 }
 0x301   : > { %v6862_v0 = vpop.eup %6861  ;;  %v5306_v13 = vadd.f32 1.0, %v6860_v24  ;;  %6887 = vpow2.f32 %v6127_v48  ;;  %v6670_v22 = vpop.f32.mrf.mxu1 }
 0x302   : > { %v6864_v1 = vpop.eup %6863  ;;  %v5400_v47 = vsel %vm5385_vm9, %v6862_v0, %v9261_v41  ;;  %6889 = vrcp.f32 %v5301_v34  ;;  %v6130_v57 = vmul.f32 -1.442695, %v9385_v11  ;;  %v9393_v9 = vadd.f32 %v6670_v22, %v9207_v12 }
 0x303   : > { %v6866_v7 = vpop.eup %6865  ;;  %5432 = vst [vmem:[%s9288_s16 + $0x70] sm:$0xff] %v5400_v47  ;;  %6891 = vrcp.f32 %v5306_v13  ;;  %v5304_v2 = vadd.f32 1.0, %v6864_v1  ;;  %v5174_v45 = vpop.f32.mrf.mxu1 }
 0x304   : > { %v6868_v20 = vpop.eup %6867  ;;  %v5398_v62 = vsel %vm5385_vm9, %v6866_v7, %v9268_v26  ;;  %6893 = vpow2.f32 %v6132_v21  ;;  %v6133_v15 = vmul.f32 -1.442695, %v9393_v9  ;;  %v9401_v46 = vadd.f32 %v9207_v12, %v5174_v45 }
 0x305   : > { %v6870_v41 = vpop.eup %6869  ;;  %5430 = vst [vmem:[%s9288_s16 + $0x60] sm:$0xff] %v5398_v62  ;;  %6895 = vrcp.f32 %v5304_v2  ;;  %v5307_v49 = vadd.f32 1.0, %v6868_v20 }
 0x306   : > { %v6872_v16 = vpop.eup %6871  ;;  %v5401_v25 = vsel %vm5385_vm9, %v6870_v41, %v9274_v23  ;;  %6897 = vpow2.f32 %v6130_v57  ;;  %v6131_v53 = vmul.f32 -1.442695, %v9401_v46 }
 0x307   : > { %v6874_v5 = vpop.eup %6873  ;;  %5433 = vst [vmem:[%s9288_s16 + $0x78] sm:$0xff] %v5401_v25  ;;  %6899 = vrcp.f32 %v5307_v49  ;;  %v5305_v26 = vadd.f32 1.0, %v6872_v16 }
 0x308   : > { %v6876_v54 = vpop.eup %6875  ;;  %v5399_v40 = vsel %vm5385_vm9, %v6874_v5, %v9279_v35  ;;  %6901 = vpow2.f32 %v6133_v15 }
 0x309   : > { %v6878_v12 = vpop.eup %6877  ;;  %5431 = vst [vmem:[%s9288_s16 + $0x68] sm:$0xff] %v5399_v40  ;;  %6903 = vrcp.f32 %v5305_v26  ;;  %v5310_v30 = vadd.f32 1.0, %v6876_v54 }
 0x30a   : > { %v6880_v23 = vpop.eup %6879  ;;  %v5404_v32 = vsel %vm5385_vm9, %v6878_v12, %v9283_v42  ;;  %6905 = vpow2.f32 %v6131_v53 }
 0x30b   : > { %v6882_v43 = vpop.eup %6881  ;;  %5436 = vst [vmem:[%s9288_s16 + $0x90] sm:$0xff] %v5404_v32  ;;  %6907 = vrcp.f32 %v5310_v30  ;;  %v5308_v51 = vadd.f32 1.0, %v6880_v23 }
 0x30c   : > { %v6884_v38 = vpop.eup %6883  ;;  %v5402_v35 = vsel %vm5385_vm9, %v6882_v43, %v9293_v8 }
 0x30d   : > { %v6886_v17 = vpop.eup %6885  ;;  %5434 = vst [vmem:[%s9288_s16 + $0x80] sm:$0xff] %v5402_v35  ;;  %6909 = vrcp.f32 %v5308_v51  ;;  %v5311_v31 = vadd.f32 1.0, %v6884_v38 }
 0x30e   : > { %v6888_v36 = vpop.eup %6887  ;;  %v5405_v42 = vsel %vm5385_vm9, %v6886_v17, %v9301_v60 }
 0x30f   : > { %v6890_v18 = vpop.eup %6889  ;;  %5437 = vst [vmem:[%s9288_s16 + $0x98] sm:$0xff] %v5405_v42  ;;  %6911 = vrcp.f32 %v5311_v31  ;;  %v5309_v3 = vadd.f32 1.0, %v6888_v36 }
 0x310   : > { %v6892_v50 = vpop.eup %6891  ;;  %v5403_v8 = vsel %vm5385_vm9, %v6890_v18, %v9309_v19 }
 0x311   : > { %v6894_v39 = vpop.eup %6893  ;;  %5435 = vst [vmem:[%s9288_s16 + $0x88] sm:$0xff] %v5403_v8  ;;  %v5408_v52 = vsel %vm5385_vm9, %v6892_v50, %v9317_v61  ;;  %6913 = vrcp.f32 %v5309_v3 }
 0x312   : > { %v6896_v56 = vpop.eup %6895  ;;  %5440 = vst [vmem:[%s9288_s16 + $0xb0] sm:$0xff] %v5408_v52  ;;  %v5314_v60 = vadd.f32 1.0, %v6894_v39 }
 0x313   : > { %v6898_v28 = vpop.eup %6897  ;;  %v5406_v10 = vsel %vm5385_vm9, %v6896_v56, %v9324_v33 }
 0x314   : > { %v6900_v55 = vpop.eup %6899  ;;  %5438 = vst [vmem:[%s9288_s16 + $0xa0] sm:$0xff] %v5406_v10  ;;  %6915 = vrcp.f32 %v5314_v60  ;;  %v5312_v19 = vadd.f32 1.0, %v6898_v28 }
 0x315   : > { %v6902_v44 = vpop.eup %6901  ;;  %v5409_v61 = vsel %vm5385_vm9, %v6900_v55, %v9332_v37 }
 0x316   : > { %v6904_v48 = vpop.eup %6903  ;;  %5441 = vst [vmem:[%s9288_s16 + $0xb8] sm:$0xff] %v5409_v61  ;;  %6917 = vrcp.f32 %v5312_v19  ;;  %v5315_v24 = vadd.f32 1.0, %v6902_v44 }
 0x317   : > { %v6906_v34 = vpop.eup %6905  ;;  %v5407_v33 = vsel %vm5385_vm9, %v6904_v48, %v9340_v14 }
 0x318   : > { %v6908_v4 = vpop.eup %6907  ;;  %5439 = vst [vmem:[%s9288_s16 + $0xa8] sm:$0xff] %v5407_v33  ;;  %6919 = vrcp.f32 %v5315_v24  ;;  %v5313_v0 = vadd.f32 1.0, %v6906_v34 }
 0x319   : > { %v5412_v37 = vsel %vm5385_vm9, %v6908_v4, %v9348_v63 }
 0x31a   : > { %v6910_v13 = vpop.eup %6909  ;;  %5444 = vst [vmem:[%s9288_s16 + $0xd0] sm:$0xff] %v5412_v37  ;;  %6921 = vrcp.f32 %v5313_v0 }
 0x31b   : > { %v5410_v21 = vsel %vm5385_vm9, %v6910_v13, %v9356_v6 }
 0x31c   : > { %v6912_v14 = vpop.eup %6911  ;;  %5442 = vst [vmem:[%s9288_s16 + $0xc0] sm:$0xff] %v5410_v21 }
 0x31d   : > { %v5413_v1 = vsel %vm5385_vm9, %v6912_v14, %v9364_v29 }
 0x31e   : > { %v6914_v47 = vpop.eup %6913  ;;  %5445 = vst [vmem:[%s9288_s16 + $0xd8] sm:$0xff] %v5413_v1 }
 0x31f   : > { %v5411_v63 = vsel %vm5385_vm9, %v6914_v47, %v9372_v27 }
 0x320   : > { %5443 = vst [vmem:[%s9288_s16 + $0xc8] sm:$0xff] %v5411_v63 }
 0x321   : > { %v6916_v22 = vpop.eup %6915 }
 0x322   : > { %v5416_v6 = vsel %vm5385_vm9, %v6916_v22, %v9380_v59 }
 0x323   : > { %v6918_v7 = vpop.eup %6917  ;;  %5448 = vst [vmem:[%s9288_s16 + $0xf0] sm:$0xff] %v5416_v6 }
 0x324   : > { %v5414_v29 = vsel %vm5385_vm9, %v6918_v7, %v9385_v11 }
 0x325   : > { %v6920_v2 = vpop.eup %6919  ;;  %5446 = vst [vmem:[%s9288_s16 + $0xe0] sm:$0xff] %v5414_v29 }
 0x326   : > { %v5417_v27 = vsel %vm5385_vm9, %v6920_v2, %v9393_v9 }
 0x327   : > { %v6922_v59 = vpop.eup %6921  ;;  %5449 = vst [vmem:[%s9288_s16 + $0xf8] sm:$0xff] %v5417_v27 }
 0x328   : > { %v5415_v11 = vsel %vm5385_vm9, %v6922_v59, %v9401_v46 }
 0x329   : > { %5447 = vst [vmem:[%s9288_s16 + $0xe8] sm:$0xff] %v5415_v11 }
 0x32a   : > { %6936 = shalt.err (!%p6933_p5)
}
 0x32b   : > { %s6937_s13 = scalar_lea.hbm %s9476_s27, 4096  ;;  %s6941_s15 = scalar_lea.hbm %s9538_s6, 8192 }
 0x32c   : > { %p6938_p6 = scmp.ne.s32.totalorder %s9476_s27, %s6937_s13  ;;  %p6942_p10 = scmp.lt.s32.totalorder %s9476_s27, %s9538_s6 }
 0x32d   : > { %p6943_p11 = scmp.lt.s32.totalorder %s6941_s15, %s6937_s13 }
 0x32e   : > { %p6939_p7 = pnand %p6938_p6, %p7080_p4 }
 0x32f   : > { %p6944_p12 = por %p6943_p11, %p6942_p10 }
 0x330   : > { %p6940_p9 = pneg %p6939_p7 }
 0x332   : > { %p6945_p13 = pnand %p6944_p12, %p6940_p9 }
 0x334   : > { %6948 = shalt.err (!%p6945_p13)
}
 0x335   : > { %s7003_s19 = smov 128   ;;  %s7004_s20 = smov 8  }
 0x336   : > { %6681 = dma.vmem_to_hbm [thread:$0]  (%p7080_p4), %s9478_s18, 4096, %s9476_s27, %s9487_s24, %s7003_s19, %s7003_s19, %s7004_s20  }
 0x337 PF: > { %p6687_p0 = scmp.ge.s32.totalorder %s6999_s26, 2  ;;  %s5481_s28 = sand.u32 1, %s6979_s21  }
 0x338   : > { %s5482_s30 = scalar_lea.sflag [#allocation3], %s5481_s28 }
 0x339   : > { %p6684_p1 = pnand %p6687_p0, %p7087_p8 }
 0x33b   : > { %p6685_p2 = pneg %p6684_p1 }
 0x33d   : > { %6974 = dma.done.wait (%p6685_p2), %s5482_s30, 4096  }
 0x33e   : > { %6976 = vsyncadd (%p6685_p2), %s5482_s30, 4294963200  ;;  %s19_s26 = sadd.s32 1, %s6999_s26   ;;  %s9645_s21 = smov %s6983_s22 }
 0x33f   : > { %p16_p3 = scmp.ge.s32.totalorder %s19_s26, 4   ;;  %s9646_s22 = smov %s6987_s23 }
 0x340   : > { %s9647_s23 = smov %s7093_s10  ;;  %s9648_s24 = smov %s6995_s25 }
 0x341   : > { %s9649_s25 = smov %s9651_s29  ;;  %18 = sbr.rel (!%p16_p3) target bundleno = 4 (0x4), region = 90 }
 0x346   :  { %5487 = vsyncpa [#allocation3], 1 }
 0x347   :  { %5489 = vsyncpa [#allocation3 + $0x1], 1 }

</bundles_post_ra>
